<compile_context>
chip_gen: v7x
topology: tpu7x:2x2x1
jax: 0.10.0
libtpu: 0.0.40
codegen_flags: <defaults>
</compile_context>

<pallas_src>
import functools
import math

import jax
import jax.numpy as jnp
from jax.experimental import pallas as pl
from jax.experimental.pallas import tpu as pltpu


_COMPUTE_DTYPE = jnp.bfloat16      # MXU operand dtype (f32 accumulation everywhere)
_VMEM_LIMIT = 32 * 1024 * 1024     # safe on v5e / v6e / v7x (64 MiB physical on v7x)


def _pick_tile(dim, target, align):
    """Largest tile <= target that divides `dim` and is `align`-aligned (or the full dim)."""
    if dim <= target:
        return dim
    t = (target // align) * align
    while t >= align:
        if dim % t == 0:
            return t
        t -= align
    return dim  # fall back to a single block along this axis


# ----------------------------- Pallas kernels ------------------------------

def _matmul_kernel(*refs, activation, has_residual):
    if has_residual:
        x_ref, w_ref, b_ref, r_ref, o_ref, acc_ref = refs
    else:
        x_ref, w_ref, b_ref, o_ref, acc_ref = refs
        r_ref = None

    @pl.when(pl.program_id(2) == 0)
    def _init():
        acc_ref[...] = jnp.zeros_like(acc_ref)

    acc_ref[...] += jnp.dot(x_ref[...], w_ref[...],
                            preferred_element_type=jnp.float32)

    @pl.when(pl.program_id(2) == pl.num_programs(2) - 1)
    def _store():
        y = acc_ref[...] + b_ref[...]
        if activation == "relu":
            y = jnp.maximum(y, 0.0)
        if r_ref is not None:
            y = y + r_ref[...]                     # fused residual add (f32)
        o_ref[...] = y.astype(o_ref.dtype)


def linear(x2d, w, b, *, activation=None, out_dtype=jnp.float32, residual=None):
    """y = x @ w + b (+ residual). bf16 operands, f32 accumulation, out_dtype output."""
    M, K = x2d.shape
    Kw, N = w.shape
    assert K == Kw, (x2d.shape, w.shape)

    tm = _pick_tile(M, 256, 16)        # 16-aligned sublanes for bf16 operands
    tn = _pick_tile(N, 256, 128)
    tk = _pick_tile(K, 512, 128)
    grid = (M // tm, N // tn, K // tk)

    xb = x2d if x2d.dtype == _COMPUTE_DTYPE else x2d.astype(_COMPUTE_DTYPE)
    wb = w if w.dtype == _COMPUTE_DTYPE else w.astype(_COMPUTE_DTYPE)
    b2 = b.reshape(1, N).astype(jnp.float32)

    in_specs = [pl.BlockSpec((tm, tk), lambda i, j, k: (i, k)),
                pl.BlockSpec((tk, tn), lambda i, j, k: (k, j)),
                pl.BlockSpec((1, tn), lambda i, j, k: (0, j))]
    args = [xb, wb, b2]
    if residual is not None:
        in_specs.append(pl.BlockSpec((tm, tn), lambda i, j, k: (i, j)))
        args.append(residual.astype(jnp.float32))

    kernel = functools.partial(_matmul_kernel, activation=activation,
                               has_residual=residual is not None)
    return pl.pallas_call(
        kernel,
        out_shape=jax.ShapeDtypeStruct((M, N), out_dtype),
        grid=grid,
        in_specs=in_specs,
        out_specs=pl.BlockSpec((tm, tn), lambda i, j, k: (i, j)),
        scratch_shapes=[pltpu.VMEM((tm, tn), jnp.float32)],
        compiler_params=pltpu.CompilerParams(
            dimension_semantics=("parallel", "parallel", "arbitrary"),
            vmem_limit_bytes=_VMEM_LIMIT),
    )(*args)


def _layernorm_kernel(x_ref, g_ref, b_ref, o_ref, *, eps):
    x = x_ref[...].astype(jnp.float32)
    mean = jnp.mean(x, axis=-1, keepdims=True)
    var = jnp.mean(jnp.square(x - mean), axis=-1, keepdims=True)
    y = (x - mean) * jax.lax.rsqrt(var + eps)
    o_ref[...] = (y * g_ref[...] + b_ref[...]).astype(o_ref.dtype)


def layernorm(x, g, b, *, eps=1e-5, out_dtype=None):
    """Row layer-norm; stats in f32, output dtype selectable (bf16 for matmul consumers)."""
    shp = x.shape
    D = shp[-1]
    x2 = x.reshape(-1, D)
    M = x2.shape[0]
    tm = _pick_tile(M, 256, 16)
    out_dtype = x.dtype if out_dtype is None else out_dtype
    kernel = functools.partial(_layernorm_kernel, eps=eps)
    out = pl.pallas_call(
        kernel,
        out_shape=jax.ShapeDtypeStruct((M, D), out_dtype),
        grid=(M // tm,),
        in_specs=[pl.BlockSpec((tm, D), lambda i: (i, 0)),
                  pl.BlockSpec((1, D), lambda i: (0, 0)),
                  pl.BlockSpec((1, D), lambda i: (0, 0))],
        out_specs=pl.BlockSpec((tm, D), lambda i: (i, 0)),
        compiler_params=pltpu.CompilerParams(
            dimension_semantics=("parallel",),
            vmem_limit_bytes=_VMEM_LIMIT),
    )(x2, g.reshape(1, D), b.reshape(1, D))
    return out.reshape(shp[:-1] + (D,))


def _flash_attention_kernel(q_ref, k_ref, v_ref, m_ref, o_ref,
                            m_sc, l_sc, acc_sc, *,
                            n_heads, d_v, scale, causal, tq, tk):
    """One (batch, q-block, k-block) step of online-softmax attention, all heads."""
    kv_idx = pl.program_id(2)

    @pl.when(kv_idx == 0)
    def _init():
        m_sc[...] = jnp.full_like(m_sc, -1e30)
        l_sc[...] = jnp.zeros_like(l_sc)
        acc_sc[...] = jnp.zeros_like(acc_sc)

    # pad (+ causal) mask built in-kernel: no (B*H, Lq, Lk) mask DMA from HBM
    valid = m_ref[0] > 0                                     # (1, tk) bool
    keep = jnp.broadcast_to(valid, (tq, tk))
    if causal:
        q0 = pl.program_id(1) * tq
        k0 = kv_idx * tk
        row = q0 + jax.lax.broadcasted_iota(jnp.int32, (tq, tk), 0)
        col = k0 + jax.lax.broadcasted_iota(jnp.int32, (tq, tk), 1)
        keep = jnp.logical_and(keep, col <= row)

    for h in range(n_heads):                                 # static unroll over heads
        qh = q_ref[0, :, h, :]                               # (tq, dq) bf16
        kh = k_ref[0, :, h, :]                               # (tk, dq) bf16
        vh = v_ref[0, :, h, :]                               # (tk, dv) bf16

        s = jax.lax.dot_general(
            qh, kh, (((1,), (1,)), ((), ())),
            preferred_element_type=jnp.float32) * scale      # (tq, tk) f32
        s = jnp.where(keep, s, -1e9)

        m_prev = m_sc[h]                                     # (tq, 1)
        m_new = jnp.maximum(m_prev, jnp.max(s, axis=-1, keepdims=True))
        alpha = jnp.exp(m_prev - m_new)
        p = jnp.exp(s - m_new)
        l_sc[h] = alpha * l_sc[h] + jnp.sum(p, axis=-1, keepdims=True)
        acc_sc[h] = alpha * acc_sc[h] + jnp.dot(
            p.astype(vh.dtype), vh, preferred_element_type=jnp.float32)
        m_sc[h] = m_new

    @pl.when(kv_idx == pl.num_programs(2) - 1)
    def _store():
        for h in range(n_heads):
            inv_l = pl.reciprocal(l_sc[h], approx=True)      # EUP; ~1e-3 rel err, eval-only
            o_ref[0, :, h, :] = (acc_sc[h] * inv_l).astype(o_ref.dtype)


def sdpa(q, k, v, kv_valid, *, n_heads, d_qk, d_v, scale, causal):
    """q (N,Lq,H,dq), k (N,Lk,H,dq), v (N,Lk,H,dv) bf16; kv_valid (N,1,Lk) int32.

    Returns (N, Lq, H, dv) bf16 (free reshape to (N, Lq, H*dv) for the Wo matmul).
    """
    N, Lq, H, dq = q.shape
    Lk = k.shape[1]
    dv = v.shape[3]
    assert H == n_heads and dq == d_qk and dv == d_v

    tq = _pick_tile(Lq, 256, 16)
    tk = _pick_tile(Lk, 512, 128)
    grid = (N, Lq // tq, Lk // tk)

    kernel = functools.partial(_flash_attention_kernel, n_heads=H, d_v=dv,
                               scale=scale, causal=causal, tq=tq, tk=tk)
    return pl.pallas_call(
        kernel,
        out_shape=jax.ShapeDtypeStruct((N, Lq, H, dv), _COMPUTE_DTYPE),
        grid=grid,
        in_specs=[pl.BlockSpec((1, tq, H, dq), lambda n, i, j: (n, i, 0, 0)),
                  pl.BlockSpec((1, tk, H, dq), lambda n, i, j: (n, j, 0, 0)),
                  pl.BlockSpec((1, tk, H, dv), lambda n, i, j: (n, j, 0, 0)),
                  pl.BlockSpec((1, 1, tk), lambda n, i, j: (n, 0, j))],
        out_specs=pl.BlockSpec((1, tq, H, dv), lambda n, i, j: (n, i, 0, 0)),
        scratch_shapes=[pltpu.VMEM((H, tq, 1), jnp.float32),    # running max
                        pltpu.VMEM((H, tq, 1), jnp.float32),    # running denom
                        pltpu.VMEM((H, tq, dv), jnp.float32)],  # running output
        compiler_params=pltpu.CompilerParams(
            dimension_semantics=("parallel", "parallel", "arbitrary"),
            vmem_limit_bytes=_VMEM_LIMIT),
    )(q, k, v, kv_valid)


# ------------------------------ model blocks -------------------------------

def multi_head_attention(x_q, x_kv, kv_valid_mask, p, cfg, self_attention, causal):
    N, Lq, D = x_q.shape
    Lk = x_kv.shape[1]
    H, dq, dv = cfg["n_heads"], cfg["d_queries"], cfg["d_values"]

    residual = x_q                                                       # f32 residual stream
    q_in = layernorm(x_q, p["ln_g"], p["ln_b"], out_dtype=_COMPUTE_DTYPE)

    if self_attention:
        # fused Q/K/V projection; bf16 output feeds attention directly
        qkv = linear(q_in.reshape(N * Lq, D), p["Wqkv"], p["bqkv"],
                     out_dtype=_COMPUTE_DTYPE)                           # (N*Lq, H*(2dq+dv))
        q = qkv[:, : H * dq]
        k = qkv[:, H * dq: 2 * H * dq]
        v = qkv[:, 2 * H * dq:]
        Lkv = Lq
    else:
        # cross-attention: encoder output (already layer-normed, bf16) feeds K/V
        q = linear(q_in.reshape(N * Lq, D), p["Wq"], p["bq"],
                   out_dtype=_COMPUTE_DTYPE)
        kv = linear(x_kv.reshape(N * Lk, D), p["Wkv"], p["bkv"],
                    out_dtype=_COMPUTE_DTYPE)
        k = kv[:, : H * dq]
        v = kv[:, H * dq:]
        Lkv = Lk

    # head split is a free reshape (head dim indexed inside the kernel; no XLA transpose)
    q4 = q.reshape(N, Lq, H, dq)
    k4 = k.reshape(N, Lkv, H, dq)
    v4 = v.reshape(N, Lkv, H, dv)
    kv_valid = kv_valid_mask.astype(jnp.int32).reshape(N, 1, Lkv)

    attn = sdpa(q4, k4, v4, kv_valid, n_heads=H, d_qk=dq, d_v=dv,
                scale=1.0 / math.sqrt(dq), causal=causal)                # (N,Lq,H,dv) bf16

    # output projection with the residual add fused into the matmul epilogue
    out = linear(attn.reshape(N * Lq, H * dv), p["Wo"], p["bo"],
                 residual=residual.reshape(N * Lq, D),
                 out_dtype=jnp.float32)
    return out.reshape(N, Lq, D)


def position_wise_ffn(x, p):
    N, L, D = x.shape
    residual = x
    y = layernorm(x, p["ln_g"], p["ln_b"], out_dtype=_COMPUTE_DTYPE)
    y = linear(y.reshape(N * L, D), p["W1"], p["b1"],
               activation="relu", out_dtype=_COMPUTE_DTYPE)
    y = linear(y, p["W2"], p["b2"],
               residual=residual.reshape(N * L, D), out_dtype=jnp.float32)
    return y.reshape(N, L, D)


def encoder_forward(seq, pad_mask, params, cfg):
    N, L = seq.shape
    D = cfg["d_model"]
    x = params["emb"][seq] * math.sqrt(D) + params["pos"][:, :L, :]
    for lp in params["enc"]["layers"]:
        x = multi_head_attention(x, x, pad_mask, lp["attn"], cfg,
                                 self_attention=True, causal=False)
        x = position_wise_ffn(x, lp["ffn"])
    # bf16 output: it only feeds the cross-attention K/V projections (matmuls)
    return layernorm(x, params["enc"]["ln_g"], params["enc"]["ln_b"],
                     out_dtype=_COMPUTE_DTYPE)


def decoder_forward(seq, pad_mask, enc_out, enc_pad_mask, params, cfg):
    N, L = seq.shape
    D = cfg["d_model"]
    x = params["emb"][seq] * math.sqrt(D) + params["pos"][:, :L, :]
    for lp in params["dec"]["layers"]:
        x = multi_head_attention(x, x, pad_mask, lp["self_attn"], cfg,
                                 self_attention=True, causal=True)
        x = multi_head_attention(x, enc_out, enc_pad_mask, lp["cross_attn"], cfg,
                                 self_attention=False, causal=False)
        x = position_wise_ffn(x, lp["ffn"])
    x = layernorm(x, params["dec"]["ln_g"], params["dec"]["ln_b"],
                  out_dtype=_COMPUTE_DTYPE)
    # tied final linear: logits = x @ emb^T + b. The transpose is done once at
    # trace time (params are jit constants) so the kernel sees native (K, N) layout.
    logits = linear(x.reshape(N * L, D), params["emb"].T, params["dec"]["final_b"],
                    out_dtype=jnp.float32)
    return logits.reshape(N, L, cfg["vocab_size"])


def transformer_forward(params, cfg, enc_seq, dec_seq, enc_pad_mask, dec_pad_mask):
    enc_out = encoder_forward(enc_seq, enc_pad_mask, params, cfg)
    return decoder_forward(dec_seq, dec_pad_mask, enc_out, enc_pad_mask, params, cfg)


# ---------------------------- parameter set-up -----------------------------

def xavier_uniform(key, shape):
    fan_in, fan_out = shape
    limit = math.sqrt(6.0 / (fan_in + fan_out))
    return jax.random.uniform(key, shape, jnp.float32, -limit, limit)


def sinusoidal_positional_encoding(max_len, d_model):
    pos = jnp.arange(max_len, dtype=jnp.float32)[:, None]
    i = jnp.arange(d_model // 2, dtype=jnp.float32)[None, :]
    angle = pos / jnp.power(10000.0, 2.0 * i / d_model)
    pe = jnp.zeros((max_len, d_model), jnp.float32)
    pe = pe.at[:, 0::2].set(jnp.sin(angle))
    pe = pe.at[:, 1::2].set(jnp.cos(angle))
    return pe[None]  # (1, max_len, d_model)


def init_self_attn(key, D, H, dq, dv):
    k1, k2, k3 = jax.random.split(key, 3)
    Wq = xavier_uniform(k1, (D, H * dq))
    Wkv = xavier_uniform(k2, (D, H * (dq + dv)))
    return {
        "ln_g": jnp.ones((D,), jnp.float32), "ln_b": jnp.zeros((D,), jnp.float32),
        "Wqkv": jnp.concatenate([Wq, Wkv], axis=1),
        "bqkv": jnp.zeros((H * (2 * dq + dv),), jnp.float32),
        "Wo": xavier_uniform(k3, (H * dv, D)), "bo": jnp.zeros((D,), jnp.float32),
    }


def init_cross_attn(key, D, H, dq, dv):
    k1, k2, k3 = jax.random.split(key, 3)
    return {
        "ln_g": jnp.ones((D,), jnp.float32), "ln_b": jnp.zeros((D,), jnp.float32),
        "Wq": xavier_uniform(k1, (D, H * dq)), "bq": jnp.zeros((H * dq,), jnp.float32),
        "Wkv": xavier_uniform(k2, (D, H * (dq + dv))),
        "bkv": jnp.zeros((H * (dq + dv),), jnp.float32),
        "Wo": xavier_uniform(k3, (H * dv, D)), "bo": jnp.zeros((D,), jnp.float32),
    }


def init_ffn(key, D, Dh):
    k1, k2 = jax.random.split(key)
    return {
        "ln_g": jnp.ones((D,), jnp.float32), "ln_b": jnp.zeros((D,), jnp.float32),
        "W1": xavier_uniform(k1, (D, Dh)), "b1": jnp.zeros((Dh,), jnp.float32),
        "W2": xavier_uniform(k2, (Dh, D)), "b2": jnp.zeros((D,), jnp.float32),
    }


def init_params(key, cfg):
    D, H, dq, dv = cfg["d_model"], cfg["n_heads"], cfg["d_queries"], cfg["d_values"]
    Dh, V, L = cfg["d_hidden"], cfg["vocab_size"], cfg["num_layers"]
    keys = jax.random.split(key, 1 + 2 * L + 3 * L)
    ki = iter(keys)
    emb = jax.random.normal(next(ki), (V, D), jnp.float32) * (D ** -0.5)

    enc_layers = []
    for _ in range(L):
        enc_layers.append({"attn": init_self_attn(next(ki), D, H, dq, dv),
                           "ffn": init_ffn(next(ki), D, Dh)})
    dec_layers = []
    for _ in range(L):
        dec_layers.append({"self_attn": init_self_attn(next(ki), D, H, dq, dv),
                           "cross_attn": init_cross_attn(next(ki), D, H, dq, dv),
                           "ffn": init_ffn(next(ki), D, Dh)})
    return {
        "emb": emb,  # shared: encoder embedding, decoder embedding, final linear weight
        "pos": sinusoidal_positional_encoding(cfg["max_len"], D),
        "enc": {"layers": enc_layers,
                "ln_g": jnp.ones((D,), jnp.float32), "ln_b": jnp.zeros((D,), jnp.float32)},
        "dec": {"layers": dec_layers,
                "ln_g": jnp.ones((D,), jnp.float32), "ln_b": jnp.zeros((D,), jnp.float32),
                "final_b": jnp.zeros((V,), jnp.float32)},
    }


# --------------------------------- main -------------------------------------

if __name__ == "__main__":
    cfg = dict(vocab_size=64, d_model=32, n_heads=4, d_queries=8, d_values=8,
               d_hidden=64, num_layers=2, max_len=16)

    root = jax.random.PRNGKey(0)
    pkey, dkey = jax.random.split(root)
    params = init_params(pkey, cfg)

    N, Le, Ld = 2, 8, 8
    k1, k2 = jax.random.split(dkey)
    enc_seq = jax.random.randint(k1, (N, Le), 1, cfg["vocab_size"], jnp.int32)
    dec_seq = jax.random.randint(k2, (N, Ld), 1, cfg["vocab_size"], jnp.int32)
    enc_lens = jnp.array([8, 6])
    dec_lens = jnp.array([8, 5])
    enc_pad_mask = jnp.arange(Le)[None, :] < enc_lens[:, None]   # True = valid token
    dec_pad_mask = jnp.arange(Ld)[None, :] < dec_lens[:, None]

    fwd = jax.jit(lambda es, ds, em, dm: transformer_forward(params, cfg, es, ds, em, dm))
    logits = fwd(enc_seq, dec_seq, enc_pad_mask, dec_pad_mask)
    logits = jax.block_until_ready(logits)

    assert logits.shape == (N, Ld, cfg["vocab_size"]), logits.shape
    assert bool(jnp.all(jnp.isfinite(logits)))
    print("KERNEL_OK")
</pallas_src>

<mosaic_0001>
module attributes {stable_mosaic.version = 11 : i64} {
  func.func @_layernorm_kernel(%arg0: i32, %arg1: memref<16x32xf32, #tpu.memory_space<vmem>>, %arg2: memref<1x32xf32, #tpu.memory_space<vmem>>, %arg3: memref<1x32xf32, #tpu.memory_space<vmem>>, %arg4: memref<16x32xbf16, #tpu.memory_space<vmem>>) attributes {dimension_semantics = [#tpu.dimension_semantics<parallel>], iteration_bounds = array<i64: 1>, scalar_prefetch = 0 : i64, scratch_operands = 0 : i64, tpu.core_type = #tpu.core_type<tc>, window_params = [{transform_indices = @transform_0, window_bounds = array<i64: 16, 32>}, {pipeline_mode = #tpu.pipeline_mode<synchronous>, transform_indices = @transform_1, window_bounds = array<i64: 1, 32>}, {pipeline_mode = #tpu.pipeline_mode<synchronous>, transform_indices = @transform_2, window_bounds = array<i64: 1, 32>}, {transform_indices = @transform_3, window_bounds = array<i64: 16, 32>}]} {
    %c0 = arith.constant 0 : index
    %c0_0 = arith.constant 0 : index
    %0 = vector.load %arg1[%c0, %c0_0] : memref<16x32xf32, #tpu.memory_space<vmem>>, vector<16x32xf32>
    %cst = arith.constant dense<0.000000e+00> : vector<16xf32>
    %1 = vector.multi_reduction <add>, %0, %cst [1] : vector<16x32xf32> to vector<16xf32>
    %2 = vector.shape_cast %1 : vector<16xf32> to vector<16x1xf32>
    %cst_1 = arith.constant 3.200000e+01 : f32
    %3 = vector.broadcast %cst_1 : f32 to vector<16x1xf32>
    %4 = arith.divf %2, %3 : vector<16x1xf32>
    %5 = vector.broadcast %4 : vector<16x1xf32> to vector<16x32xf32>
    %6 = arith.subf %0, %5 : vector<16x32xf32>
    %7 = arith.mulf %6, %6 : vector<16x32xf32>
    %cst_2 = arith.constant dense<0.000000e+00> : vector<16xf32>
    %8 = vector.multi_reduction <add>, %7, %cst_2 [1] : vector<16x32xf32> to vector<16xf32>
    %9 = vector.shape_cast %8 : vector<16xf32> to vector<16x1xf32>
    %cst_3 = arith.constant 3.200000e+01 : f32
    %10 = vector.broadcast %cst_3 : f32 to vector<16x1xf32>
    %11 = arith.divf %9, %10 : vector<16x1xf32>
    %12 = vector.broadcast %4 : vector<16x1xf32> to vector<16x32xf32>
    %13 = arith.subf %0, %12 : vector<16x32xf32>
    %cst_4 = arith.constant 9.99999974E-6 : f32
    %14 = vector.broadcast %cst_4 : f32 to vector<16x1xf32>
    %15 = arith.addf %11, %14 : vector<16x1xf32>
    %16 = math.rsqrt %15 : vector<16x1xf32>
    %17 = vector.broadcast %16 : vector<16x1xf32> to vector<16x32xf32>
    %18 = arith.mulf %13, %17 : vector<16x32xf32>
    %c0_5 = arith.constant 0 : index
    %c0_6 = arith.constant 0 : index
    %19 = vector.load %arg2[%c0_5, %c0_6] : memref<1x32xf32, #tpu.memory_space<vmem>>, vector<1x32xf32>
    %20 = vector.broadcast %19 : vector<1x32xf32> to vector<16x32xf32>
    %21 = arith.mulf %18, %20 : vector<16x32xf32>
    %c0_7 = arith.constant 0 : index
    %c0_8 = arith.constant 0 : index
    %22 = vector.load %arg3[%c0_7, %c0_8] : memref<1x32xf32, #tpu.memory_space<vmem>>, vector<1x32xf32>
    %23 = vector.broadcast %22 : vector<1x32xf32> to vector<16x32xf32>
    %24 = arith.addf %21, %23 : vector<16x32xf32>
    %25 = arith.truncf %24 : vector<16x32xf32> to vector<16x32xbf16>
    %c0_9 = arith.constant 0 : index
    %c0_10 = arith.constant 0 : index
    %26 = vector.load %arg4[%c0_9, %c0_10] : memref<16x32xbf16, #tpu.memory_space<vmem>>, vector<16x32xbf16>
    tpu.vector_store %arg4[%c0_9, %c0_10], %25 {strides = array<i32>} : memref<16x32xbf16, #tpu.memory_space<vmem>>, vector<16x32xbf16>,
    return
  }
  func.func @transform_0(%arg0: i32) -> (i32, i32) {
    %c0_i32 = arith.constant 0 : i32
    %c0_i32_0 = arith.constant 0 : i32
    return %arg0, %c0_i32 : i32, i32
  }
  func.func @transform_1(%arg0: i32) -> (i32, i32) {
    %c0_i32 = arith.constant 0 : i32
    %c0_i32_0 = arith.constant 0 : i32
    %c0_i32_1 = arith.constant 0 : i32
    return %c0_i32, %c0_i32_0 : i32, i32
  }
  func.func @transform_2(%arg0: i32) -> (i32, i32) {
    %c0_i32 = arith.constant 0 : i32
    %c0_i32_0 = arith.constant 0 : i32
    %c0_i32_1 = arith.constant 0 : i32
    return %c0_i32, %c0_i32_0 : i32, i32
  }
  func.func @transform_3(%arg0: i32) -> (i32, i32) {
    %c0_i32 = arith.constant 0 : i32
    %c0_i32_0 = arith.constant 0 : i32
    return %arg0, %c0_i32 : i32, i32
  }
}

module attributes {stable_mosaic.version = 11 : i64} {
  func.func @_matmul_kernel(%arg0: i32, %arg1: i32, %arg2: i32, %arg3: memref<16x32xbf16, #tpu.memory_space<vmem>>, %arg4: memref<32x96xbf16, #tpu.memory_space<vmem>>, %arg5: memref<1x96xf32, #tpu.memory_space<vmem>>, %arg6: memref<16x96xbf16, #tpu.memory_space<vmem>>, %arg7: memref<16x96xf32, #tpu.memory_space<vmem>>) attributes {dimension_semantics = [#tpu.dimension_semantics<parallel>, #tpu.dimension_semantics<parallel>, #tpu.dimension_semantics<arbitrary>], iteration_bounds = array<i64: 1, 1, 1>, scalar_prefetch = 0 : i64, scratch_operands = 1 : i64, tpu.core_type = #tpu.core_type<tc>, window_params = [{transform_indices = @transform_0, window_bounds = array<i64: 16, 32>}, {transform_indices = @transform_1, window_bounds = array<i64: 32, 96>}, {transform_indices = @transform_2, window_bounds = array<i64: 1, 96>}, {transform_indices = @transform_3, window_bounds = array<i64: 16, 96>}]} {
    %c0_i32 = arith.constant 0 : i32
    %0 = arith.cmpi eq, %arg2, %c0_i32 : i32
    %1 = arith.extui %0 : i1 to i32
    %c0_i32_0 = arith.constant 0 : i32
    %2 = arith.cmpi ne, %1, %c0_i32_0 : i32
    scf.if %2 {
      %cst_10 = arith.constant 0.000000e+00 : f32
      %12 = vector.broadcast %cst_10 : f32 to vector<16x96xf32>
      %c0_11 = arith.constant 0 : index
      %c0_12 = arith.constant 0 : index
      %13 = vector.load %arg7[%c0_11, %c0_12] : memref<16x96xf32, #tpu.memory_space<vmem>>, vector<16x96xf32>
      tpu.vector_store %arg7[%c0_11, %c0_12], %12 {strides = array<i32>} : memref<16x96xf32, #tpu.memory_space<vmem>>, vector<16x96xf32>,
    } else {
    }
    %c0 = arith.constant 0 : index
    %c0_1 = arith.constant 0 : index
    %3 = vector.load %arg7[%c0, %c0_1] : memref<16x96xf32, #tpu.memory_space<vmem>>, vector<16x96xf32>
    %c0_2 = arith.constant 0 : index
    %c0_3 = arith.constant 0 : index
    %4 = vector.load %arg3[%c0_2, %c0_3] : memref<16x32xbf16, #tpu.memory_space<vmem>>, vector<16x32xbf16>
    %c0_4 = arith.constant 0 : index
    %c0_5 = arith.constant 0 : index
    %5 = vector.load %arg4[%c0_4, %c0_5] : memref<32x96xbf16, #tpu.memory_space<vmem>>, vector<32x96xbf16>
    %cst = arith.constant dense<0.000000e+00> : vector<16x96xf32>
    %6 = tpu.matmul %4, %5, %cst {dimension_numbers = #tpu.dot_dimension_numbers<[1], [0], [0], [1], [0, 0, 1, 1], [], []>} : vector<16x32xbf16>, vector<32x96xbf16>, vector<16x96xf32> -> vector<16x96xf32>
    %7 = arith.addf %3, %6 : vector<16x96xf32>
    %c0_6 = arith.constant 0 : index
    %c0_7 = arith.constant 0 : index
    %8 = vector.load %arg7[%c0_6, %c0_7] : memref<16x96xf32, #tpu.memory_space<vmem>>, vector<16x96xf32>
    tpu.vector_store %arg7[%c0_6, %c0_7], %7 {strides = array<i32>} : memref<16x96xf32, #tpu.memory_space<vmem>>, vector<16x96xf32>,
    %c0_i32_8 = arith.constant 0 : i32
    %9 = arith.cmpi eq, %arg2, %c0_i32_8 : i32
    %10 = arith.extui %9 : i1 to i32
    %c0_i32_9 = arith.constant 0 : i32
    %11 = arith.cmpi ne, %10, %c0_i32_9 : i32
    scf.if %11 {
      %c0_10 = arith.constant 0 : index
      %c0_11 = arith.constant 0 : index
      %12 = vector.load %arg7[%c0_10, %c0_11] : memref<16x96xf32, #tpu.memory_space<vmem>>, vector<16x96xf32>
      %c0_12 = arith.constant 0 : index
      %c0_13 = arith.constant 0 : index
      %13 = vector.load %arg5[%c0_12, %c0_13] : memref<1x96xf32, #tpu.memory_space<vmem>>, vector<1x96xf32>
      %14 = vector.broadcast %13 : vector<1x96xf32> to vector<16x96xf32>
      %15 = arith.addf %12, %14 : vector<16x96xf32>
      %16 = arith.truncf %15 : vector<16x96xf32> to vector<16x96xbf16>
      %c0_14 = arith.constant 0 : index
      %c0_15 = arith.constant 0 : index
      %17 = vector.load %arg6[%c0_14, %c0_15] : memref<16x96xbf16, #tpu.memory_space<vmem>>, vector<16x96xbf16>
      tpu.vector_store %arg6[%c0_14, %c0_15], %16 {strides = array<i32>} : memref<16x96xbf16, #tpu.memory_space<vmem>>, vector<16x96xbf16>,
    } else {
    }
    return
  }
  func.func @transform_0(%arg0: i32, %arg1: i32, %arg2: i32) -> (i32, i32) {
    %c0_i32 = arith.constant 0 : i32
    return %arg0, %arg2 : i32, i32
  }
  func.func @transform_1(%arg0: i32, %arg1: i32, %arg2: i32) -> (i32, i32) {
    %c0_i32 = arith.constant 0 : i32
    return %arg2, %arg1 : i32, i32
  }
  func.func @transform_2(%arg0: i32, %arg1: i32, %arg2: i32) -> (i32, i32) {
    %c0_i32 = arith.constant 0 : i32
    %c0_i32_0 = arith.constant 0 : i32
    return %c0_i32, %arg1 : i32, i32
  }
  func.func @transform_3(%arg0: i32, %arg1: i32, %arg2: i32) -> (i32, i32) {
    %c0_i32 = arith.constant 0 : i32
    return %arg0, %arg1 : i32, i32
  }
}

module attributes {stable_mosaic.version = 11 : i64} {
  func.func @_flash_attention_kernel(%arg0: i32, %arg1: i32, %arg2: i32, %arg3: memref<1x8x4x8xbf16, #tpu.memory_space<vmem>>, %arg4: memref<1x8x4x8xbf16, #tpu.memory_space<vmem>>, %arg5: memref<1x8x4x8xbf16, #tpu.memory_space<vmem>>, %arg6: memref<1x1x8xi32, #tpu.memory_space<vmem>>, %arg7: memref<1x8x4x8xbf16, #tpu.memory_space<vmem>>, %arg8: memref<4x8x1xf32, #tpu.memory_space<vmem>>, %arg9: memref<4x8x1xf32, #tpu.memory_space<vmem>>, %arg10: memref<4x8x8xf32, #tpu.memory_space<vmem>>) attributes {dimension_semantics = [#tpu.dimension_semantics<parallel>, #tpu.dimension_semantics<parallel>, #tpu.dimension_semantics<arbitrary>], iteration_bounds = array<i64: 2, 1, 1>, scalar_prefetch = 0 : i64, scratch_operands = 3 : i64, tpu.core_type = #tpu.core_type<tc>, window_params = [{transform_indices = @transform_0, window_bounds = array<i64: 1, 8, 4, 8>}, {transform_indices = @transform_1, window_bounds = array<i64: 1, 8, 4, 8>}, {transform_indices = @transform_2, window_bounds = array<i64: 1, 8, 4, 8>}, {transform_indices = @transform_3, window_bounds = array<i64: 1, 1, 8>}, {transform_indices = @transform_4, window_bounds = array<i64: 1, 8, 4, 8>}]} {
    %c0_i32 = arith.constant 0 : i32
    %0 = arith.cmpi eq, %arg2, %c0_i32 : i32
    %1 = arith.extui %0 : i1 to i32
    %c0_i32_0 = arith.constant 0 : i32
    %2 = arith.cmpi ne, %1, %c0_i32_0 : i32
    scf.if %2 {
      %cst_147 = arith.constant -1.000000e+30 : f32
      %194 = vector.broadcast %cst_147 : f32 to vector<4x8x1xf32>
      %c0_148 = arith.constant 0 : index
      %c0_149 = arith.constant 0 : index
      %c0_150 = arith.constant 0 : index
      %195 = vector.load %arg8[%c0_148, %c0_149, %c0_150] : memref<4x8x1xf32, #tpu.memory_space<vmem>>, vector<4x8x1xf32>
      tpu.vector_store %arg8[%c0_148, %c0_149, %c0_150], %194 {strides = array<i32>} : memref<4x8x1xf32, #tpu.memory_space<vmem>>, vector<4x8x1xf32>,
      %cst_151 = arith.constant 0.000000e+00 : f32
      %196 = vector.broadcast %cst_151 : f32 to vector<4x8x1xf32>
      %c0_152 = arith.constant 0 : index
      %c0_153 = arith.constant 0 : index
      %c0_154 = arith.constant 0 : index
      %197 = vector.load %arg9[%c0_152, %c0_153, %c0_154] : memref<4x8x1xf32, #tpu.memory_space<vmem>>, vector<4x8x1xf32>
      tpu.vector_store %arg9[%c0_152, %c0_153, %c0_154], %196 {strides = array<i32>} : memref<4x8x1xf32, #tpu.memory_space<vmem>>, vector<4x8x1xf32>,
      %cst_155 = arith.constant 0.000000e+00 : f32
      %198 = vector.broadcast %cst_155 : f32 to vector<4x8x8xf32>
      %c0_156 = arith.constant 0 : index
      %c0_157 = arith.constant 0 : index
      %c0_158 = arith.constant 0 : index
      %199 = vector.load %arg10[%c0_156, %c0_157, %c0_158] : memref<4x8x8xf32, #tpu.memory_space<vmem>>, vector<4x8x8xf32>
      tpu.vector_store %arg10[%c0_156, %c0_157, %c0_158], %198 {strides = array<i32>} : memref<4x8x8xf32, #tpu.memory_space<vmem>>, vector<4x8x8xf32>,
    } else {
    }
    %c0 = arith.constant 0 : index
    %c0_1 = arith.constant 0 : index
    %c0_2 = arith.constant 0 : index
    %3 = vector.load %arg6[%c0, %c0_1, %c0_2] : memref<1x1x8xi32, #tpu.memory_space<vmem>>, vector<1x1x8xi32>
    %4 = vector.shape_cast %3 : vector<1x1x8xi32> to vector<1x8xi32>
    %c0_i32_3 = arith.constant 0 : i32
    %5 = vector.broadcast %c0_i32_3 : i32 to vector<1x8xi32>
    %6 = arith.cmpi sgt, %4, %5 : vector<1x8xi32>
    %7 = vector.shape_cast %6 : vector<1x8xi1> to vector<1x8xi1>
    %8 = vector.broadcast %7 : vector<1x8xi1> to vector<8x8xi1>
    %c8_i32 = arith.constant 8 : i32
    %9 = arith.muli %arg1, %c8_i32 : i32
    %c8_i32_4 = arith.constant 8 : i32
    %10 = arith.muli %arg2, %c8_i32_4 : i32
    %11 = tpu.iota {dimensions = array<i32: 0>} : vector<8x8xi32>
    %12 = vector.broadcast %9 : i32 to vector<8x8xi32>
    %13 = arith.addi %12, %11 : vector<8x8xi32>
    %14 = tpu.iota {dimensions = array<i32: 1>} : vector<8x8xi32>
    %15 = vector.broadcast %10 : i32 to vector<8x8xi32>
    %16 = arith.addi %15, %14 : vector<8x8xi32>
    %17 = arith.cmpi sle, %16, %13 : vector<8x8xi32>
    %18 = arith.andi %8, %17 : vector<8x8xi1>
    %c0_5 = arith.constant 0 : index
    %c0_6 = arith.constant 0 : index
    %c0_7 = arith.constant 0 : index
    %c0_8 = arith.constant 0 : index
    %19 = vector.load %arg3[%c0_5, %c0_6, %c0_7, %c0_8] : memref<1x8x4x8xbf16, #tpu.memory_space<vmem>>, vector<1x8x1x8xbf16>
    %20 = vector.shape_cast %19 : vector<1x8x1x8xbf16> to vector<8x8xbf16>
    %c0_9 = arith.constant 0 : index
    %c0_10 = arith.constant 0 : index
    %c0_11 = arith.constant 0 : index
    %c0_12 = arith.constant 0 : index
    %21 = vector.load %arg4[%c0_9, %c0_10, %c0_11, %c0_12] : memref<1x8x4x8xbf16, #tpu.memory_space<vmem>>, vector<1x8x1x8xbf16>
    %22 = vector.shape_cast %21 : vector<1x8x1x8xbf16> to vector<8x8xbf16>
    %c0_13 = arith.constant 0 : index
    %c0_14 = arith.constant 0 : index
    %c0_15 = arith.constant 0 : index
    %c0_16 = arith.constant 0 : index
    %23 = vector.load %arg5[%c0_13, %c0_14, %c0_15, %c0_16] : memref<1x8x4x8xbf16, #tpu.memory_space<vmem>>, vector<1x8x1x8xbf16>
    %24 = vector.shape_cast %23 : vector<1x8x1x8xbf16> to vector<8x8xbf16>
    %cst = arith.constant dense<0.000000e+00> : vector<8x8xf32>
    %25 = tpu.matmul %20, %22, %cst {dimension_numbers = #tpu.dot_dimension_numbers<[1], [1], [0], [0], [0, 0, 1, 0], [], []>} : vector<8x8xbf16>, vector<8x8xbf16>, vector<8x8xf32> -> vector<8x8xf32>
    %cst_17 = arith.constant 0.353553385 : f32
    %26 = vector.broadcast %cst_17 : f32 to vector<8x8xf32>
    %27 = arith.mulf %25, %26 : vector<8x8xf32>
    %cst_18 = arith.constant -1.000000e+09 : f32
    %28 = vector.broadcast %cst_18 : f32 to vector<8x8xf32>
    %29 = arith.select %18, %27, %28 : vector<8x8xi1>, vector<8x8xf32>
    %c0_19 = arith.constant 0 : index
    %c0_20 = arith.constant 0 : index
    %c0_21 = arith.constant 0 : index
    %30 = vector.load %arg8[%c0_19, %c0_20, %c0_21] : memref<4x8x1xf32, #tpu.memory_space<vmem>>, vector<1x8x1xf32>
    %31 = vector.shape_cast %30 : vector<1x8x1xf32> to vector<8x1xf32>
    %cst_22 = arith.constant dense<0xFF800000> : vector<8xf32>
    %32 = vector.multi_reduction <maximumf>, %29, %cst_22 [1] : vector<8x8xf32> to vector<8xf32>
    %33 = vector.shape_cast %32 : vector<8xf32> to vector<8x1xf32>
    %34 = arith.maximumf %31, %33 : vector<8x1xf32>
    %35 = arith.subf %31, %34 : vector<8x1xf32>
    %36 = math.exp %35 : vector<8x1xf32>
    %37 = vector.broadcast %34 : vector<8x1xf32> to vector<8x8xf32>
    %38 = arith.subf %29, %37 : vector<8x8xf32>
    %39 = math.exp %38 : vector<8x8xf32>
    %c0_23 = arith.constant 0 : index
    %c0_24 = arith.constant 0 : index
    %c0_25 = arith.constant 0 : index
    %40 = vector.load %arg9[%c0_23, %c0_24, %c0_25] : memref<4x8x1xf32, #tpu.memory_space<vmem>>, vector<1x8x1xf32>
    %41 = vector.shape_cast %40 : vector<1x8x1xf32> to vector<8x1xf32>
    %42 = arith.mulf %36, %41 : vector<8x1xf32>
    %cst_26 = arith.constant dense<0.000000e+00> : vector<8xf32>
    %43 = vector.multi_reduction <add>, %39, %cst_26 [1] : vector<8x8xf32> to vector<8xf32>
    %44 = vector.shape_cast %43 : vector<8xf32> to vector<8x1xf32>
    %45 = arith.addf %42, %44 : vector<8x1xf32>
    %c0_27 = arith.constant 0 : index
    %c0_28 = arith.constant 0 : index
    %c0_29 = arith.constant 0 : index
    %46 = vector.load %arg9[%c0_27, %c0_28, %c0_29] : memref<4x8x1xf32, #tpu.memory_space<vmem>>, vector<1x8x1xf32>
    %47 = vector.shape_cast %46 : vector<1x8x1xf32> to vector<8x1xf32>
    %48 = vector.shape_cast %45 : vector<8x1xf32> to vector<1x8x1xf32>
    tpu.vector_store %arg9[%c0_27, %c0_28, %c0_29], %48 {strides = array<i32>} : memref<4x8x1xf32, #tpu.memory_space<vmem>>, vector<1x8x1xf32>,
    %c0_30 = arith.constant 0 : index
    %c0_31 = arith.constant 0 : index
    %c0_32 = arith.constant 0 : index
    %49 = vector.load %arg10[%c0_30, %c0_31, %c0_32] : memref<4x8x8xf32, #tpu.memory_space<vmem>>, vector<1x8x8xf32>
    %50 = vector.shape_cast %49 : vector<1x8x8xf32> to vector<8x8xf32>
    %51 = vector.broadcast %36 : vector<8x1xf32> to vector<8x8xf32>
    %52 = arith.mulf %51, %50 : vector<8x8xf32>
    %53 = arith.truncf %39 : vector<8x8xf32> to vector<8x8xbf16>
    %cst_33 = arith.constant dense<0.000000e+00> : vector<8x8xf32>
    %54 = tpu.matmul %53, %24, %cst_33 {dimension_numbers = #tpu.dot_dimension_numbers<[1], [0], [0], [1], [0, 0, 1, 1], [], []>} : vector<8x8xbf16>, vector<8x8xbf16>, vector<8x8xf32> -> vector<8x8xf32>
    %55 = arith.addf %52, %54 : vector<8x8xf32>
    %c0_34 = arith.constant 0 : index
    %c0_35 = arith.constant 0 : index
    %c0_36 = arith.constant 0 : index
    %56 = vector.load %arg10[%c0_34, %c0_35, %c0_36] : memref<4x8x8xf32, #tpu.memory_space<vmem>>, vector<1x8x8xf32>
    %57 = vector.shape_cast %56 : vector<1x8x8xf32> to vector<8x8xf32>
    %58 = vector.shape_cast %55 : vector<8x8xf32> to vector<1x8x8xf32>
    tpu.vector_store %arg10[%c0_34, %c0_35, %c0_36], %58 {strides = array<i32>} : memref<4x8x8xf32, #tpu.memory_space<vmem>>, vector<1x8x8xf32>,
    %c0_37 = arith.constant 0 : index
    %c0_38 = arith.constant 0 : index
    %c0_39 = arith.constant 0 : index
    %59 = vector.load %arg8[%c0_37, %c0_38, %c0_39] : memref<4x8x1xf32, #tpu.memory_space<vmem>>, vector<1x8x1xf32>
    %60 = vector.shape_cast %59 : vector<1x8x1xf32> to vector<8x1xf32>
    %61 = vector.shape_cast %34 : vector<8x1xf32> to vector<1x8x1xf32>
    tpu.vector_store %arg8[%c0_37, %c0_38, %c0_39], %61 {strides = array<i32>} : memref<4x8x1xf32, #tpu.memory_space<vmem>>, vector<1x8x1xf32>,
    %c0_40 = arith.constant 0 : index
    %c0_41 = arith.constant 0 : index
    %c1 = arith.constant 1 : index
    %c0_42 = arith.constant 0 : index
    %62 = vector.load %arg3[%c0_40, %c0_41, %c1, %c0_42] : memref<1x8x4x8xbf16, #tpu.memory_space<vmem>>, vector<1x8x1x8xbf16>
    %63 = vector.shape_cast %62 : vector<1x8x1x8xbf16> to vector<8x8xbf16>
    %c0_43 = arith.constant 0 : index
    %c0_44 = arith.constant 0 : index
    %c1_45 = arith.constant 1 : index
    %c0_46 = arith.constant 0 : index
    %64 = vector.load %arg4[%c0_43, %c0_44, %c1_45, %c0_46] : memref<1x8x4x8xbf16, #tpu.memory_space<vmem>>, vector<1x8x1x8xbf16>
    %65 = vector.shape_cast %64 : vector<1x8x1x8xbf16> to vector<8x8xbf16>
    %c0_47 = arith.constant 0 : index
    %c0_48 = arith.constant 0 : index
    %c1_49 = arith.constant 1 : index
    %c0_50 = arith.constant 0 : index
    %66 = vector.load %arg5[%c0_47, %c0_48, %c1_49, %c0_50] : memref<1x8x4x8xbf16, #tpu.memory_space<vmem>>, vector<1x8x1x8xbf16>
    %67 = vector.shape_cast %66 : vector<1x8x1x8xbf16> to vector<8x8xbf16>
    %cst_51 = arith.constant dense<0.000000e+00> : vector<8x8xf32>
    %68 = tpu.matmul %63, %65, %cst_51 {dimension_numbers = #tpu.dot_dimension_numbers<[1], [1], [0], [0], [0, 0, 1, 0], [], []>} : vector<8x8xbf16>, vector<8x8xbf16>, vector<8x8xf32> -> vector<8x8xf32>
    %cst_52 = arith.constant 0.353553385 : f32
    %69 = vector.broadcast %cst_52 : f32 to vector<8x8xf32>
    %70 = arith.mulf %68, %69 : vector<8x8xf32>
    %cst_53 = arith.constant -1.000000e+09 : f32
    %71 = vector.broadcast %cst_53 : f32 to vector<8x8xf32>
    %72 = arith.select %18, %70, %71 : vector<8x8xi1>, vector<8x8xf32>
    %c1_54 = arith.constant 1 : index
    %c0_55 = arith.constant 0 : index
    %c0_56 = arith.constant 0 : index
    %73 = vector.load %arg8[%c1_54, %c0_55, %c0_56] : memref<4x8x1xf32, #tpu.memory_space<vmem>>, vector<1x8x1xf32>
    %74 = vector.shape_cast %73 : vector<1x8x1xf32> to vector<8x1xf32>
    %cst_57 = arith.constant dense<0xFF800000> : vector<8xf32>
    %75 = vector.multi_reduction <maximumf>, %72, %cst_57 [1] : vector<8x8xf32> to vector<8xf32>
    %76 = vector.shape_cast %75 : vector<8xf32> to vector<8x1xf32>
    %77 = arith.maximumf %74, %76 : vector<8x1xf32>
    %78 = arith.subf %74, %77 : vector<8x1xf32>
    %79 = math.exp %78 : vector<8x1xf32>
    %80 = vector.broadcast %77 : vector<8x1xf32> to vector<8x8xf32>
    %81 = arith.subf %72, %80 : vector<8x8xf32>
    %82 = math.exp %81 : vector<8x8xf32>
    %c1_58 = arith.constant 1 : index
    %c0_59 = arith.constant 0 : index
    %c0_60 = arith.constant 0 : index
    %83 = vector.load %arg9[%c1_58, %c0_59, %c0_60] : memref<4x8x1xf32, #tpu.memory_space<vmem>>, vector<1x8x1xf32>
    %84 = vector.shape_cast %83 : vector<1x8x1xf32> to vector<8x1xf32>
    %85 = arith.mulf %79, %84 : vector<8x1xf32>
    %cst_61 = arith.constant dense<0.000000e+00> : vector<8xf32>
    %86 = vector.multi_reduction <add>, %82, %cst_61 [1] : vector<8x8xf32> to vector<8xf32>
    %87 = vector.shape_cast %86 : vector<8xf32> to vector<8x1xf32>
    %88 = arith.addf %85, %87 : vector<8x1xf32>
    %c1_62 = arith.constant 1 : index
    %c0_63 = arith.constant 0 : index
    %c0_64 = arith.constant 0 : index
    %89 = vector.load %arg9[%c1_62, %c0_63, %c0_64] : memref<4x8x1xf32, #tpu.memory_space<vmem>>, vector<1x8x1xf32>
    %90 = vector.shape_cast %89 : vector<1x8x1xf32> to vector<8x1xf32>
    %91 = vector.shape_cast %88 : vector<8x1xf32> to vector<1x8x1xf32>
    tpu.vector_store %arg9[%c1_62, %c0_63, %c0_64], %91 {strides = array<i32>} : memref<4x8x1xf32, #tpu.memory_space<vmem>>, vector<1x8x1xf32>,
    %c1_65 = arith.constant 1 : index
    %c0_66 = arith.constant 0 : index
    %c0_67 = arith.constant 0 : index
    %92 = vector.load %arg10[%c1_65, %c0_66, %c0_67] : memref<4x8x8xf32, #tpu.memory_space<vmem>>, vector<1x8x8xf32>
    %93 = vector.shape_cast %92 : vector<1x8x8xf32> to vector<8x8xf32>
    %94 = vector.broadcast %79 : vector<8x1xf32> to vector<8x8xf32>
    %95 = arith.mulf %94, %93 : vector<8x8xf32>
    %96 = arith.truncf %82 : vector<8x8xf32> to vector<8x8xbf16>
    %cst_68 = arith.constant dense<0.000000e+00> : vector<8x8xf32>
    %97 = tpu.matmul %96, %67, %cst_68 {dimension_numbers = #tpu.dot_dimension_numbers<[1], [0], [0], [1], [0, 0, 1, 1], [], []>} : vector<8x8xbf16>, vector<8x8xbf16>, vector<8x8xf32> -> vector<8x8xf32>
    %98 = arith.addf %95, %97 : vector<8x8xf32>
    %c1_69 = arith.constant 1 : index
    %c0_70 = arith.constant 0 : index
    %c0_71 = arith.constant 0 : index
    %99 = vector.load %arg10[%c1_69, %c0_70, %c0_71] : memref<4x8x8xf32, #tpu.memory_space<vmem>>, vector<1x8x8xf32>
    %100 = vector.shape_cast %99 : vector<1x8x8xf32> to vector<8x8xf32>
    %101 = vector.shape_cast %98 : vector<8x8xf32> to vector<1x8x8xf32>
    tpu.vector_store %arg10[%c1_69, %c0_70, %c0_71], %101 {strides = array<i32>} : memref<4x8x8xf32, #tpu.memory_space<vmem>>, vector<1x8x8xf32>,
    %c1_72 = arith.constant 1 : index
    %c0_73 = arith.constant 0 : index
    %c0_74 = arith.constant 0 : index
    %102 = vector.load %arg8[%c1_72, %c0_73, %c0_74] : memref<4x8x1xf32, #tpu.memory_space<vmem>>, vector<1x8x1xf32>
    %103 = vector.shape_cast %102 : vector<1x8x1xf32> to vector<8x1xf32>
    %104 = vector.shape_cast %77 : vector<8x1xf32> to vector<1x8x1xf32>
    tpu.vector_store %arg8[%c1_72, %c0_73, %c0_74], %104 {strides = array<i32>} : memref<4x8x1xf32, #tpu.memory_space<vmem>>, vector<1x8x1xf32>,
    %c0_75 = arith.constant 0 : index
    %c0_76 = arith.constant 0 : index
    %c2 = arith.constant 2 : index
    %c0_77 = arith.constant 0 : index
    %105 = vector.load %arg3[%c0_75, %c0_76, %c2, %c0_77] : memref<1x8x4x8xbf16, #tpu.memory_space<vmem>>, vector<1x8x1x8xbf16>
    %106 = vector.shape_cast %105 : vector<1x8x1x8xbf16> to vector<8x8xbf16>
    %c0_78 = arith.constant 0 : index
    %c0_79 = arith.constant 0 : index
    %c2_80 = arith.constant 2 : index
    %c0_81 = arith.constant 0 : index
    %107 = vector.load %arg4[%c0_78, %c0_79, %c2_80, %c0_81] : memref<1x8x4x8xbf16, #tpu.memory_space<vmem>>, vector<1x8x1x8xbf16>
    %108 = vector.shape_cast %107 : vector<1x8x1x8xbf16> to vector<8x8xbf16>
    %c0_82 = arith.constant 0 : index
    %c0_83 = arith.constant 0 : index
    %c2_84 = arith.constant 2 : index
    %c0_85 = arith.constant 0 : index
    %109 = vector.load %arg5[%c0_82, %c0_83, %c2_84, %c0_85] : memref<1x8x4x8xbf16, #tpu.memory_space<vmem>>, vector<1x8x1x8xbf16>
    %110 = vector.shape_cast %109 : vector<1x8x1x8xbf16> to vector<8x8xbf16>
    %cst_86 = arith.constant dense<0.000000e+00> : vector<8x8xf32>
    %111 = tpu.matmul %106, %108, %cst_86 {dimension_numbers = #tpu.dot_dimension_numbers<[1], [1], [0], [0], [0, 0, 1, 0], [], []>} : vector<8x8xbf16>, vector<8x8xbf16>, vector<8x8xf32> -> vector<8x8xf32>
    %cst_87 = arith.constant 0.353553385 : f32
    %112 = vector.broadcast %cst_87 : f32 to vector<8x8xf32>
    %113 = arith.mulf %111, %112 : vector<8x8xf32>
    %cst_88 = arith.constant -1.000000e+09 : f32
    %114 = vector.broadcast %cst_88 : f32 to vector<8x8xf32>
    %115 = arith.select %18, %113, %114 : vector<8x8xi1>, vector<8x8xf32>
    %c2_89 = arith.constant 2 : index
    %c0_90 = arith.constant 0 : index
    %c0_91 = arith.constant 0 : index
    %116 = vector.load %arg8[%c2_89, %c0_90, %c0_91] : memref<4x8x1xf32, #tpu.memory_space<vmem>>, vector<1x8x1xf32>
    %117 = vector.shape_cast %116 : vector<1x8x1xf32> to vector<8x1xf32>
    %cst_92 = arith.constant dense<0xFF800000> : vector<8xf32>
    %118 = vector.multi_reduction <maximumf>, %115, %cst_92 [1] : vector<8x8xf32> to vector<8xf32>
    %119 = vector.shape_cast %118 : vector<8xf32> to vector<8x1xf32>
    %120 = arith.maximumf %117, %119 : vector<8x1xf32>
    %121 = arith.subf %117, %120 : vector<8x1xf32>
    %122 = math.exp %121 : vector<8x1xf32>
    %123 = vector.broadcast %120 : vector<8x1xf32> to vector<8x8xf32>
    %124 = arith.subf %115, %123 : vector<8x8xf32>
    %125 = math.exp %124 : vector<8x8xf32>
    %c2_93 = arith.constant 2 : index
    %c0_94 = arith.constant 0 : index
    %c0_95 = arith.constant 0 : index
    %126 = vector.load %arg9[%c2_93, %c0_94, %c0_95] : memref<4x8x1xf32, #tpu.memory_space<vmem>>, vector<1x8x1xf32>
    %127 = vector.shape_cast %126 : vector<1x8x1xf32> to vector<8x1xf32>
    %128 = arith.mulf %122, %127 : vector<8x1xf32>
    %cst_96 = arith.constant dense<0.000000e+00> : vector<8xf32>
    %129 = vector.multi_reduction <add>, %125, %cst_96 [1] : vector<8x8xf32> to vector<8xf32>
    %130 = vector.shape_cast %129 : vector<8xf32> to vector<8x1xf32>
    %131 = arith.addf %128, %130 : vector<8x1xf32>
    %c2_97 = arith.constant 2 : index
    %c0_98 = arith.constant 0 : index
    %c0_99 = arith.constant 0 : index
    %132 = vector.load %arg9[%c2_97, %c0_98, %c0_99] : memref<4x8x1xf32, #tpu.memory_space<vmem>>, vector<1x8x1xf32>
    %133 = vector.shape_cast %132 : vector<1x8x1xf32> to vector<8x1xf32>
    %134 = vector.shape_cast %131 : vector<8x1xf32> to vector<1x8x1xf32>
    tpu.vector_store %arg9[%c2_97, %c0_98, %c0_99], %134 {strides = array<i32>} : memref<4x8x1xf32, #tpu.memory_space<vmem>>, vector<1x8x1xf32>,
    %c2_100 = arith.constant 2 : index
    %c0_101 = arith.constant 0 : index
    %c0_102 = arith.constant 0 : index
    %135 = vector.load %arg10[%c2_100, %c0_101, %c0_102] : memref<4x8x8xf32, #tpu.memory_space<vmem>>, vector<1x8x8xf32>
    %136 = vector.shape_cast %135 : vector<1x8x8xf32> to vector<8x8xf32>
    %137 = vector.broadcast %122 : vector<8x1xf32> to vector<8x8xf32>
    %138 = arith.mulf %137, %136 : vector<8x8xf32>
    %139 = arith.truncf %125 : vector<8x8xf32> to vector<8x8xbf16>
    %cst_103 = arith.constant dense<0.000000e+00> : vector<8x8xf32>
    %140 = tpu.matmul %139, %110, %cst_103 {dimension_numbers = #tpu.dot_dimension_numbers<[1], [0], [0], [1], [0, 0, 1, 1], [], []>} : vector<8x8xbf16>, vector<8x8xbf16>, vector<8x8xf32> -> vector<8x8xf32>
    %141 = arith.addf %138, %140 : vector<8x8xf32>
    %c2_104 = arith.constant 2 : index
    %c0_105 = arith.constant 0 : index
    %c0_106 = arith.constant 0 : index
    %142 = vector.load %arg10[%c2_104, %c0_105, %c0_106] : memref<4x8x8xf32, #tpu.memory_space<vmem>>, vector<1x8x8xf32>
    %143 = vector.shape_cast %142 : vector<1x8x8xf32> to vector<8x8xf32>
    %144 = vector.shape_cast %141 : vector<8x8xf32> to vector<1x8x8xf32>
    tpu.vector_store %arg10[%c2_104, %c0_105, %c0_106], %144 {strides = array<i32>} : memref<4x8x8xf32, #tpu.memory_space<vmem>>, vector<1x8x8xf32>,
    %c2_107 = arith.constant 2 : index
    %c0_108 = arith.constant 0 : index
    %c0_109 = arith.constant 0 : index
    %145 = vector.load %arg8[%c2_107, %c0_108, %c0_109] : memref<4x8x1xf32, #tpu.memory_space<vmem>>, vector<1x8x1xf32>
    %146 = vector.shape_cast %145 : vector<1x8x1xf32> to vector<8x1xf32>
    %147 = vector.shape_cast %120 : vector<8x1xf32> to vector<1x8x1xf32>
    tpu.vector_store %arg8[%c2_107, %c0_108, %c0_109], %147 {strides = array<i32>} : memref<4x8x1xf32, #tpu.memory_space<vmem>>, vector<1x8x1xf32>,
    %c0_110 = arith.constant 0 : index
    %c0_111 = arith.constant 0 : index
    %c3 = arith.constant 3 : index
    %c0_112 = arith.constant 0 : index
    %148 = vector.load %arg3[%c0_110, %c0_111, %c3, %c0_112] : memref<1x8x4x8xbf16, #tpu.memory_space<vmem>>, vector<1x8x1x8xbf16>
    %149 = vector.shape_cast %148 : vector<1x8x1x8xbf16> to vector<8x8xbf16>
    %c0_113 = arith.constant 0 : index
    %c0_114 = arith.constant 0 : index
    %c3_115 = arith.constant 3 : index
    %c0_116 = arith.constant 0 : index
    %150 = vector.load %arg4[%c0_113, %c0_114, %c3_115, %c0_116] : memref<1x8x4x8xbf16, #tpu.memory_space<vmem>>, vector<1x8x1x8xbf16>
    %151 = vector.shape_cast %150 : vector<1x8x1x8xbf16> to vector<8x8xbf16>
    %c0_117 = arith.constant 0 : index
    %c0_118 = arith.constant 0 : index
    %c3_119 = arith.constant 3 : index
    %c0_120 = arith.constant 0 : index
    %152 = vector.load %arg5[%c0_117, %c0_118, %c3_119, %c0_120] : memref<1x8x4x8xbf16, #tpu.memory_space<vmem>>, vector<1x8x1x8xbf16>
    %153 = vector.shape_cast %152 : vector<1x8x1x8xbf16> to vector<8x8xbf16>
    %cst_121 = arith.constant dense<0.000000e+00> : vector<8x8xf32>
    %154 = tpu.matmul %149, %151, %cst_121 {dimension_numbers = #tpu.dot_dimension_numbers<[1], [1], [0], [0], [0, 0, 1, 0], [], []>} : vector<8x8xbf16>, vector<8x8xbf16>, vector<8x8xf32> -> vector<8x8xf32>
    %cst_122 = arith.constant 0.353553385 : f32
    %155 = vector.broadcast %cst_122 : f32 to vector<8x8xf32>
    %156 = arith.mulf %154, %155 : vector<8x8xf32>
    %cst_123 = arith.constant -1.000000e+09 : f32
    %157 = vector.broadcast %cst_123 : f32 to vector<8x8xf32>
    %158 = arith.select %18, %156, %157 : vector<8x8xi1>, vector<8x8xf32>
    %c3_124 = arith.constant 3 : index
    %c0_125 = arith.constant 0 : index
    %c0_126 = arith.constant 0 : index
    %159 = vector.load %arg8[%c3_124, %c0_125, %c0_126] : memref<4x8x1xf32, #tpu.memory_space<vmem>>, vector<1x8x1xf32>
    %160 = vector.shape_cast %159 : vector<1x8x1xf32> to vector<8x1xf32>
    %cst_127 = arith.constant dense<0xFF800000> : vector<8xf32>
    %161 = vector.multi_reduction <maximumf>, %158, %cst_127 [1] : vector<8x8xf32> to vector<8xf32>
    %162 = vector.shape_cast %161 : vector<8xf32> to vector<8x1xf32>
    %163 = arith.maximumf %160, %162 : vector<8x1xf32>
    %164 = arith.subf %160, %163 : vector<8x1xf32>
    %165 = math.exp %164 : vector<8x1xf32>
    %166 = vector.broadcast %163 : vector<8x1xf32> to vector<8x8xf32>
    %167 = arith.subf %158, %166 : vector<8x8xf32>
    %168 = math.exp %167 : vector<8x8xf32>
    %c3_128 = arith.constant 3 : index
    %c0_129 = arith.constant 0 : index
    %c0_130 = arith.constant 0 : index
    %169 = vector.load %arg9[%c3_128, %c0_129, %c0_130] : memref<4x8x1xf32, #tpu.memory_space<vmem>>, vector<1x8x1xf32>
    %170 = vector.shape_cast %169 : vector<1x8x1xf32> to vector<8x1xf32>
    %171 = arith.mulf %165, %170 : vector<8x1xf32>
    %cst_131 = arith.constant dense<0.000000e+00> : vector<8xf32>
    %172 = vector.multi_reduction <add>, %168, %cst_131 [1] : vector<8x8xf32> to vector<8xf32>
    %173 = vector.shape_cast %172 : vector<8xf32> to vector<8x1xf32>
    %174 = arith.addf %171, %173 : vector<8x1xf32>
    %c3_132 = arith.constant 3 : index
    %c0_133 = arith.constant 0 : index
    %c0_134 = arith.constant 0 : index
    %175 = vector.load %arg9[%c3_132, %c0_133, %c0_134] : memref<4x8x1xf32, #tpu.memory_space<vmem>>, vector<1x8x1xf32>
    %176 = vector.shape_cast %175 : vector<1x8x1xf32> to vector<8x1xf32>
    %177 = vector.shape_cast %174 : vector<8x1xf32> to vector<1x8x1xf32>
    tpu.vector_store %arg9[%c3_132, %c0_133, %c0_134], %177 {strides = array<i32>} : memref<4x8x1xf32, #tpu.memory_space<vmem>>, vector<1x8x1xf32>,
    %c3_135 = arith.constant 3 : index
    %c0_136 = arith.constant 0 : index
    %c0_137 = arith.constant 0 : index
    %178 = vector.load %arg10[%c3_135, %c0_136, %c0_137] : memref<4x8x8xf32, #tpu.memory_space<vmem>>, vector<1x8x8xf32>
    %179 = vector.shape_cast %178 : vector<1x8x8xf32> to vector<8x8xf32>
    %180 = vector.broadcast %165 : vector<8x1xf32> to vector<8x8xf32>
    %181 = arith.mulf %180, %179 : vector<8x8xf32>
    %182 = arith.truncf %168 : vector<8x8xf32> to vector<8x8xbf16>
    %cst_138 = arith.constant dense<0.000000e+00> : vector<8x8xf32>
    %183 = tpu.matmul %182, %153, %cst_138 {dimension_numbers = #tpu.dot_dimension_numbers<[1], [0], [0], [1], [0, 0, 1, 1], [], []>} : vector<8x8xbf16>, vector<8x8xbf16>, vector<8x8xf32> -> vector<8x8xf32>
    %184 = arith.addf %181, %183 : vector<8x8xf32>
    %c3_139 = arith.constant 3 : index
    %c0_140 = arith.constant 0 : index
    %c0_141 = arith.constant 0 : index
    %185 = vector.load %arg10[%c3_139, %c0_140, %c0_141] : memref<4x8x8xf32, #tpu.memory_space<vmem>>, vector<1x8x8xf32>
    %186 = vector.shape_cast %185 : vector<1x8x8xf32> to vector<8x8xf32>
    %187 = vector.shape_cast %184 : vector<8x8xf32> to vector<1x8x8xf32>
    tpu.vector_store %arg10[%c3_139, %c0_140, %c0_141], %187 {strides = array<i32>} : memref<4x8x8xf32, #tpu.memory_space<vmem>>, vector<1x8x8xf32>,
    %c3_142 = arith.constant 3 : index
    %c0_143 = arith.constant 0 : index
    %c0_144 = arith.constant 0 : index
    %188 = vector.load %arg8[%c3_142, %c0_143, %c0_144] : memref<4x8x1xf32, #tpu.memory_space<vmem>>, vector<1x8x1xf32>
    %189 = vector.shape_cast %188 : vector<1x8x1xf32> to vector<8x1xf32>
    %190 = vector.shape_cast %163 : vector<8x1xf32> to vector<1x8x1xf32>
    tpu.vector_store %arg8[%c3_142, %c0_143, %c0_144], %190 {strides = array<i32>} : memref<4x8x1xf32, #tpu.memory_space<vmem>>, vector<1x8x1xf32>,
    %c0_i32_145 = arith.constant 0 : i32
    %191 = arith.cmpi eq, %arg2, %c0_i32_145 : i32
    %192 = arith.extui %191 : i1 to i32
    %c0_i32_146 = arith.constant 0 : i32
    %193 = arith.cmpi ne, %192, %c0_i32_146 : i32
    scf.if %193 {
      %c0_147 = arith.constant 0 : index
      %c0_148 = arith.constant 0 : index
      %c0_149 = arith.constant 0 : index
      %194 = vector.load %arg9[%c0_147, %c0_148, %c0_149] : memref<4x8x1xf32, #tpu.memory_space<vmem>>, vector<1x8x1xf32>
      %195 = vector.shape_cast %194 : vector<1x8x1xf32> to vector<8x1xf32>
      %196 = tpu.reciprocal %195 {approx = true} : vector<8x1xf32> -> vector<8x1xf32>
      %c0_150 = arith.constant 0 : index
      %c0_151 = arith.constant 0 : index
      %c0_152 = arith.constant 0 : index
      %197 = vector.load %arg10[%c0_150, %c0_151, %c0_152] : memref<4x8x8xf32, #tpu.memory_space<vmem>>, vector<1x8x8xf32>
      %198 = vector.shape_cast %197 : vector<1x8x8xf32> to vector<8x8xf32>
      %199 = vector.broadcast %196 : vector<8x1xf32> to vector<8x8xf32>
      %200 = arith.mulf %198, %199 : vector<8x8xf32>
      %201 = arith.truncf %200 : vector<8x8xf32> to vector<8x8xbf16>
      %c0_153 = arith.constant 0 : index
      %c0_154 = arith.constant 0 : index
      %c0_155 = arith.constant 0 : index
      %c0_156 = arith.constant 0 : index
      %202 = vector.load %arg7[%c0_153, %c0_154, %c0_155, %c0_156] : memref<1x8x4x8xbf16, #tpu.memory_space<vmem>>, vector<1x8x1x8xbf16>
      %203 = vector.shape_cast %202 : vector<1x8x1x8xbf16> to vector<8x8xbf16>
      %204 = vector.shape_cast %201 : vector<8x8xbf16> to vector<1x8x1x8xbf16>
      tpu.vector_store %arg7[%c0_153, %c0_154, %c0_155, %c0_156], %204 {strides = array<i32>} : memref<1x8x4x8xbf16, #tpu.memory_space<vmem>>, vector<1x8x1x8xbf16>,
      %c1_157 = arith.constant 1 : index
      %c0_158 = arith.constant 0 : index
      %c0_159 = arith.constant 0 : index
      %205 = vector.load %arg9[%c1_157, %c0_158, %c0_159] : memref<4x8x1xf32, #tpu.memory_space<vmem>>, vector<1x8x1xf32>
      %206 = vector.shape_cast %205 : vector<1x8x1xf32> to vector<8x1xf32>
      %207 = tpu.reciprocal %206 {approx = true} : vector<8x1xf32> -> vector<8x1xf32>
      %c1_160 = arith.constant 1 : index
      %c0_161 = arith.constant 0 : index
      %c0_162 = arith.constant 0 : index
      %208 = vector.load %arg10[%c1_160, %c0_161, %c0_162] : memref<4x8x8xf32, #tpu.memory_space<vmem>>, vector<1x8x8xf32>
      %209 = vector.shape_cast %208 : vector<1x8x8xf32> to vector<8x8xf32>
      %210 = vector.broadcast %207 : vector<8x1xf32> to vector<8x8xf32>
      %211 = arith.mulf %209, %210 : vector<8x8xf32>
      %212 = arith.truncf %211 : vector<8x8xf32> to vector<8x8xbf16>
      %c0_163 = arith.constant 0 : index
      %c0_164 = arith.constant 0 : index
      %c1_165 = arith.constant 1 : index
      %c0_166 = arith.constant 0 : index
      %213 = vector.load %arg7[%c0_163, %c0_164, %c1_165, %c0_166] : memref<1x8x4x8xbf16, #tpu.memory_space<vmem>>, vector<1x8x1x8xbf16>
      %214 = vector.shape_cast %213 : vector<1x8x1x8xbf16> to vector<8x8xbf16>
      %215 = vector.shape_cast %212 : vector<8x8xbf16> to vector<1x8x1x8xbf16>
      tpu.vector_store %arg7[%c0_163, %c0_164, %c1_165, %c0_166], %215 {strides = array<i32>} : memref<1x8x4x8xbf16, #tpu.memory_space<vmem>>, vector<1x8x1x8xbf16>,
      %c2_167 = arith.constant 2 : index
      %c0_168 = arith.constant 0 : index
      %c0_169 = arith.constant 0 : index
      %216 = vector.load %arg9[%c2_167, %c0_168, %c0_169] : memref<4x8x1xf32, #tpu.memory_space<vmem>>, vector<1x8x1xf32>
      %217 = vector.shape_cast %216 : vector<1x8x1xf32> to vector<8x1xf32>
      %218 = tpu.reciprocal %217 {approx = true} : vector<8x1xf32> -> vector<8x1xf32>
      %c2_170 = arith.constant 2 : index
      %c0_171 = arith.constant 0 : index
      %c0_172 = arith.constant 0 : index
      %219 = vector.load %arg10[%c2_170, %c0_171, %c0_172] : memref<4x8x8xf32, #tpu.memory_space<vmem>>, vector<1x8x8xf32>
      %220 = vector.shape_cast %219 : vector<1x8x8xf32> to vector<8x8xf32>
      %221 = vector.broadcast %218 : vector<8x1xf32> to vector<8x8xf32>
      %222 = arith.mulf %220, %221 : vector<8x8xf32>
      %223 = arith.truncf %222 : vector<8x8xf32> to vector<8x8xbf16>
      %c0_173 = arith.constant 0 : index
      %c0_174 = arith.constant 0 : index
      %c2_175 = arith.constant 2 : index
      %c0_176 = arith.constant 0 : index
      %224 = vector.load %arg7[%c0_173, %c0_174, %c2_175, %c0_176] : memref<1x8x4x8xbf16, #tpu.memory_space<vmem>>, vector<1x8x1x8xbf16>
      %225 = vector.shape_cast %224 : vector<1x8x1x8xbf16> to vector<8x8xbf16>
      %226 = vector.shape_cast %223 : vector<8x8xbf16> to vector<1x8x1x8xbf16>
      tpu.vector_store %arg7[%c0_173, %c0_174, %c2_175, %c0_176], %226 {strides = array<i32>} : memref<1x8x4x8xbf16, #tpu.memory_space<vmem>>, vector<1x8x1x8xbf16>,
      %c3_177 = arith.constant 3 : index
      %c0_178 = arith.constant 0 : index
      %c0_179 = arith.constant 0 : index
      %227 = vector.load %arg9[%c3_177, %c0_178, %c0_179] : memref<4x8x1xf32, #tpu.memory_space<vmem>>, vector<1x8x1xf32>
      %228 = vector.shape_cast %227 : vector<1x8x1xf32> to vector<8x1xf32>
      %229 = tpu.reciprocal %228 {approx = true} : vector<8x1xf32> -> vector<8x1xf32>
      %c3_180 = arith.constant 3 : index
      %c0_181 = arith.constant 0 : index
      %c0_182 = arith.constant 0 : index
      %230 = vector.load %arg10[%c3_180, %c0_181, %c0_182] : memref<4x8x8xf32, #tpu.memory_space<vmem>>, vector<1x8x8xf32>
      %231 = vector.shape_cast %230 : vector<1x8x8xf32> to vector<8x8xf32>
      %232 = vector.broadcast %229 : vector<8x1xf32> to vector<8x8xf32>
      %233 = arith.mulf %231, %232 : vector<8x8xf32>
      %234 = arith.truncf %233 : vector<8x8xf32> to vector<8x8xbf16>
      %c0_183 = arith.constant 0 : index
      %c0_184 = arith.constant 0 : index
      %c3_185 = arith.constant 3 : index
      %c0_186 = arith.constant 0 : index
      %235 = vector.load %arg7[%c0_183, %c0_184, %c3_185, %c0_186] : memref<1x8x4x8xbf16, #tpu.memory_space<vmem>>, vector<1x8x1x8xbf16>
      %236 = vector.shape_cast %235 : vector<1x8x1x8xbf16> to vector<8x8xbf16>
      %237 = vector.shape_cast %234 : vector<8x8xbf16> to vector<1x8x1x8xbf16>
      tpu.vector_store %arg7[%c0_183, %c0_184, %c3_185, %c0_186], %237 {strides = array<i32>} : memref<1x8x4x8xbf16, #tpu.memory_space<vmem>>, vector<1x8x1x8xbf16>,
    } else {
    }
    return
  }
  func.func @transform_0(%arg0: i32, %arg1: i32, %arg2: i32) -> (i32, i32, i32, i32) {
    %c0_i32 = arith.constant 0 : i32
    %c0_i32_0 = arith.constant 0 : i32
    %c0_i32_1 = arith.constant 0 : i32
    return %arg0, %arg1, %c0_i32, %c0_i32_0 : i32, i32, i32, i32
  }
  func.func @transform_1(%arg0: i32, %arg1: i32, %arg2: i32) -> (i32, i32, i32, i32) {
    %c0_i32 = arith.constant 0 : i32
    %c0_i32_0 = arith.constant 0 : i32
    %c0_i32_1 = arith.constant 0 : i32
    return %arg0, %arg2, %c0_i32, %c0_i32_0 : i32, i32, i32, i32
  }
  func.func @transform_2(%arg0: i32, %arg1: i32, %arg2: i32) -> (i32, i32, i32, i32) {
    %c0_i32 = arith.constant 0 : i32
    %c0_i32_0 = arith.constant 0 : i32
    %c0_i32_1 = arith.constant 0 : i32
    return %arg0, %arg2, %c0_i32, %c0_i32_0 : i32, i32, i32, i32
  }
  func.func @transform_3(%arg0: i32, %arg1: i32, %arg2: i32) -> (i32, i32, i32) {
    %c0_i32 = arith.constant 0 : i32
    %c0_i32_0 = arith.constant 0 : i32
    return %arg0, %c0_i32, %arg2 : i32, i32, i32
  }
  func.func @transform_4(%arg0: i32, %arg1: i32, %arg2: i32) -> (i32, i32, i32, i32) {
    %c0_i32 = arith.constant 0 : i32
    %c0_i32_0 = arith.constant 0 : i32
    %c0_i32_1 = arith.constant 0 : i32
    return %arg0, %arg1, %c0_i32, %c0_i32_0 : i32, i32, i32, i32
  }
}

module attributes {stable_mosaic.version = 11 : i64} {
  func.func @_matmul_kernel(%arg0: i32, %arg1: i32, %arg2: i32, %arg3: memref<16x32xbf16, #tpu.memory_space<vmem>>, %arg4: memref<32x32xbf16, #tpu.memory_space<vmem>>, %arg5: memref<1x32xf32, #tpu.memory_space<vmem>>, %arg6: memref<16x32xf32, #tpu.memory_space<vmem>>, %arg7: memref<16x32xf32, #tpu.memory_space<vmem>>, %arg8: memref<16x32xf32, #tpu.memory_space<vmem>>) attributes {dimension_semantics = [#tpu.dimension_semantics<parallel>, #tpu.dimension_semantics<parallel>, #tpu.dimension_semantics<arbitrary>], iteration_bounds = array<i64: 1, 1, 1>, scalar_prefetch = 0 : i64, scratch_operands = 1 : i64, tpu.core_type = #tpu.core_type<tc>, window_params = [{transform_indices = @transform_0, window_bounds = array<i64: 16, 32>}, {transform_indices = @transform_1, window_bounds = array<i64: 32, 32>}, {transform_indices = @transform_2, window_bounds = array<i64: 1, 32>}, {transform_indices = @transform_3, window_bounds = array<i64: 16, 32>}, {transform_indices = @transform_4, window_bounds = array<i64: 16, 32>}]} {
    %c0_i32 = arith.constant 0 : i32
    %0 = arith.cmpi eq, %arg2, %c0_i32 : i32
    %1 = arith.extui %0 : i1 to i32
    %c0_i32_0 = arith.constant 0 : i32
    %2 = arith.cmpi ne, %1, %c0_i32_0 : i32
    scf.if %2 {
      %cst_10 = arith.constant 0.000000e+00 : f32
      %12 = vector.broadcast %cst_10 : f32 to vector<16x32xf32>
      %c0_11 = arith.constant 0 : index
      %c0_12 = arith.constant 0 : index
      %13 = vector.load %arg8[%c0_11, %c0_12] : memref<16x32xf32, #tpu.memory_space<vmem>>, vector<16x32xf32>
      tpu.vector_store %arg8[%c0_11, %c0_12], %12 {strides = array<i32>} : memref<16x32xf32, #tpu.memory_space<vmem>>, vector<16x32xf32>,
    } else {
    }
    %c0 = arith.constant 0 : index
    %c0_1 = arith.constant 0 : index
    %3 = vector.load %arg8[%c0, %c0_1] : memref<16x32xf32, #tpu.memory_space<vmem>>, vector<16x32xf32>
    %c0_2 = arith.constant 0 : index
    %c0_3 = arith.constant 0 : index
    %4 = vector.load %arg3[%c0_2, %c0_3] : memref<16x32xbf16, #tpu.memory_space<vmem>>, vector<16x32xbf16>
    %c0_4 = arith.constant 0 : index
    %c0_5 = arith.constant 0 : index
    %5 = vector.load %arg4[%c0_4, %c0_5] : memref<32x32xbf16, #tpu.memory_space<vmem>>, vector<32x32xbf16>
    %cst = arith.constant dense<0.000000e+00> : vector<16x32xf32>
    %6 = tpu.matmul %4, %5, %cst {dimension_numbers = #tpu.dot_dimension_numbers<[1], [0], [0], [1], [0, 0, 1, 1], [], []>} : vector<16x32xbf16>, vector<32x32xbf16>, vector<16x32xf32> -> vector<16x32xf32>
    %7 = arith.addf %3, %6 : vector<16x32xf32>
    %c0_6 = arith.constant 0 : index
    %c0_7 = arith.constant 0 : index
    %8 = vector.load %arg8[%c0_6, %c0_7] : memref<16x32xf32, #tpu.memory_space<vmem>>, vector<16x32xf32>
    tpu.vector_store %arg8[%c0_6, %c0_7], %7 {strides = array<i32>} : memref<16x32xf32, #tpu.memory_space<vmem>>, vector<16x32xf32>,
    %c0_i32_8 = arith.constant 0 : i32
    %9 = arith.cmpi eq, %arg2, %c0_i32_8 : i32
    %10 = arith.extui %9 : i1 to i32
    %c0_i32_9 = arith.constant 0 : i32
    %11 = arith.cmpi ne, %10, %c0_i32_9 : i32
    scf.if %11 {
      %c0_10 = arith.constant 0 : index
      %c0_11 = arith.constant 0 : index
      %12 = vector.load %arg8[%c0_10, %c0_11] : memref<16x32xf32, #tpu.memory_space<vmem>>, vector<16x32xf32>
      %c0_12 = arith.constant 0 : index
      %c0_13 = arith.constant 0 : index
      %13 = vector.load %arg5[%c0_12, %c0_13] : memref<1x32xf32, #tpu.memory_space<vmem>>, vector<1x32xf32>
      %14 = vector.broadcast %13 : vector<1x32xf32> to vector<16x32xf32>
      %15 = arith.addf %12, %14 : vector<16x32xf32>
      %c0_14 = arith.constant 0 : index
      %c0_15 = arith.constant 0 : index
      %16 = vector.load %arg6[%c0_14, %c0_15] : memref<16x32xf32, #tpu.memory_space<vmem>>, vector<16x32xf32>
      %17 = arith.addf %15, %16 : vector<16x32xf32>
      %c0_16 = arith.constant 0 : index
      %c0_17 = arith.constant 0 : index
      %18 = vector.load %arg7[%c0_16, %c0_17] : memref<16x32xf32, #tpu.memory_space<vmem>>, vector<16x32xf32>
      tpu.vector_store %arg7[%c0_16, %c0_17], %17 {strides = array<i32>} : memref<16x32xf32, #tpu.memory_space<vmem>>, vector<16x32xf32>,
    } else {
    }
    return
  }
  func.func @transform_0(%arg0: i32, %arg1: i32, %arg2: i32) -> (i32, i32) {
    %c0_i32 = arith.constant 0 : i32
    return %arg0, %arg2 : i32, i32
  }
  func.func @transform_1(%arg0: i32, %arg1: i32, %arg2: i32) -> (i32, i32) {
    %c0_i32 = arith.constant 0 : i32
    return %arg2, %arg1 : i32, i32
  }
  func.func @transform_2(%arg0: i32, %arg1: i32, %arg2: i32) -> (i32, i32) {
    %c0_i32 = arith.constant 0 : i32
    %c0_i32_0 = arith.constant 0 : i32
    return %c0_i32, %arg1 : i32, i32
  }
  func.func @transform_3(%arg0: i32, %arg1: i32, %arg2: i32) -> (i32, i32) {
    %c0_i32 = arith.constant 0 : i32
    return %arg0, %arg1 : i32, i32
  }
  func.func @transform_4(%arg0: i32, %arg1: i32, %arg2: i32) -> (i32, i32) {
    %c0_i32 = arith.constant 0 : i32
    return %arg0, %arg1 : i32, i32
  }
}

module attributes {stable_mosaic.version = 11 : i64} {
  func.func @_matmul_kernel(%arg0: i32, %arg1: i32, %arg2: i32, %arg3: memref<16x32xbf16, #tpu.memory_space<vmem>>, %arg4: memref<32x32xbf16, #tpu.memory_space<vmem>>, %arg5: memref<1x32xf32, #tpu.memory_space<vmem>>, %arg6: memref<16x32xbf16, #tpu.memory_space<vmem>>, %arg7: memref<16x32xf32, #tpu.memory_space<vmem>>) attributes {dimension_semantics = [#tpu.dimension_semantics<parallel>, #tpu.dimension_semantics<parallel>, #tpu.dimension_semantics<arbitrary>], iteration_bounds = array<i64: 1, 1, 1>, scalar_prefetch = 0 : i64, scratch_operands = 1 : i64, tpu.core_type = #tpu.core_type<tc>, window_params = [{transform_indices = @transform_0, window_bounds = array<i64: 16, 32>}, {transform_indices = @transform_1, window_bounds = array<i64: 32, 32>}, {transform_indices = @transform_2, window_bounds = array<i64: 1, 32>}, {transform_indices = @transform_3, window_bounds = array<i64: 16, 32>}]} {
    %c0_i32 = arith.constant 0 : i32
    %0 = arith.cmpi eq, %arg2, %c0_i32 : i32
    %1 = arith.extui %0 : i1 to i32
    %c0_i32_0 = arith.constant 0 : i32
    %2 = arith.cmpi ne, %1, %c0_i32_0 : i32
    scf.if %2 {
      %cst_10 = arith.constant 0.000000e+00 : f32
      %12 = vector.broadcast %cst_10 : f32 to vector<16x32xf32>
      %c0_11 = arith.constant 0 : index
      %c0_12 = arith.constant 0 : index
      %13 = vector.load %arg7[%c0_11, %c0_12] : memref<16x32xf32, #tpu.memory_space<vmem>>, vector<16x32xf32>
      tpu.vector_store %arg7[%c0_11, %c0_12], %12 {strides = array<i32>} : memref<16x32xf32, #tpu.memory_space<vmem>>, vector<16x32xf32>,
    } else {
    }
    %c0 = arith.constant 0 : index
    %c0_1 = arith.constant 0 : index
    %3 = vector.load %arg7[%c0, %c0_1] : memref<16x32xf32, #tpu.memory_space<vmem>>, vector<16x32xf32>
    %c0_2 = arith.constant 0 : index
    %c0_3 = arith.constant 0 : index
    %4 = vector.load %arg3[%c0_2, %c0_3] : memref<16x32xbf16, #tpu.memory_space<vmem>>, vector<16x32xbf16>
    %c0_4 = arith.constant 0 : index
    %c0_5 = arith.constant 0 : index
    %5 = vector.load %arg4[%c0_4, %c0_5] : memref<32x32xbf16, #tpu.memory_space<vmem>>, vector<32x32xbf16>
    %cst = arith.constant dense<0.000000e+00> : vector<16x32xf32>
    %6 = tpu.matmul %4, %5, %cst {dimension_numbers = #tpu.dot_dimension_numbers<[1], [0], [0], [1], [0, 0, 1, 1], [], []>} : vector<16x32xbf16>, vector<32x32xbf16>, vector<16x32xf32> -> vector<16x32xf32>
    %7 = arith.addf %3, %6 : vector<16x32xf32>
    %c0_6 = arith.constant 0 : index
    %c0_7 = arith.constant 0 : index
    %8 = vector.load %arg7[%c0_6, %c0_7] : memref<16x32xf32, #tpu.memory_space<vmem>>, vector<16x32xf32>
    tpu.vector_store %arg7[%c0_6, %c0_7], %7 {strides = array<i32>} : memref<16x32xf32, #tpu.memory_space<vmem>>, vector<16x32xf32>,
    %c0_i32_8 = arith.constant 0 : i32
    %9 = arith.cmpi eq, %arg2, %c0_i32_8 : i32
    %10 = arith.extui %9 : i1 to i32
    %c0_i32_9 = arith.constant 0 : i32
    %11 = arith.cmpi ne, %10, %c0_i32_9 : i32
    scf.if %11 {
      %c0_10 = arith.constant 0 : index
      %c0_11 = arith.constant 0 : index
      %12 = vector.load %arg7[%c0_10, %c0_11] : memref<16x32xf32, #tpu.memory_space<vmem>>, vector<16x32xf32>
      %c0_12 = arith.constant 0 : index
      %c0_13 = arith.constant 0 : index
      %13 = vector.load %arg5[%c0_12, %c0_13] : memref<1x32xf32, #tpu.memory_space<vmem>>, vector<1x32xf32>
      %14 = vector.broadcast %13 : vector<1x32xf32> to vector<16x32xf32>
      %15 = arith.addf %12, %14 : vector<16x32xf32>
      %16 = arith.truncf %15 : vector<16x32xf32> to vector<16x32xbf16>
      %c0_14 = arith.constant 0 : index
      %c0_15 = arith.constant 0 : index
      %17 = vector.load %arg6[%c0_14, %c0_15] : memref<16x32xbf16, #tpu.memory_space<vmem>>, vector<16x32xbf16>
      tpu.vector_store %arg6[%c0_14, %c0_15], %16 {strides = array<i32>} : memref<16x32xbf16, #tpu.memory_space<vmem>>, vector<16x32xbf16>,
    } else {
    }
    return
  }
  func.func @transform_0(%arg0: i32, %arg1: i32, %arg2: i32) -> (i32, i32) {
    %c0_i32 = arith.constant 0 : i32
    return %arg0, %arg2 : i32, i32
  }
  func.func @transform_1(%arg0: i32, %arg1: i32, %arg2: i32) -> (i32, i32) {
    %c0_i32 = arith.constant 0 : i32
    return %arg2, %arg1 : i32, i32
  }
  func.func @transform_2(%arg0: i32, %arg1: i32, %arg2: i32) -> (i32, i32) {
    %c0_i32 = arith.constant 0 : i32
    %c0_i32_0 = arith.constant 0 : i32
    return %c0_i32, %arg1 : i32, i32
  }
  func.func @transform_3(%arg0: i32, %arg1: i32, %arg2: i32) -> (i32, i32) {
    %c0_i32 = arith.constant 0 : i32
    return %arg0, %arg1 : i32, i32
  }
}

module attributes {stable_mosaic.version = 11 : i64} {
  func.func @_flash_attention_kernel(%arg0: i32, %arg1: i32, %arg2: i32, %arg3: memref<1x8x4x8xbf16, #tpu.memory_space<vmem>>, %arg4: memref<1x8x4x8xbf16, #tpu.memory_space<vmem>>, %arg5: memref<1x8x4x8xbf16, #tpu.memory_space<vmem>>, %arg6: memref<1x1x8xi32, #tpu.memory_space<vmem>>, %arg7: memref<1x8x4x8xbf16, #tpu.memory_space<vmem>>, %arg8: memref<4x8x1xf32, #tpu.memory_space<vmem>>, %arg9: memref<4x8x1xf32, #tpu.memory_space<vmem>>, %arg10: memref<4x8x8xf32, #tpu.memory_space<vmem>>) attributes {dimension_semantics = [#tpu.dimension_semantics<parallel>, #tpu.dimension_semantics<parallel>, #tpu.dimension_semantics<arbitrary>], iteration_bounds = array<i64: 2, 1, 1>, scalar_prefetch = 0 : i64, scratch_operands = 3 : i64, tpu.core_type = #tpu.core_type<tc>, window_params = [{transform_indices = @transform_0, window_bounds = array<i64: 1, 8, 4, 8>}, {transform_indices = @transform_1, window_bounds = array<i64: 1, 8, 4, 8>}, {transform_indices = @transform_2, window_bounds = array<i64: 1, 8, 4, 8>}, {transform_indices = @transform_3, window_bounds = array<i64: 1, 1, 8>}, {transform_indices = @transform_4, window_bounds = array<i64: 1, 8, 4, 8>}]} {
    %c0_i32 = arith.constant 0 : i32
    %0 = arith.cmpi eq, %arg2, %c0_i32 : i32
    %1 = arith.extui %0 : i1 to i32
    %c0_i32_0 = arith.constant 0 : i32
    %2 = arith.cmpi ne, %1, %c0_i32_0 : i32
    scf.if %2 {
      %cst_146 = arith.constant -1.000000e+30 : f32
      %184 = vector.broadcast %cst_146 : f32 to vector<4x8x1xf32>
      %c0_147 = arith.constant 0 : index
      %c0_148 = arith.constant 0 : index
      %c0_149 = arith.constant 0 : index
      %185 = vector.load %arg8[%c0_147, %c0_148, %c0_149] : memref<4x8x1xf32, #tpu.memory_space<vmem>>, vector<4x8x1xf32>
      tpu.vector_store %arg8[%c0_147, %c0_148, %c0_149], %184 {strides = array<i32>} : memref<4x8x1xf32, #tpu.memory_space<vmem>>, vector<4x8x1xf32>,
      %cst_150 = arith.constant 0.000000e+00 : f32
      %186 = vector.broadcast %cst_150 : f32 to vector<4x8x1xf32>
      %c0_151 = arith.constant 0 : index
      %c0_152 = arith.constant 0 : index
      %c0_153 = arith.constant 0 : index
      %187 = vector.load %arg9[%c0_151, %c0_152, %c0_153] : memref<4x8x1xf32, #tpu.memory_space<vmem>>, vector<4x8x1xf32>
      tpu.vector_store %arg9[%c0_151, %c0_152, %c0_153], %186 {strides = array<i32>} : memref<4x8x1xf32, #tpu.memory_space<vmem>>, vector<4x8x1xf32>,
      %cst_154 = arith.constant 0.000000e+00 : f32
      %188 = vector.broadcast %cst_154 : f32 to vector<4x8x8xf32>
      %c0_155 = arith.constant 0 : index
      %c0_156 = arith.constant 0 : index
      %c0_157 = arith.constant 0 : index
      %189 = vector.load %arg10[%c0_155, %c0_156, %c0_157] : memref<4x8x8xf32, #tpu.memory_space<vmem>>, vector<4x8x8xf32>
      tpu.vector_store %arg10[%c0_155, %c0_156, %c0_157], %188 {strides = array<i32>} : memref<4x8x8xf32, #tpu.memory_space<vmem>>, vector<4x8x8xf32>,
    } else {
    }
    %c0 = arith.constant 0 : index
    %c0_1 = arith.constant 0 : index
    %c0_2 = arith.constant 0 : index
    %3 = vector.load %arg6[%c0, %c0_1, %c0_2] : memref<1x1x8xi32, #tpu.memory_space<vmem>>, vector<1x1x8xi32>
    %4 = vector.shape_cast %3 : vector<1x1x8xi32> to vector<1x8xi32>
    %c0_i32_3 = arith.constant 0 : i32
    %5 = vector.broadcast %c0_i32_3 : i32 to vector<1x8xi32>
    %6 = arith.cmpi sgt, %4, %5 : vector<1x8xi32>
    %7 = vector.shape_cast %6 : vector<1x8xi1> to vector<1x8xi1>
    %8 = vector.broadcast %7 : vector<1x8xi1> to vector<8x8xi1>
    %c0_4 = arith.constant 0 : index
    %c0_5 = arith.constant 0 : index
    %c0_6 = arith.constant 0 : index
    %c0_7 = arith.constant 0 : index
    %9 = vector.load %arg3[%c0_4, %c0_5, %c0_6, %c0_7] : memref<1x8x4x8xbf16, #tpu.memory_space<vmem>>, vector<1x8x1x8xbf16>
    %10 = vector.shape_cast %9 : vector<1x8x1x8xbf16> to vector<8x8xbf16>
    %c0_8 = arith.constant 0 : index
    %c0_9 = arith.constant 0 : index
    %c0_10 = arith.constant 0 : index
    %c0_11 = arith.constant 0 : index
    %11 = vector.load %arg4[%c0_8, %c0_9, %c0_10, %c0_11] : memref<1x8x4x8xbf16, #tpu.memory_space<vmem>>, vector<1x8x1x8xbf16>
    %12 = vector.shape_cast %11 : vector<1x8x1x8xbf16> to vector<8x8xbf16>
    %c0_12 = arith.constant 0 : index
    %c0_13 = arith.constant 0 : index
    %c0_14 = arith.constant 0 : index
    %c0_15 = arith.constant 0 : index
    %13 = vector.load %arg5[%c0_12, %c0_13, %c0_14, %c0_15] : memref<1x8x4x8xbf16, #tpu.memory_space<vmem>>, vector<1x8x1x8xbf16>
    %14 = vector.shape_cast %13 : vector<1x8x1x8xbf16> to vector<8x8xbf16>
    %cst = arith.constant dense<0.000000e+00> : vector<8x8xf32>
    %15 = tpu.matmul %10, %12, %cst {dimension_numbers = #tpu.dot_dimension_numbers<[1], [1], [0], [0], [0, 0, 1, 0], [], []>} : vector<8x8xbf16>, vector<8x8xbf16>, vector<8x8xf32> -> vector<8x8xf32>
    %cst_16 = arith.constant 0.353553385 : f32
    %16 = vector.broadcast %cst_16 : f32 to vector<8x8xf32>
    %17 = arith.mulf %15, %16 : vector<8x8xf32>
    %cst_17 = arith.constant -1.000000e+09 : f32
    %18 = vector.broadcast %cst_17 : f32 to vector<8x8xf32>
    %19 = arith.select %8, %17, %18 : vector<8x8xi1>, vector<8x8xf32>
    %c0_18 = arith.constant 0 : index
    %c0_19 = arith.constant 0 : index
    %c0_20 = arith.constant 0 : index
    %20 = vector.load %arg8[%c0_18, %c0_19, %c0_20] : memref<4x8x1xf32, #tpu.memory_space<vmem>>, vector<1x8x1xf32>
    %21 = vector.shape_cast %20 : vector<1x8x1xf32> to vector<8x1xf32>
    %cst_21 = arith.constant dense<0xFF800000> : vector<8xf32>
    %22 = vector.multi_reduction <maximumf>, %19, %cst_21 [1] : vector<8x8xf32> to vector<8xf32>
    %23 = vector.shape_cast %22 : vector<8xf32> to vector<8x1xf32>
    %24 = arith.maximumf %21, %23 : vector<8x1xf32>
    %25 = arith.subf %21, %24 : vector<8x1xf32>
    %26 = math.exp %25 : vector<8x1xf32>
    %27 = vector.broadcast %24 : vector<8x1xf32> to vector<8x8xf32>
    %28 = arith.subf %19, %27 : vector<8x8xf32>
    %29 = math.exp %28 : vector<8x8xf32>
    %c0_22 = arith.constant 0 : index
    %c0_23 = arith.constant 0 : index
    %c0_24 = arith.constant 0 : index
    %30 = vector.load %arg9[%c0_22, %c0_23, %c0_24] : memref<4x8x1xf32, #tpu.memory_space<vmem>>, vector<1x8x1xf32>
    %31 = vector.shape_cast %30 : vector<1x8x1xf32> to vector<8x1xf32>
    %32 = arith.mulf %26, %31 : vector<8x1xf32>
    %cst_25 = arith.constant dense<0.000000e+00> : vector<8xf32>
    %33 = vector.multi_reduction <add>, %29, %cst_25 [1] : vector<8x8xf32> to vector<8xf32>
    %34 = vector.shape_cast %33 : vector<8xf32> to vector<8x1xf32>
    %35 = arith.addf %32, %34 : vector<8x1xf32>
    %c0_26 = arith.constant 0 : index
    %c0_27 = arith.constant 0 : index
    %c0_28 = arith.constant 0 : index
    %36 = vector.load %arg9[%c0_26, %c0_27, %c0_28] : memref<4x8x1xf32, #tpu.memory_space<vmem>>, vector<1x8x1xf32>
    %37 = vector.shape_cast %36 : vector<1x8x1xf32> to vector<8x1xf32>
    %38 = vector.shape_cast %35 : vector<8x1xf32> to vector<1x8x1xf32>
    tpu.vector_store %arg9[%c0_26, %c0_27, %c0_28], %38 {strides = array<i32>} : memref<4x8x1xf32, #tpu.memory_space<vmem>>, vector<1x8x1xf32>,
    %c0_29 = arith.constant 0 : index
    %c0_30 = arith.constant 0 : index
    %c0_31 = arith.constant 0 : index
    %39 = vector.load %arg10[%c0_29, %c0_30, %c0_31] : memref<4x8x8xf32, #tpu.memory_space<vmem>>, vector<1x8x8xf32>
    %40 = vector.shape_cast %39 : vector<1x8x8xf32> to vector<8x8xf32>
    %41 = vector.broadcast %26 : vector<8x1xf32> to vector<8x8xf32>
    %42 = arith.mulf %41, %40 : vector<8x8xf32>
    %43 = arith.truncf %29 : vector<8x8xf32> to vector<8x8xbf16>
    %cst_32 = arith.constant dense<0.000000e+00> : vector<8x8xf32>
    %44 = tpu.matmul %43, %14, %cst_32 {dimension_numbers = #tpu.dot_dimension_numbers<[1], [0], [0], [1], [0, 0, 1, 1], [], []>} : vector<8x8xbf16>, vector<8x8xbf16>, vector<8x8xf32> -> vector<8x8xf32>
    %45 = arith.addf %42, %44 : vector<8x8xf32>
    %c0_33 = arith.constant 0 : index
    %c0_34 = arith.constant 0 : index
    %c0_35 = arith.constant 0 : index
    %46 = vector.load %arg10[%c0_33, %c0_34, %c0_35] : memref<4x8x8xf32, #tpu.memory_space<vmem>>, vector<1x8x8xf32>
    %47 = vector.shape_cast %46 : vector<1x8x8xf32> to vector<8x8xf32>
    %48 = vector.shape_cast %45 : vector<8x8xf32> to vector<1x8x8xf32>
    tpu.vector_store %arg10[%c0_33, %c0_34, %c0_35], %48 {strides = array<i32>} : memref<4x8x8xf32, #tpu.memory_space<vmem>>, vector<1x8x8xf32>,
    %c0_36 = arith.constant 0 : index
    %c0_37 = arith.constant 0 : index
    %c0_38 = arith.constant 0 : index
    %49 = vector.load %arg8[%c0_36, %c0_37, %c0_38] : memref<4x8x1xf32, #tpu.memory_space<vmem>>, vector<1x8x1xf32>
    %50 = vector.shape_cast %49 : vector<1x8x1xf32> to vector<8x1xf32>
    %51 = vector.shape_cast %24 : vector<8x1xf32> to vector<1x8x1xf32>
    tpu.vector_store %arg8[%c0_36, %c0_37, %c0_38], %51 {strides = array<i32>} : memref<4x8x1xf32, #tpu.memory_space<vmem>>, vector<1x8x1xf32>,
    %c0_39 = arith.constant 0 : index
    %c0_40 = arith.constant 0 : index
    %c1 = arith.constant 1 : index
    %c0_41 = arith.constant 0 : index
    %52 = vector.load %arg3[%c0_39, %c0_40, %c1, %c0_41] : memref<1x8x4x8xbf16, #tpu.memory_space<vmem>>, vector<1x8x1x8xbf16>
    %53 = vector.shape_cast %52 : vector<1x8x1x8xbf16> to vector<8x8xbf16>
    %c0_42 = arith.constant 0 : index
    %c0_43 = arith.constant 0 : index
    %c1_44 = arith.constant 1 : index
    %c0_45 = arith.constant 0 : index
    %54 = vector.load %arg4[%c0_42, %c0_43, %c1_44, %c0_45] : memref<1x8x4x8xbf16, #tpu.memory_space<vmem>>, vector<1x8x1x8xbf16>
    %55 = vector.shape_cast %54 : vector<1x8x1x8xbf16> to vector<8x8xbf16>
    %c0_46 = arith.constant 0 : index
    %c0_47 = arith.constant 0 : index
    %c1_48 = arith.constant 1 : index
    %c0_49 = arith.constant 0 : index
    %56 = vector.load %arg5[%c0_46, %c0_47, %c1_48, %c0_49] : memref<1x8x4x8xbf16, #tpu.memory_space<vmem>>, vector<1x8x1x8xbf16>
    %57 = vector.shape_cast %56 : vector<1x8x1x8xbf16> to vector<8x8xbf16>
    %cst_50 = arith.constant dense<0.000000e+00> : vector<8x8xf32>
    %58 = tpu.matmul %53, %55, %cst_50 {dimension_numbers = #tpu.dot_dimension_numbers<[1], [1], [0], [0], [0, 0, 1, 0], [], []>} : vector<8x8xbf16>, vector<8x8xbf16>, vector<8x8xf32> -> vector<8x8xf32>
    %cst_51 = arith.constant 0.353553385 : f32
    %59 = vector.broadcast %cst_51 : f32 to vector<8x8xf32>
    %60 = arith.mulf %58, %59 : vector<8x8xf32>
    %cst_52 = arith.constant -1.000000e+09 : f32
    %61 = vector.broadcast %cst_52 : f32 to vector<8x8xf32>
    %62 = arith.select %8, %60, %61 : vector<8x8xi1>, vector<8x8xf32>
    %c1_53 = arith.constant 1 : index
    %c0_54 = arith.constant 0 : index
    %c0_55 = arith.constant 0 : index
    %63 = vector.load %arg8[%c1_53, %c0_54, %c0_55] : memref<4x8x1xf32, #tpu.memory_space<vmem>>, vector<1x8x1xf32>
    %64 = vector.shape_cast %63 : vector<1x8x1xf32> to vector<8x1xf32>
    %cst_56 = arith.constant dense<0xFF800000> : vector<8xf32>
    %65 = vector.multi_reduction <maximumf>, %62, %cst_56 [1] : vector<8x8xf32> to vector<8xf32>
    %66 = vector.shape_cast %65 : vector<8xf32> to vector<8x1xf32>
    %67 = arith.maximumf %64, %66 : vector<8x1xf32>
    %68 = arith.subf %64, %67 : vector<8x1xf32>
    %69 = math.exp %68 : vector<8x1xf32>
    %70 = vector.broadcast %67 : vector<8x1xf32> to vector<8x8xf32>
    %71 = arith.subf %62, %70 : vector<8x8xf32>
    %72 = math.exp %71 : vector<8x8xf32>
    %c1_57 = arith.constant 1 : index
    %c0_58 = arith.constant 0 : index
    %c0_59 = arith.constant 0 : index
    %73 = vector.load %arg9[%c1_57, %c0_58, %c0_59] : memref<4x8x1xf32, #tpu.memory_space<vmem>>, vector<1x8x1xf32>
    %74 = vector.shape_cast %73 : vector<1x8x1xf32> to vector<8x1xf32>
    %75 = arith.mulf %69, %74 : vector<8x1xf32>
    %cst_60 = arith.constant dense<0.000000e+00> : vector<8xf32>
    %76 = vector.multi_reduction <add>, %72, %cst_60 [1] : vector<8x8xf32> to vector<8xf32>
    %77 = vector.shape_cast %76 : vector<8xf32> to vector<8x1xf32>
    %78 = arith.addf %75, %77 : vector<8x1xf32>
    %c1_61 = arith.constant 1 : index
    %c0_62 = arith.constant 0 : index
    %c0_63 = arith.constant 0 : index
    %79 = vector.load %arg9[%c1_61, %c0_62, %c0_63] : memref<4x8x1xf32, #tpu.memory_space<vmem>>, vector<1x8x1xf32>
    %80 = vector.shape_cast %79 : vector<1x8x1xf32> to vector<8x1xf32>
    %81 = vector.shape_cast %78 : vector<8x1xf32> to vector<1x8x1xf32>
    tpu.vector_store %arg9[%c1_61, %c0_62, %c0_63], %81 {strides = array<i32>} : memref<4x8x1xf32, #tpu.memory_space<vmem>>, vector<1x8x1xf32>,
    %c1_64 = arith.constant 1 : index
    %c0_65 = arith.constant 0 : index
    %c0_66 = arith.constant 0 : index
    %82 = vector.load %arg10[%c1_64, %c0_65, %c0_66] : memref<4x8x8xf32, #tpu.memory_space<vmem>>, vector<1x8x8xf32>
    %83 = vector.shape_cast %82 : vector<1x8x8xf32> to vector<8x8xf32>
    %84 = vector.broadcast %69 : vector<8x1xf32> to vector<8x8xf32>
    %85 = arith.mulf %84, %83 : vector<8x8xf32>
    %86 = arith.truncf %72 : vector<8x8xf32> to vector<8x8xbf16>
    %cst_67 = arith.constant dense<0.000000e+00> : vector<8x8xf32>
    %87 = tpu.matmul %86, %57, %cst_67 {dimension_numbers = #tpu.dot_dimension_numbers<[1], [0], [0], [1], [0, 0, 1, 1], [], []>} : vector<8x8xbf16>, vector<8x8xbf16>, vector<8x8xf32> -> vector<8x8xf32>
    %88 = arith.addf %85, %87 : vector<8x8xf32>
    %c1_68 = arith.constant 1 : index
    %c0_69 = arith.constant 0 : index
    %c0_70 = arith.constant 0 : index
    %89 = vector.load %arg10[%c1_68, %c0_69, %c0_70] : memref<4x8x8xf32, #tpu.memory_space<vmem>>, vector<1x8x8xf32>
    %90 = vector.shape_cast %89 : vector<1x8x8xf32> to vector<8x8xf32>
    %91 = vector.shape_cast %88 : vector<8x8xf32> to vector<1x8x8xf32>
    tpu.vector_store %arg10[%c1_68, %c0_69, %c0_70], %91 {strides = array<i32>} : memref<4x8x8xf32, #tpu.memory_space<vmem>>, vector<1x8x8xf32>,
    %c1_71 = arith.constant 1 : index
    %c0_72 = arith.constant 0 : index
    %c0_73 = arith.constant 0 : index
    %92 = vector.load %arg8[%c1_71, %c0_72, %c0_73] : memref<4x8x1xf32, #tpu.memory_space<vmem>>, vector<1x8x1xf32>
    %93 = vector.shape_cast %92 : vector<1x8x1xf32> to vector<8x1xf32>
    %94 = vector.shape_cast %67 : vector<8x1xf32> to vector<1x8x1xf32>
    tpu.vector_store %arg8[%c1_71, %c0_72, %c0_73], %94 {strides = array<i32>} : memref<4x8x1xf32, #tpu.memory_space<vmem>>, vector<1x8x1xf32>,
    %c0_74 = arith.constant 0 : index
    %c0_75 = arith.constant 0 : index
    %c2 = arith.constant 2 : index
    %c0_76 = arith.constant 0 : index
    %95 = vector.load %arg3[%c0_74, %c0_75, %c2, %c0_76] : memref<1x8x4x8xbf16, #tpu.memory_space<vmem>>, vector<1x8x1x8xbf16>
    %96 = vector.shape_cast %95 : vector<1x8x1x8xbf16> to vector<8x8xbf16>
    %c0_77 = arith.constant 0 : index
    %c0_78 = arith.constant 0 : index
    %c2_79 = arith.constant 2 : index
    %c0_80 = arith.constant 0 : index
    %97 = vector.load %arg4[%c0_77, %c0_78, %c2_79, %c0_80] : memref<1x8x4x8xbf16, #tpu.memory_space<vmem>>, vector<1x8x1x8xbf16>
    %98 = vector.shape_cast %97 : vector<1x8x1x8xbf16> to vector<8x8xbf16>
    %c0_81 = arith.constant 0 : index
    %c0_82 = arith.constant 0 : index
    %c2_83 = arith.constant 2 : index
    %c0_84 = arith.constant 0 : index
    %99 = vector.load %arg5[%c0_81, %c0_82, %c2_83, %c0_84] : memref<1x8x4x8xbf16, #tpu.memory_space<vmem>>, vector<1x8x1x8xbf16>
    %100 = vector.shape_cast %99 : vector<1x8x1x8xbf16> to vector<8x8xbf16>
    %cst_85 = arith.constant dense<0.000000e+00> : vector<8x8xf32>
    %101 = tpu.matmul %96, %98, %cst_85 {dimension_numbers = #tpu.dot_dimension_numbers<[1], [1], [0], [0], [0, 0, 1, 0], [], []>} : vector<8x8xbf16>, vector<8x8xbf16>, vector<8x8xf32> -> vector<8x8xf32>
    %cst_86 = arith.constant 0.353553385 : f32
    %102 = vector.broadcast %cst_86 : f32 to vector<8x8xf32>
    %103 = arith.mulf %101, %102 : vector<8x8xf32>
    %cst_87 = arith.constant -1.000000e+09 : f32
    %104 = vector.broadcast %cst_87 : f32 to vector<8x8xf32>
    %105 = arith.select %8, %103, %104 : vector<8x8xi1>, vector<8x8xf32>
    %c2_88 = arith.constant 2 : index
    %c0_89 = arith.constant 0 : index
    %c0_90 = arith.constant 0 : index
    %106 = vector.load %arg8[%c2_88, %c0_89, %c0_90] : memref<4x8x1xf32, #tpu.memory_space<vmem>>, vector<1x8x1xf32>
    %107 = vector.shape_cast %106 : vector<1x8x1xf32> to vector<8x1xf32>
    %cst_91 = arith.constant dense<0xFF800000> : vector<8xf32>
    %108 = vector.multi_reduction <maximumf>, %105, %cst_91 [1] : vector<8x8xf32> to vector<8xf32>
    %109 = vector.shape_cast %108 : vector<8xf32> to vector<8x1xf32>
    %110 = arith.maximumf %107, %109 : vector<8x1xf32>
    %111 = arith.subf %107, %110 : vector<8x1xf32>
    %112 = math.exp %111 : vector<8x1xf32>
    %113 = vector.broadcast %110 : vector<8x1xf32> to vector<8x8xf32>
    %114 = arith.subf %105, %113 : vector<8x8xf32>
    %115 = math.exp %114 : vector<8x8xf32>
    %c2_92 = arith.constant 2 : index
    %c0_93 = arith.constant 0 : index
    %c0_94 = arith.constant 0 : index
    %116 = vector.load %arg9[%c2_92, %c0_93, %c0_94] : memref<4x8x1xf32, #tpu.memory_space<vmem>>, vector<1x8x1xf32>
    %117 = vector.shape_cast %116 : vector<1x8x1xf32> to vector<8x1xf32>
    %118 = arith.mulf %112, %117 : vector<8x1xf32>
    %cst_95 = arith.constant dense<0.000000e+00> : vector<8xf32>
    %119 = vector.multi_reduction <add>, %115, %cst_95 [1] : vector<8x8xf32> to vector<8xf32>
    %120 = vector.shape_cast %119 : vector<8xf32> to vector<8x1xf32>
    %121 = arith.addf %118, %120 : vector<8x1xf32>
    %c2_96 = arith.constant 2 : index
    %c0_97 = arith.constant 0 : index
    %c0_98 = arith.constant 0 : index
    %122 = vector.load %arg9[%c2_96, %c0_97, %c0_98] : memref<4x8x1xf32, #tpu.memory_space<vmem>>, vector<1x8x1xf32>
    %123 = vector.shape_cast %122 : vector<1x8x1xf32> to vector<8x1xf32>
    %124 = vector.shape_cast %121 : vector<8x1xf32> to vector<1x8x1xf32>
    tpu.vector_store %arg9[%c2_96, %c0_97, %c0_98], %124 {strides = array<i32>} : memref<4x8x1xf32, #tpu.memory_space<vmem>>, vector<1x8x1xf32>,
    %c2_99 = arith.constant 2 : index
    %c0_100 = arith.constant 0 : index
    %c0_101 = arith.constant 0 : index
    %125 = vector.load %arg10[%c2_99, %c0_100, %c0_101] : memref<4x8x8xf32, #tpu.memory_space<vmem>>, vector<1x8x8xf32>
    %126 = vector.shape_cast %125 : vector<1x8x8xf32> to vector<8x8xf32>
    %127 = vector.broadcast %112 : vector<8x1xf32> to vector<8x8xf32>
    %128 = arith.mulf %127, %126 : vector<8x8xf32>
    %129 = arith.truncf %115 : vector<8x8xf32> to vector<8x8xbf16>
    %cst_102 = arith.constant dense<0.000000e+00> : vector<8x8xf32>
    %130 = tpu.matmul %129, %100, %cst_102 {dimension_numbers = #tpu.dot_dimension_numbers<[1], [0], [0], [1], [0, 0, 1, 1], [], []>} : vector<8x8xbf16>, vector<8x8xbf16>, vector<8x8xf32> -> vector<8x8xf32>
    %131 = arith.addf %128, %130 : vector<8x8xf32>
    %c2_103 = arith.constant 2 : index
    %c0_104 = arith.constant 0 : index
    %c0_105 = arith.constant 0 : index
    %132 = vector.load %arg10[%c2_103, %c0_104, %c0_105] : memref<4x8x8xf32, #tpu.memory_space<vmem>>, vector<1x8x8xf32>
    %133 = vector.shape_cast %132 : vector<1x8x8xf32> to vector<8x8xf32>
    %134 = vector.shape_cast %131 : vector<8x8xf32> to vector<1x8x8xf32>
    tpu.vector_store %arg10[%c2_103, %c0_104, %c0_105], %134 {strides = array<i32>} : memref<4x8x8xf32, #tpu.memory_space<vmem>>, vector<1x8x8xf32>,
    %c2_106 = arith.constant 2 : index
    %c0_107 = arith.constant 0 : index
    %c0_108 = arith.constant 0 : index
    %135 = vector.load %arg8[%c2_106, %c0_107, %c0_108] : memref<4x8x1xf32, #tpu.memory_space<vmem>>, vector<1x8x1xf32>
    %136 = vector.shape_cast %135 : vector<1x8x1xf32> to vector<8x1xf32>
    %137 = vector.shape_cast %110 : vector<8x1xf32> to vector<1x8x1xf32>
    tpu.vector_store %arg8[%c2_106, %c0_107, %c0_108], %137 {strides = array<i32>} : memref<4x8x1xf32, #tpu.memory_space<vmem>>, vector<1x8x1xf32>,
    %c0_109 = arith.constant 0 : index
    %c0_110 = arith.constant 0 : index
    %c3 = arith.constant 3 : index
    %c0_111 = arith.constant 0 : index
    %138 = vector.load %arg3[%c0_109, %c0_110, %c3, %c0_111] : memref<1x8x4x8xbf16, #tpu.memory_space<vmem>>, vector<1x8x1x8xbf16>
    %139 = vector.shape_cast %138 : vector<1x8x1x8xbf16> to vector<8x8xbf16>
    %c0_112 = arith.constant 0 : index
    %c0_113 = arith.constant 0 : index
    %c3_114 = arith.constant 3 : index
    %c0_115 = arith.constant 0 : index
    %140 = vector.load %arg4[%c0_112, %c0_113, %c3_114, %c0_115] : memref<1x8x4x8xbf16, #tpu.memory_space<vmem>>, vector<1x8x1x8xbf16>
    %141 = vector.shape_cast %140 : vector<1x8x1x8xbf16> to vector<8x8xbf16>
    %c0_116 = arith.constant 0 : index
    %c0_117 = arith.constant 0 : index
    %c3_118 = arith.constant 3 : index
    %c0_119 = arith.constant 0 : index
    %142 = vector.load %arg5[%c0_116, %c0_117, %c3_118, %c0_119] : memref<1x8x4x8xbf16, #tpu.memory_space<vmem>>, vector<1x8x1x8xbf16>
    %143 = vector.shape_cast %142 : vector<1x8x1x8xbf16> to vector<8x8xbf16>
    %cst_120 = arith.constant dense<0.000000e+00> : vector<8x8xf32>
    %144 = tpu.matmul %139, %141, %cst_120 {dimension_numbers = #tpu.dot_dimension_numbers<[1], [1], [0], [0], [0, 0, 1, 0], [], []>} : vector<8x8xbf16>, vector<8x8xbf16>, vector<8x8xf32> -> vector<8x8xf32>
    %cst_121 = arith.constant 0.353553385 : f32
    %145 = vector.broadcast %cst_121 : f32 to vector<8x8xf32>
    %146 = arith.mulf %144, %145 : vector<8x8xf32>
    %cst_122 = arith.constant -1.000000e+09 : f32
    %147 = vector.broadcast %cst_122 : f32 to vector<8x8xf32>
    %148 = arith.select %8, %146, %147 : vector<8x8xi1>, vector<8x8xf32>
    %c3_123 = arith.constant 3 : index
    %c0_124 = arith.constant 0 : index
    %c0_125 = arith.constant 0 : index
    %149 = vector.load %arg8[%c3_123, %c0_124, %c0_125] : memref<4x8x1xf32, #tpu.memory_space<vmem>>, vector<1x8x1xf32>
    %150 = vector.shape_cast %149 : vector<1x8x1xf32> to vector<8x1xf32>
    %cst_126 = arith.constant dense<0xFF800000> : vector<8xf32>
    %151 = vector.multi_reduction <maximumf>, %148, %cst_126 [1] : vector<8x8xf32> to vector<8xf32>
    %152 = vector.shape_cast %151 : vector<8xf32> to vector<8x1xf32>
    %153 = arith.maximumf %150, %152 : vector<8x1xf32>
    %154 = arith.subf %150, %153 : vector<8x1xf32>
    %155 = math.exp %154 : vector<8x1xf32>
    %156 = vector.broadcast %153 : vector<8x1xf32> to vector<8x8xf32>
    %157 = arith.subf %148, %156 : vector<8x8xf32>
    %158 = math.exp %157 : vector<8x8xf32>
    %c3_127 = arith.constant 3 : index
    %c0_128 = arith.constant 0 : index
    %c0_129 = arith.constant 0 : index
    %159 = vector.load %arg9[%c3_127, %c0_128, %c0_129] : memref<4x8x1xf32, #tpu.memory_space<vmem>>, vector<1x8x1xf32>
    %160 = vector.shape_cast %159 : vector<1x8x1xf32> to vector<8x1xf32>
    %161 = arith.mulf %155, %160 : vector<8x1xf32>
    %cst_130 = arith.constant dense<0.000000e+00> : vector<8xf32>
    %162 = vector.multi_reduction <add>, %158, %cst_130 [1] : vector<8x8xf32> to vector<8xf32>
    %163 = vector.shape_cast %162 : vector<8xf32> to vector<8x1xf32>
    %164 = arith.addf %161, %163 : vector<8x1xf32>
    %c3_131 = arith.constant 3 : index
    %c0_132 = arith.constant 0 : index
    %c0_133 = arith.constant 0 : index
    %165 = vector.load %arg9[%c3_131, %c0_132, %c0_133] : memref<4x8x1xf32, #tpu.memory_space<vmem>>, vector<1x8x1xf32>
    %166 = vector.shape_cast %165 : vector<1x8x1xf32> to vector<8x1xf32>
    %167 = vector.shape_cast %164 : vector<8x1xf32> to vector<1x8x1xf32>
    tpu.vector_store %arg9[%c3_131, %c0_132, %c0_133], %167 {strides = array<i32>} : memref<4x8x1xf32, #tpu.memory_space<vmem>>, vector<1x8x1xf32>,
    %c3_134 = arith.constant 3 : index
    %c0_135 = arith.constant 0 : index
    %c0_136 = arith.constant 0 : index
    %168 = vector.load %arg10[%c3_134, %c0_135, %c0_136] : memref<4x8x8xf32, #tpu.memory_space<vmem>>, vector<1x8x8xf32>
    %169 = vector.shape_cast %168 : vector<1x8x8xf32> to vector<8x8xf32>
    %170 = vector.broadcast %155 : vector<8x1xf32> to vector<8x8xf32>
    %171 = arith.mulf %170, %169 : vector<8x8xf32>
    %172 = arith.truncf %158 : vector<8x8xf32> to vector<8x8xbf16>
    %cst_137 = arith.constant dense<0.000000e+00> : vector<8x8xf32>
    %173 = tpu.matmul %172, %143, %cst_137 {dimension_numbers = #tpu.dot_dimension_numbers<[1], [0], [0], [1], [0, 0, 1, 1], [], []>} : vector<8x8xbf16>, vector<8x8xbf16>, vector<8x8xf32> -> vector<8x8xf32>
    %174 = arith.addf %171, %173 : vector<8x8xf32>
    %c3_138 = arith.constant 3 : index
    %c0_139 = arith.constant 0 : index
    %c0_140 = arith.constant 0 : index
    %175 = vector.load %arg10[%c3_138, %c0_139, %c0_140] : memref<4x8x8xf32, #tpu.memory_space<vmem>>, vector<1x8x8xf32>
    %176 = vector.shape_cast %175 : vector<1x8x8xf32> to vector<8x8xf32>
    %177 = vector.shape_cast %174 : vector<8x8xf32> to vector<1x8x8xf32>
    tpu.vector_store %arg10[%c3_138, %c0_139, %c0_140], %177 {strides = array<i32>} : memref<4x8x8xf32, #tpu.memory_space<vmem>>, vector<1x8x8xf32>,
    %c3_141 = arith.constant 3 : index
    %c0_142 = arith.constant 0 : index
    %c0_143 = arith.constant 0 : index
    %178 = vector.load %arg8[%c3_141, %c0_142, %c0_143] : memref<4x8x1xf32, #tpu.memory_space<vmem>>, vector<1x8x1xf32>
    %179 = vector.shape_cast %178 : vector<1x8x1xf32> to vector<8x1xf32>
    %180 = vector.shape_cast %153 : vector<8x1xf32> to vector<1x8x1xf32>
    tpu.vector_store %arg8[%c3_141, %c0_142, %c0_143], %180 {strides = array<i32>} : memref<4x8x1xf32, #tpu.memory_space<vmem>>, vector<1x8x1xf32>,
    %c0_i32_144 = arith.constant 0 : i32
    %181 = arith.cmpi eq, %arg2, %c0_i32_144 : i32
    %182 = arith.extui %181 : i1 to i32
    %c0_i32_145 = arith.constant 0 : i32
    %183 = arith.cmpi ne, %182, %c0_i32_145 : i32
    scf.if %183 {
      %c0_146 = arith.constant 0 : index
      %c0_147 = arith.constant 0 : index
      %c0_148 = arith.constant 0 : index
      %184 = vector.load %arg9[%c0_146, %c0_147, %c0_148] : memref<4x8x1xf32, #tpu.memory_space<vmem>>, vector<1x8x1xf32>
      %185 = vector.shape_cast %184 : vector<1x8x1xf32> to vector<8x1xf32>
      %186 = tpu.reciprocal %185 {approx = true} : vector<8x1xf32> -> vector<8x1xf32>
      %c0_149 = arith.constant 0 : index
      %c0_150 = arith.constant 0 : index
      %c0_151 = arith.constant 0 : index
      %187 = vector.load %arg10[%c0_149, %c0_150, %c0_151] : memref<4x8x8xf32, #tpu.memory_space<vmem>>, vector<1x8x8xf32>
      %188 = vector.shape_cast %187 : vector<1x8x8xf32> to vector<8x8xf32>
      %189 = vector.broadcast %186 : vector<8x1xf32> to vector<8x8xf32>
      %190 = arith.mulf %188, %189 : vector<8x8xf32>
      %191 = arith.truncf %190 : vector<8x8xf32> to vector<8x8xbf16>
      %c0_152 = arith.constant 0 : index
      %c0_153 = arith.constant 0 : index
      %c0_154 = arith.constant 0 : index
      %c0_155 = arith.constant 0 : index
      %192 = vector.load %arg7[%c0_152, %c0_153, %c0_154, %c0_155] : memref<1x8x4x8xbf16, #tpu.memory_space<vmem>>, vector<1x8x1x8xbf16>
      %193 = vector.shape_cast %192 : vector<1x8x1x8xbf16> to vector<8x8xbf16>
      %194 = vector.shape_cast %191 : vector<8x8xbf16> to vector<1x8x1x8xbf16>
      tpu.vector_store %arg7[%c0_152, %c0_153, %c0_154, %c0_155], %194 {strides = array<i32>} : memref<1x8x4x8xbf16, #tpu.memory_space<vmem>>, vector<1x8x1x8xbf16>,
      %c1_156 = arith.constant 1 : index
      %c0_157 = arith.constant 0 : index
      %c0_158 = arith.constant 0 : index
      %195 = vector.load %arg9[%c1_156, %c0_157, %c0_158] : memref<4x8x1xf32, #tpu.memory_space<vmem>>, vector<1x8x1xf32>
      %196 = vector.shape_cast %195 : vector<1x8x1xf32> to vector<8x1xf32>
      %197 = tpu.reciprocal %196 {approx = true} : vector<8x1xf32> -> vector<8x1xf32>
      %c1_159 = arith.constant 1 : index
      %c0_160 = arith.constant 0 : index
      %c0_161 = arith.constant 0 : index
      %198 = vector.load %arg10[%c1_159, %c0_160, %c0_161] : memref<4x8x8xf32, #tpu.memory_space<vmem>>, vector<1x8x8xf32>
      %199 = vector.shape_cast %198 : vector<1x8x8xf32> to vector<8x8xf32>
      %200 = vector.broadcast %197 : vector<8x1xf32> to vector<8x8xf32>
      %201 = arith.mulf %199, %200 : vector<8x8xf32>
      %202 = arith.truncf %201 : vector<8x8xf32> to vector<8x8xbf16>
      %c0_162 = arith.constant 0 : index
      %c0_163 = arith.constant 0 : index
      %c1_164 = arith.constant 1 : index
      %c0_165 = arith.constant 0 : index
      %203 = vector.load %arg7[%c0_162, %c0_163, %c1_164, %c0_165] : memref<1x8x4x8xbf16, #tpu.memory_space<vmem>>, vector<1x8x1x8xbf16>
      %204 = vector.shape_cast %203 : vector<1x8x1x8xbf16> to vector<8x8xbf16>
      %205 = vector.shape_cast %202 : vector<8x8xbf16> to vector<1x8x1x8xbf16>
      tpu.vector_store %arg7[%c0_162, %c0_163, %c1_164, %c0_165], %205 {strides = array<i32>} : memref<1x8x4x8xbf16, #tpu.memory_space<vmem>>, vector<1x8x1x8xbf16>,
      %c2_166 = arith.constant 2 : index
      %c0_167 = arith.constant 0 : index
      %c0_168 = arith.constant 0 : index
      %206 = vector.load %arg9[%c2_166, %c0_167, %c0_168] : memref<4x8x1xf32, #tpu.memory_space<vmem>>, vector<1x8x1xf32>
      %207 = vector.shape_cast %206 : vector<1x8x1xf32> to vector<8x1xf32>
      %208 = tpu.reciprocal %207 {approx = true} : vector<8x1xf32> -> vector<8x1xf32>
      %c2_169 = arith.constant 2 : index
      %c0_170 = arith.constant 0 : index
      %c0_171 = arith.constant 0 : index
      %209 = vector.load %arg10[%c2_169, %c0_170, %c0_171] : memref<4x8x8xf32, #tpu.memory_space<vmem>>, vector<1x8x8xf32>
      %210 = vector.shape_cast %209 : vector<1x8x8xf32> to vector<8x8xf32>
      %211 = vector.broadcast %208 : vector<8x1xf32> to vector<8x8xf32>
      %212 = arith.mulf %210, %211 : vector<8x8xf32>
      %213 = arith.truncf %212 : vector<8x8xf32> to vector<8x8xbf16>
      %c0_172 = arith.constant 0 : index
      %c0_173 = arith.constant 0 : index
      %c2_174 = arith.constant 2 : index
      %c0_175 = arith.constant 0 : index
      %214 = vector.load %arg7[%c0_172, %c0_173, %c2_174, %c0_175] : memref<1x8x4x8xbf16, #tpu.memory_space<vmem>>, vector<1x8x1x8xbf16>
      %215 = vector.shape_cast %214 : vector<1x8x1x8xbf16> to vector<8x8xbf16>
      %216 = vector.shape_cast %213 : vector<8x8xbf16> to vector<1x8x1x8xbf16>
      tpu.vector_store %arg7[%c0_172, %c0_173, %c2_174, %c0_175], %216 {strides = array<i32>} : memref<1x8x4x8xbf16, #tpu.memory_space<vmem>>, vector<1x8x1x8xbf16>,
      %c3_176 = arith.constant 3 : index
      %c0_177 = arith.constant 0 : index
      %c0_178 = arith.constant 0 : index
      %217 = vector.load %arg9[%c3_176, %c0_177, %c0_178] : memref<4x8x1xf32, #tpu.memory_space<vmem>>, vector<1x8x1xf32>
      %218 = vector.shape_cast %217 : vector<1x8x1xf32> to vector<8x1xf32>
      %219 = tpu.reciprocal %218 {approx = true} : vector<8x1xf32> -> vector<8x1xf32>
      %c3_179 = arith.constant 3 : index
      %c0_180 = arith.constant 0 : index
      %c0_181 = arith.constant 0 : index
      %220 = vector.load %arg10[%c3_179, %c0_180, %c0_181] : memref<4x8x8xf32, #tpu.memory_space<vmem>>, vector<1x8x8xf32>
      %221 = vector.shape_cast %220 : vector<1x8x8xf32> to vector<8x8xf32>
      %222 = vector.broadcast %219 : vector<8x1xf32> to vector<8x8xf32>
      %223 = arith.mulf %221, %222 : vector<8x8xf32>
      %224 = arith.truncf %223 : vector<8x8xf32> to vector<8x8xbf16>
      %c0_182 = arith.constant 0 : index
      %c0_183 = arith.constant 0 : index
      %c3_184 = arith.constant 3 : index
      %c0_185 = arith.constant 0 : index
      %225 = vector.load %arg7[%c0_182, %c0_183, %c3_184, %c0_185] : memref<1x8x4x8xbf16, #tpu.memory_space<vmem>>, vector<1x8x1x8xbf16>
      %226 = vector.shape_cast %225 : vector<1x8x1x8xbf16> to vector<8x8xbf16>
      %227 = vector.shape_cast %224 : vector<8x8xbf16> to vector<1x8x1x8xbf16>
      tpu.vector_store %arg7[%c0_182, %c0_183, %c3_184, %c0_185], %227 {strides = array<i32>} : memref<1x8x4x8xbf16, #tpu.memory_space<vmem>>, vector<1x8x1x8xbf16>,
    } else {
    }
    return
  }
  func.func @transform_0(%arg0: i32, %arg1: i32, %arg2: i32) -> (i32, i32, i32, i32) {
    %c0_i32 = arith.constant 0 : i32
    %c0_i32_0 = arith.constant 0 : i32
    %c0_i32_1 = arith.constant 0 : i32
    return %arg0, %arg1, %c0_i32, %c0_i32_0 : i32, i32, i32, i32
  }
  func.func @transform_1(%arg0: i32, %arg1: i32, %arg2: i32) -> (i32, i32, i32, i32) {
    %c0_i32 = arith.constant 0 : i32
    %c0_i32_0 = arith.constant 0 : i32
    %c0_i32_1 = arith.constant 0 : i32
    return %arg0, %arg2, %c0_i32, %c0_i32_0 : i32, i32, i32, i32
  }
  func.func @transform_2(%arg0: i32, %arg1: i32, %arg2: i32) -> (i32, i32, i32, i32) {
    %c0_i32 = arith.constant 0 : i32
    %c0_i32_0 = arith.constant 0 : i32
    %c0_i32_1 = arith.constant 0 : i32
    return %arg0, %arg2, %c0_i32, %c0_i32_0 : i32, i32, i32, i32
  }
  func.func @transform_3(%arg0: i32, %arg1: i32, %arg2: i32) -> (i32, i32, i32) {
    %c0_i32 = arith.constant 0 : i32
    %c0_i32_0 = arith.constant 0 : i32
    return %arg0, %c0_i32, %arg2 : i32, i32, i32
  }
  func.func @transform_4(%arg0: i32, %arg1: i32, %arg2: i32) -> (i32, i32, i32, i32) {
    %c0_i32 = arith.constant 0 : i32
    %c0_i32_0 = arith.constant 0 : i32
    %c0_i32_1 = arith.constant 0 : i32
    return %arg0, %arg1, %c0_i32, %c0_i32_0 : i32, i32, i32, i32
  }
}

module attributes {stable_mosaic.version = 11 : i64} {
  func.func @_matmul_kernel(%arg0: i32, %arg1: i32, %arg2: i32, %arg3: memref<16x32xbf16, #tpu.memory_space<vmem>>, %arg4: memref<32x64xbf16, #tpu.memory_space<vmem>>, %arg5: memref<1x64xf32, #tpu.memory_space<vmem>>, %arg6: memref<16x64xbf16, #tpu.memory_space<vmem>>, %arg7: memref<16x64xf32, #tpu.memory_space<vmem>>) attributes {dimension_semantics = [#tpu.dimension_semantics<parallel>, #tpu.dimension_semantics<parallel>, #tpu.dimension_semantics<arbitrary>], iteration_bounds = array<i64: 1, 1, 1>, scalar_prefetch = 0 : i64, scratch_operands = 1 : i64, tpu.core_type = #tpu.core_type<tc>, window_params = [{transform_indices = @transform_0, window_bounds = array<i64: 16, 32>}, {transform_indices = @transform_1, window_bounds = array<i64: 32, 64>}, {transform_indices = @transform_2, window_bounds = array<i64: 1, 64>}, {transform_indices = @transform_3, window_bounds = array<i64: 16, 64>}]} {
    %c0_i32 = arith.constant 0 : i32
    %0 = arith.cmpi eq, %arg2, %c0_i32 : i32
    %1 = arith.extui %0 : i1 to i32
    %c0_i32_0 = arith.constant 0 : i32
    %2 = arith.cmpi ne, %1, %c0_i32_0 : i32
    scf.if %2 {
      %cst_10 = arith.constant 0.000000e+00 : f32
      %12 = vector.broadcast %cst_10 : f32 to vector<16x64xf32>
      %c0_11 = arith.constant 0 : index
      %c0_12 = arith.constant 0 : index
      %13 = vector.load %arg7[%c0_11, %c0_12] : memref<16x64xf32, #tpu.memory_space<vmem>>, vector<16x64xf32>
      tpu.vector_store %arg7[%c0_11, %c0_12], %12 {strides = array<i32>} : memref<16x64xf32, #tpu.memory_space<vmem>>, vector<16x64xf32>,
    } else {
    }
    %c0 = arith.constant 0 : index
    %c0_1 = arith.constant 0 : index
    %3 = vector.load %arg7[%c0, %c0_1] : memref<16x64xf32, #tpu.memory_space<vmem>>, vector<16x64xf32>
    %c0_2 = arith.constant 0 : index
    %c0_3 = arith.constant 0 : index
    %4 = vector.load %arg3[%c0_2, %c0_3] : memref<16x32xbf16, #tpu.memory_space<vmem>>, vector<16x32xbf16>
    %c0_4 = arith.constant 0 : index
    %c0_5 = arith.constant 0 : index
    %5 = vector.load %arg4[%c0_4, %c0_5] : memref<32x64xbf16, #tpu.memory_space<vmem>>, vector<32x64xbf16>
    %cst = arith.constant dense<0.000000e+00> : vector<16x64xf32>
    %6 = tpu.matmul %4, %5, %cst {dimension_numbers = #tpu.dot_dimension_numbers<[1], [0], [0], [1], [0, 0, 1, 1], [], []>} : vector<16x32xbf16>, vector<32x64xbf16>, vector<16x64xf32> -> vector<16x64xf32>
    %7 = arith.addf %3, %6 : vector<16x64xf32>
    %c0_6 = arith.constant 0 : index
    %c0_7 = arith.constant 0 : index
    %8 = vector.load %arg7[%c0_6, %c0_7] : memref<16x64xf32, #tpu.memory_space<vmem>>, vector<16x64xf32>
    tpu.vector_store %arg7[%c0_6, %c0_7], %7 {strides = array<i32>} : memref<16x64xf32, #tpu.memory_space<vmem>>, vector<16x64xf32>,
    %c0_i32_8 = arith.constant 0 : i32
    %9 = arith.cmpi eq, %arg2, %c0_i32_8 : i32
    %10 = arith.extui %9 : i1 to i32
    %c0_i32_9 = arith.constant 0 : i32
    %11 = arith.cmpi ne, %10, %c0_i32_9 : i32
    scf.if %11 {
      %c0_10 = arith.constant 0 : index
      %c0_11 = arith.constant 0 : index
      %12 = vector.load %arg7[%c0_10, %c0_11] : memref<16x64xf32, #tpu.memory_space<vmem>>, vector<16x64xf32>
      %c0_12 = arith.constant 0 : index
      %c0_13 = arith.constant 0 : index
      %13 = vector.load %arg5[%c0_12, %c0_13] : memref<1x64xf32, #tpu.memory_space<vmem>>, vector<1x64xf32>
      %14 = vector.broadcast %13 : vector<1x64xf32> to vector<16x64xf32>
      %15 = arith.addf %12, %14 : vector<16x64xf32>
      %cst_14 = arith.constant 0.000000e+00 : f32
      %16 = vector.broadcast %cst_14 : f32 to vector<16x64xf32>
      %17 = arith.maximumf %15, %16 : vector<16x64xf32>
      %18 = arith.truncf %17 : vector<16x64xf32> to vector<16x64xbf16>
      %c0_15 = arith.constant 0 : index
      %c0_16 = arith.constant 0 : index
      %19 = vector.load %arg6[%c0_15, %c0_16] : memref<16x64xbf16, #tpu.memory_space<vmem>>, vector<16x64xbf16>
      tpu.vector_store %arg6[%c0_15, %c0_16], %18 {strides = array<i32>} : memref<16x64xbf16, #tpu.memory_space<vmem>>, vector<16x64xbf16>,
    } else {
    }
    return
  }
  func.func @transform_0(%arg0: i32, %arg1: i32, %arg2: i32) -> (i32, i32) {
    %c0_i32 = arith.constant 0 : i32
    return %arg0, %arg2 : i32, i32
  }
  func.func @transform_1(%arg0: i32, %arg1: i32, %arg2: i32) -> (i32, i32) {
    %c0_i32 = arith.constant 0 : i32
    return %arg2, %arg1 : i32, i32
  }
  func.func @transform_2(%arg0: i32, %arg1: i32, %arg2: i32) -> (i32, i32) {
    %c0_i32 = arith.constant 0 : i32
    %c0_i32_0 = arith.constant 0 : i32
    return %c0_i32, %arg1 : i32, i32
  }
  func.func @transform_3(%arg0: i32, %arg1: i32, %arg2: i32) -> (i32, i32) {
    %c0_i32 = arith.constant 0 : i32
    return %arg0, %arg1 : i32, i32
  }
}

module attributes {stable_mosaic.version = 11 : i64} {
  func.func @_matmul_kernel(%arg0: i32, %arg1: i32, %arg2: i32, %arg3: memref<16x32xbf16, #tpu.memory_space<vmem>>, %arg4: memref<32x64xbf16, #tpu.memory_space<vmem>>, %arg5: memref<1x64xf32, #tpu.memory_space<vmem>>, %arg6: memref<16x64xbf16, #tpu.memory_space<vmem>>, %arg7: memref<16x64xf32, #tpu.memory_space<vmem>>) attributes {dimension_semantics = [#tpu.dimension_semantics<parallel>, #tpu.dimension_semantics<parallel>, #tpu.dimension_semantics<arbitrary>], iteration_bounds = array<i64: 1, 1, 1>, scalar_prefetch = 0 : i64, scratch_operands = 1 : i64, tpu.core_type = #tpu.core_type<tc>, window_params = [{transform_indices = @transform_0, window_bounds = array<i64: 16, 32>}, {transform_indices = @transform_1, window_bounds = array<i64: 32, 64>}, {transform_indices = @transform_2, window_bounds = array<i64: 1, 64>}, {transform_indices = @transform_3, window_bounds = array<i64: 16, 64>}]} {
    %c0_i32 = arith.constant 0 : i32
    %0 = arith.cmpi eq, %arg2, %c0_i32 : i32
    %1 = arith.extui %0 : i1 to i32
    %c0_i32_0 = arith.constant 0 : i32
    %2 = arith.cmpi ne, %1, %c0_i32_0 : i32
    scf.if %2 {
      %cst_10 = arith.constant 0.000000e+00 : f32
      %12 = vector.broadcast %cst_10 : f32 to vector<16x64xf32>
      %c0_11 = arith.constant 0 : index
      %c0_12 = arith.constant 0 : index
      %13 = vector.load %arg7[%c0_11, %c0_12] : memref<16x64xf32, #tpu.memory_space<vmem>>, vector<16x64xf32>
      tpu.vector_store %arg7[%c0_11, %c0_12], %12 {strides = array<i32>} : memref<16x64xf32, #tpu.memory_space<vmem>>, vector<16x64xf32>,
    } else {
    }
    %c0 = arith.constant 0 : index
    %c0_1 = arith.constant 0 : index
    %3 = vector.load %arg7[%c0, %c0_1] : memref<16x64xf32, #tpu.memory_space<vmem>>, vector<16x64xf32>
    %c0_2 = arith.constant 0 : index
    %c0_3 = arith.constant 0 : index
    %4 = vector.load %arg3[%c0_2, %c0_3] : memref<16x32xbf16, #tpu.memory_space<vmem>>, vector<16x32xbf16>
    %c0_4 = arith.constant 0 : index
    %c0_5 = arith.constant 0 : index
    %5 = vector.load %arg4[%c0_4, %c0_5] : memref<32x64xbf16, #tpu.memory_space<vmem>>, vector<32x64xbf16>
    %cst = arith.constant dense<0.000000e+00> : vector<16x64xf32>
    %6 = tpu.matmul %4, %5, %cst {dimension_numbers = #tpu.dot_dimension_numbers<[1], [0], [0], [1], [0, 0, 1, 1], [], []>} : vector<16x32xbf16>, vector<32x64xbf16>, vector<16x64xf32> -> vector<16x64xf32>
    %7 = arith.addf %3, %6 : vector<16x64xf32>
    %c0_6 = arith.constant 0 : index
    %c0_7 = arith.constant 0 : index
    %8 = vector.load %arg7[%c0_6, %c0_7] : memref<16x64xf32, #tpu.memory_space<vmem>>, vector<16x64xf32>
    tpu.vector_store %arg7[%c0_6, %c0_7], %7 {strides = array<i32>} : memref<16x64xf32, #tpu.memory_space<vmem>>, vector<16x64xf32>,
    %c0_i32_8 = arith.constant 0 : i32
    %9 = arith.cmpi eq, %arg2, %c0_i32_8 : i32
    %10 = arith.extui %9 : i1 to i32
    %c0_i32_9 = arith.constant 0 : i32
    %11 = arith.cmpi ne, %10, %c0_i32_9 : i32
    scf.if %11 {
      %c0_10 = arith.constant 0 : index
      %c0_11 = arith.constant 0 : index
      %12 = vector.load %arg7[%c0_10, %c0_11] : memref<16x64xf32, #tpu.memory_space<vmem>>, vector<16x64xf32>
      %c0_12 = arith.constant 0 : index
      %c0_13 = arith.constant 0 : index
      %13 = vector.load %arg5[%c0_12, %c0_13] : memref<1x64xf32, #tpu.memory_space<vmem>>, vector<1x64xf32>
      %14 = vector.broadcast %13 : vector<1x64xf32> to vector<16x64xf32>
      %15 = arith.addf %12, %14 : vector<16x64xf32>
      %16 = arith.truncf %15 : vector<16x64xf32> to vector<16x64xbf16>
      %c0_14 = arith.constant 0 : index
      %c0_15 = arith.constant 0 : index
      %17 = vector.load %arg6[%c0_14, %c0_15] : memref<16x64xbf16, #tpu.memory_space<vmem>>, vector<16x64xbf16>
      tpu.vector_store %arg6[%c0_14, %c0_15], %16 {strides = array<i32>} : memref<16x64xbf16, #tpu.memory_space<vmem>>, vector<16x64xbf16>,
    } else {
    }
    return
  }
  func.func @transform_0(%arg0: i32, %arg1: i32, %arg2: i32) -> (i32, i32) {
    %c0_i32 = arith.constant 0 : i32
    return %arg0, %arg2 : i32, i32
  }
  func.func @transform_1(%arg0: i32, %arg1: i32, %arg2: i32) -> (i32, i32) {
    %c0_i32 = arith.constant 0 : i32
    return %arg2, %arg1 : i32, i32
  }
  func.func @transform_2(%arg0: i32, %arg1: i32, %arg2: i32) -> (i32, i32) {
    %c0_i32 = arith.constant 0 : i32
    %c0_i32_0 = arith.constant 0 : i32
    return %c0_i32, %arg1 : i32, i32
  }
  func.func @transform_3(%arg0: i32, %arg1: i32, %arg2: i32) -> (i32, i32) {
    %c0_i32 = arith.constant 0 : i32
    return %arg0, %arg1 : i32, i32
  }
}

module attributes {stable_mosaic.version = 11 : i64} {
  func.func @_matmul_kernel(%arg0: i32, %arg1: i32, %arg2: i32, %arg3: memref<16x64xbf16, #tpu.memory_space<vmem>>, %arg4: memref<64x32xbf16, #tpu.memory_space<vmem>>, %arg5: memref<1x32xf32, #tpu.memory_space<vmem>>, %arg6: memref<16x32xf32, #tpu.memory_space<vmem>>, %arg7: memref<16x32xf32, #tpu.memory_space<vmem>>, %arg8: memref<16x32xf32, #tpu.memory_space<vmem>>) attributes {dimension_semantics = [#tpu.dimension_semantics<parallel>, #tpu.dimension_semantics<parallel>, #tpu.dimension_semantics<arbitrary>], iteration_bounds = array<i64: 1, 1, 1>, scalar_prefetch = 0 : i64, scratch_operands = 1 : i64, tpu.core_type = #tpu.core_type<tc>, window_params = [{transform_indices = @transform_0, window_bounds = array<i64: 16, 64>}, {transform_indices = @transform_1, window_bounds = array<i64: 64, 32>}, {transform_indices = @transform_2, window_bounds = array<i64: 1, 32>}, {transform_indices = @transform_3, window_bounds = array<i64: 16, 32>}, {transform_indices = @transform_4, window_bounds = array<i64: 16, 32>}]} {
    %c0_i32 = arith.constant 0 : i32
    %0 = arith.cmpi eq, %arg2, %c0_i32 : i32
    %1 = arith.extui %0 : i1 to i32
    %c0_i32_0 = arith.constant 0 : i32
    %2 = arith.cmpi ne, %1, %c0_i32_0 : i32
    scf.if %2 {
      %cst_10 = arith.constant 0.000000e+00 : f32
      %12 = vector.broadcast %cst_10 : f32 to vector<16x32xf32>
      %c0_11 = arith.constant 0 : index
      %c0_12 = arith.constant 0 : index
      %13 = vector.load %arg8[%c0_11, %c0_12] : memref<16x32xf32, #tpu.memory_space<vmem>>, vector<16x32xf32>
      tpu.vector_store %arg8[%c0_11, %c0_12], %12 {strides = array<i32>} : memref<16x32xf32, #tpu.memory_space<vmem>>, vector<16x32xf32>,
    } else {
    }
    %c0 = arith.constant 0 : index
    %c0_1 = arith.constant 0 : index
    %3 = vector.load %arg8[%c0, %c0_1] : memref<16x32xf32, #tpu.memory_space<vmem>>, vector<16x32xf32>
    %c0_2 = arith.constant 0 : index
    %c0_3 = arith.constant 0 : index
    %4 = vector.load %arg3[%c0_2, %c0_3] : memref<16x64xbf16, #tpu.memory_space<vmem>>, vector<16x64xbf16>
    %c0_4 = arith.constant 0 : index
    %c0_5 = arith.constant 0 : index
    %5 = vector.load %arg4[%c0_4, %c0_5] : memref<64x32xbf16, #tpu.memory_space<vmem>>, vector<64x32xbf16>
    %cst = arith.constant dense<0.000000e+00> : vector<16x32xf32>
    %6 = tpu.matmul %4, %5, %cst {dimension_numbers = #tpu.dot_dimension_numbers<[1], [0], [0], [1], [0, 0, 1, 1], [], []>} : vector<16x64xbf16>, vector<64x32xbf16>, vector<16x32xf32> -> vector<16x32xf32>
    %7 = arith.addf %3, %6 : vector<16x32xf32>
    %c0_6 = arith.constant 0 : index
    %c0_7 = arith.constant 0 : index
    %8 = vector.load %arg8[%c0_6, %c0_7] : memref<16x32xf32, #tpu.memory_space<vmem>>, vector<16x32xf32>
    tpu.vector_store %arg8[%c0_6, %c0_7], %7 {strides = array<i32>} : memref<16x32xf32, #tpu.memory_space<vmem>>, vector<16x32xf32>,
    %c0_i32_8 = arith.constant 0 : i32
    %9 = arith.cmpi eq, %arg2, %c0_i32_8 : i32
    %10 = arith.extui %9 : i1 to i32
    %c0_i32_9 = arith.constant 0 : i32
    %11 = arith.cmpi ne, %10, %c0_i32_9 : i32
    scf.if %11 {
      %c0_10 = arith.constant 0 : index
      %c0_11 = arith.constant 0 : index
      %12 = vector.load %arg8[%c0_10, %c0_11] : memref<16x32xf32, #tpu.memory_space<vmem>>, vector<16x32xf32>
      %c0_12 = arith.constant 0 : index
      %c0_13 = arith.constant 0 : index
      %13 = vector.load %arg5[%c0_12, %c0_13] : memref<1x32xf32, #tpu.memory_space<vmem>>, vector<1x32xf32>
      %14 = vector.broadcast %13 : vector<1x32xf32> to vector<16x32xf32>
      %15 = arith.addf %12, %14 : vector<16x32xf32>
      %c0_14 = arith.constant 0 : index
      %c0_15 = arith.constant 0 : index
      %16 = vector.load %arg6[%c0_14, %c0_15] : memref<16x32xf32, #tpu.memory_space<vmem>>, vector<16x32xf32>
      %17 = arith.addf %15, %16 : vector<16x32xf32>
      %c0_16 = arith.constant 0 : index
      %c0_17 = arith.constant 0 : index
      %18 = vector.load %arg7[%c0_16, %c0_17] : memref<16x32xf32, #tpu.memory_space<vmem>>, vector<16x32xf32>
      tpu.vector_store %arg7[%c0_16, %c0_17], %17 {strides = array<i32>} : memref<16x32xf32, #tpu.memory_space<vmem>>, vector<16x32xf32>,
    } else {
    }
    return
  }
  func.func @transform_0(%arg0: i32, %arg1: i32, %arg2: i32) -> (i32, i32) {
    %c0_i32 = arith.constant 0 : i32
    return %arg0, %arg2 : i32, i32
  }
  func.func @transform_1(%arg0: i32, %arg1: i32, %arg2: i32) -> (i32, i32) {
    %c0_i32 = arith.constant 0 : i32
    return %arg2, %arg1 : i32, i32
  }
  func.func @transform_2(%arg0: i32, %arg1: i32, %arg2: i32) -> (i32, i32) {
    %c0_i32 = arith.constant 0 : i32
    %c0_i32_0 = arith.constant 0 : i32
    return %c0_i32, %arg1 : i32, i32
  }
  func.func @transform_3(%arg0: i32, %arg1: i32, %arg2: i32) -> (i32, i32) {
    %c0_i32 = arith.constant 0 : i32
    return %arg0, %arg1 : i32, i32
  }
  func.func @transform_4(%arg0: i32, %arg1: i32, %arg2: i32) -> (i32, i32) {
    %c0_i32 = arith.constant 0 : i32
    return %arg0, %arg1 : i32, i32
  }
}

module attributes {stable_mosaic.version = 11 : i64} {
  func.func @_matmul_kernel(%arg0: i32, %arg1: i32, %arg2: i32, %arg3: memref<16x32xbf16, #tpu.memory_space<vmem>>, %arg4: memref<32x64xbf16, #tpu.memory_space<vmem>>, %arg5: memref<1x64xf32, #tpu.memory_space<vmem>>, %arg6: memref<16x64xf32, #tpu.memory_space<vmem>>, %arg7: memref<16x64xf32, #tpu.memory_space<vmem>>) attributes {dimension_semantics = [#tpu.dimension_semantics<parallel>, #tpu.dimension_semantics<parallel>, #tpu.dimension_semantics<arbitrary>], iteration_bounds = array<i64: 1, 1, 1>, scalar_prefetch = 0 : i64, scratch_operands = 1 : i64, tpu.core_type = #tpu.core_type<tc>, window_params = [{transform_indices = @transform_0, window_bounds = array<i64: 16, 32>}, {transform_indices = @transform_1, window_bounds = array<i64: 32, 64>}, {transform_indices = @transform_2, window_bounds = array<i64: 1, 64>}, {transform_indices = @transform_3, window_bounds = array<i64: 16, 64>}]} {
    %c0_i32 = arith.constant 0 : i32
    %0 = arith.cmpi eq, %arg2, %c0_i32 : i32
    %1 = arith.extui %0 : i1 to i32
    %c0_i32_0 = arith.constant 0 : i32
    %2 = arith.cmpi ne, %1, %c0_i32_0 : i32
    scf.if %2 {
      %cst_10 = arith.constant 0.000000e+00 : f32
      %12 = vector.broadcast %cst_10 : f32 to vector<16x64xf32>
      %c0_11 = arith.constant 0 : index
      %c0_12 = arith.constant 0 : index
      %13 = vector.load %arg7[%c0_11, %c0_12] : memref<16x64xf32, #tpu.memory_space<vmem>>, vector<16x64xf32>
      tpu.vector_store %arg7[%c0_11, %c0_12], %12 {strides = array<i32>} : memref<16x64xf32, #tpu.memory_space<vmem>>, vector<16x64xf32>,
    } else {
    }
    %c0 = arith.constant 0 : index
    %c0_1 = arith.constant 0 : index
    %3 = vector.load %arg7[%c0, %c0_1] : memref<16x64xf32, #tpu.memory_space<vmem>>, vector<16x64xf32>
    %c0_2 = arith.constant 0 : index
    %c0_3 = arith.constant 0 : index
    %4 = vector.load %arg3[%c0_2, %c0_3] : memref<16x32xbf16, #tpu.memory_space<vmem>>, vector<16x32xbf16>
    %c0_4 = arith.constant 0 : index
    %c0_5 = arith.constant 0 : index
    %5 = vector.load %arg4[%c0_4, %c0_5] : memref<32x64xbf16, #tpu.memory_space<vmem>>, vector<32x64xbf16>
    %cst = arith.constant dense<0.000000e+00> : vector<16x64xf32>
    %6 = tpu.matmul %4, %5, %cst {dimension_numbers = #tpu.dot_dimension_numbers<[1], [0], [0], [1], [0, 0, 1, 1], [], []>} : vector<16x32xbf16>, vector<32x64xbf16>, vector<16x64xf32> -> vector<16x64xf32>
    %7 = arith.addf %3, %6 : vector<16x64xf32>
    %c0_6 = arith.constant 0 : index
    %c0_7 = arith.constant 0 : index
    %8 = vector.load %arg7[%c0_6, %c0_7] : memref<16x64xf32, #tpu.memory_space<vmem>>, vector<16x64xf32>
    tpu.vector_store %arg7[%c0_6, %c0_7], %7 {strides = array<i32>} : memref<16x64xf32, #tpu.memory_space<vmem>>, vector<16x64xf32>,
    %c0_i32_8 = arith.constant 0 : i32
    %9 = arith.cmpi eq, %arg2, %c0_i32_8 : i32
    %10 = arith.extui %9 : i1 to i32
    %c0_i32_9 = arith.constant 0 : i32
    %11 = arith.cmpi ne, %10, %c0_i32_9 : i32
    scf.if %11 {
      %c0_10 = arith.constant 0 : index
      %c0_11 = arith.constant 0 : index
      %12 = vector.load %arg7[%c0_10, %c0_11] : memref<16x64xf32, #tpu.memory_space<vmem>>, vector<16x64xf32>
      %c0_12 = arith.constant 0 : index
      %c0_13 = arith.constant 0 : index
      %13 = vector.load %arg5[%c0_12, %c0_13] : memref<1x64xf32, #tpu.memory_space<vmem>>, vector<1x64xf32>
      %14 = vector.broadcast %13 : vector<1x64xf32> to vector<16x64xf32>
      %15 = arith.addf %12, %14 : vector<16x64xf32>
      %c0_14 = arith.constant 0 : index
      %c0_15 = arith.constant 0 : index
      %16 = vector.load %arg6[%c0_14, %c0_15] : memref<16x64xf32, #tpu.memory_space<vmem>>, vector<16x64xf32>
      tpu.vector_store %arg6[%c0_14, %c0_15], %15 {strides = array<i32>} : memref<16x64xf32, #tpu.memory_space<vmem>>, vector<16x64xf32>,
    } else {
    }
    return
  }
  func.func @transform_0(%arg0: i32, %arg1: i32, %arg2: i32) -> (i32, i32) {
    %c0_i32 = arith.constant 0 : i32
    return %arg0, %arg2 : i32, i32
  }
  func.func @transform_1(%arg0: i32, %arg1: i32, %arg2: i32) -> (i32, i32) {
    %c0_i32 = arith.constant 0 : i32
    return %arg2, %arg1 : i32, i32
  }
  func.func @transform_2(%arg0: i32, %arg1: i32, %arg2: i32) -> (i32, i32) {
    %c0_i32 = arith.constant 0 : i32
    %c0_i32_0 = arith.constant 0 : i32
    return %c0_i32, %arg1 : i32, i32
  }
  func.func @transform_3(%arg0: i32, %arg1: i32, %arg2: i32) -> (i32, i32) {
    %c0_i32 = arith.constant 0 : i32
    return %arg0, %arg1 : i32, i32
  }
}

</mosaic_0001>

<bundles_post_ra>
// kernel: _lambda_.59
= control target key start
LH: loop header
LB: loop body
LE: loop exit
PB: predicated region body
PF: predicated region fallthrough
CT: control target
= control target key end

     0   :  { %vm22_vm0 = vcmask 261120   ;;  %v144_v0 = vmov 0.0   ;;  %vm145_vm1 = vmmov 0   ;;  %s202_s1 = inlined_call_operand.vmem [shape: bf16[32,32], index: 1, kind: input, shape index: {}]   ;;  %s203_s0 = inlined_call_operand.vmem [shape: bf16[16,32], index: 0, kind: input, shape index: {}]   ;;  %s204_s2 = inlined_call_operand.vmem [shape: f32[1,32], index: 2, kind: input, shape index: {}]   ;;  %s205_s3 = inlined_call_operand.vmem [shape: f32[16,32], index: 3, kind: input, shape index: {}]   ;;  %s206_s4 = inlined_call_operand.vmem [shape: f32[16,32], index: 4, kind: output, shape index: {}]  }
   0x1   :  { %131 = vmatprep.subr.bf16.mxu0 %v144_v0  ;;  %v141_v1 = vld [vmem:[%s202_s1] sm:$0xff]   ;;  %135 = vmatprep.mubr.msk.bf16.mxu0 %vm145_vm1, %v144_v0  ;;  %23 = vst.msk [vmem:[#allocation2] sm:$0xff] %vm22_vm0, %v144_v0  ;;  %24 = vst.msk [vmem:[#allocation2 + $0x8] sm:$0xff] %vm22_vm0, %v144_v0  ;;  %v142_v2 = vld [vmem:[%s202_s1 + $0x8] sm:$0xff]  }
   0x2   :  { %132 = vmatpush3.bf16.msra.mxu0 %v141_v1  ;;  %v143_v3 = vld [vmem:[%s203_s0] sm:$0xff]   ;;  %v114_v17 = vld [vmem:[%s205_s3 + $0x8] sm:$0xff] }
   0x3   :  { %133 = vmatprep.subr.bf16.mxu0 %v144_v0  ;;  %v127_v12 = vld [vmem:[%s204_s2] ss:$0 sm:$0xff] }
   0x4   :  { %v113_v14 = vld [vmem:[%s205_s3] sm:$0xff] }
   0x6   :  { %134 = vmatpush3.bf16.msra.mxu0 %v142_v2 }
   0x8   :  { %v25_v4 = vld [vmem:[#allocation2] sm:$0xff]  ;;  %v26_v6 = vld [vmem:[#allocation2 + $0x8] sm:$0xff] }
   0x9   :  { %136 = vmatmul.mubr.msk.bf16.vlgmr.msra.gmra.mrb[0].mxu0 %vm22_vm0, %v143_v3 }
  0xdc   :  { %v88_v5 = vpop.f32.mrb[0].mxu0 }
  0xdd   :  { %v95_v7 = vadd.f32 %v88_v5, %v25_v4  ;;  %v137_v8 = vpop.f32.mrb[1].mxu0 }
  0xde   :  { %v91_v9 = vpop.f32.mrb[2].mxu0 }
  0xdf   :  { %97 = vst.msk [vmem:[#allocation2] sm:$0xff] %vm22_vm0, %v95_v7  ;;  %v96_v10 = vadd.f32 %v91_v9, %v26_v6  ;;  %v138_v11 = vpop.f32.mrb[3].mxu0 }
  0xe1   :  { %98 = vst.msk [vmem:[#allocation2 + $0x8] sm:$0xff] %vm22_vm0, %v96_v10 }
  0xe6   :  { %v102_v13 = vld [vmem:[#allocation2] sm:$0xff] }
  0xe7   :  { %v111_v15 = vadd.f32 %v127_v12, %v102_v13 }
  0xe8   :  { %v103_v16 = vld [vmem:[#allocation2 + $0x8] sm:$0xff] }
  0xe9   :  { %v115_v18 = vadd.f32 %v113_v14, %v111_v15  ;;  %v112_v19 = vadd.f32 %v127_v12, %v103_v16 }
  0xeb   :  { %117 = vst.msk [vmem:[%s206_s4] sm:$0xff] %vm22_vm0, %v115_v18  ;;  %v116_v20 = vadd.f32 %v114_v17, %v112_v19 }
  0xed   :  { %118 = vst.msk [vmem:[%s206_s4 + $0x8] sm:$0xff] %vm22_vm0, %v116_v20 }

// kernel: _lambda_.57
= control target key start
LH: loop header
LB: loop body
LE: loop exit
PB: predicated region body
PF: predicated region fallthrough
CT: control target
= control target key end

     0   :  { %vm19_vm0 = vcmask 785408   ;;  %v151_v0 = vmov 0.0   ;;  %vm152_vm1 = vmmov 0   ;;  %vm47_vm2 = vcmask 261120   ;;  %s195_s1 = inlined_call_operand.vmem [shape: bf16[32,96], index: 1, kind: input, shape index: {}]   ;;  %s196_s0 = inlined_call_operand.vmem [shape: bf16[16,32], index: 0, kind: input, shape index: {}]   ;;  %s197_s2 = inlined_call_operand.vmem [shape: f32[1,96], index: 2, kind: input, shape index: {}]   ;;  %s198_s3 = inlined_call_operand.vmem [shape: bf16[16,96], index: 3, kind: output, shape index: {}]  }
   0x1   :  { %138 = vmatprep.subr.bf16.mxu0 %v151_v0  ;;  %v148_v1 = vld [vmem:[%s195_s1] sm:$0xff]   ;;  %142 = vmatprep.mubr.msk.bf16.mxu0 %vm152_vm1, %v151_v0  ;;  %20 = vst.msk [vmem:[#allocation2] sm:$0xff] %vm19_vm0, %v151_v0  ;;  %21 = vst.msk [vmem:[#allocation2 + $0x8] sm:$0xff] %vm19_vm0, %v151_v0  ;;  %v149_v2 = vld [vmem:[%s195_s1 + $0x8] sm:$0xff]   ;;  %vm119_vm3 = vcmask 781312  }
   0x2   :  { %139 = vmatpush3.bf16.msra.mxu0 %v148_v1  ;;  %v150_v3 = vld [vmem:[%s196_s0] sm:$0xff]  }
   0x3   :  { %140 = vmatprep.subr.bf16.mxu0 %v151_v0  ;;  %v130_v12 = vld [vmem:[%s197_s2] ss:$0 sm:$0xff] }
   0x6   :  { %141 = vmatpush3.bf16.msra.mxu0 %v149_v2 }
   0x8   :  { %v22_v4 = vld [vmem:[#allocation2] sm:$0xff]  ;;  %v23_v6 = vld [vmem:[#allocation2 + $0x8] sm:$0xff] }
   0x9   :  { %143 = vmatmul.mubr.msk.bf16.vlgmr.msra.gmra.mrb[0].mxu0 %vm47_vm2, %v150_v3 }
  0xdc   :  { %v85_v5 = vpop.f32.mrb[0].mxu0 }
  0xdd   :  { %v92_v7 = vadd.f32 %v85_v5, %v22_v4  ;;  %v144_v8 = vpop.f32.mrb[1].mxu0 }
  0xde   :  { %v88_v9 = vpop.f32.mrb[2].mxu0 }
  0xdf   :  { %95 = vst.msk [vmem:[#allocation2] sm:$0xff] %vm19_vm0, %v92_v7  ;;  %v93_v10 = vadd.f32 %v88_v9, %v23_v6  ;;  %v145_v11 = vpop.f32.mrb[3].mxu0 }
  0xe1   :  { %96 = vst.msk [vmem:[#allocation2 + $0x8] sm:$0xff] %vm19_vm0, %v93_v10 }
  0xe6   :  { %v100_v13 = vld [vmem:[#allocation2] sm:$0xff] }
  0xe7   :  { %v109_v14 = vadd.f32 %v130_v12, %v100_v13 }
  0xe8   :  { %v101_v15 = vld [vmem:[#allocation2 + $0x8] sm:$0xff] }
  0xe9   :  { %v133_v16 = vpack.c.bf16 %v109_v14, %v109_v14  ;;  %v110_v17 = vadd.f32 %v130_v12, %v101_v15 }
  0xeb   :  { %120 = vst.msk [vmem:[%s198_s3] sm:$0xf] %vm119_vm3, %v133_v16  ;;  %v134_v18 = vpack.c.bf16 %v110_v17, %v110_v17 }
  0xed   :  { %121 = vst.msk [vmem:[%s198_s3 + $0x4] sm:$0xf] %vm119_vm3, %v134_v18 }

// kernel: _lambda_.56
= control target key start
LH: loop header
LB: loop body
LE: loop exit
PB: predicated region body
PF: predicated region fallthrough
CT: control target
= control target key end

     0   :  { %vm16_vm0 = vcmask 261120   ;;  %vm70_vm1 = vcmask 257024   ;;  %s129_s0 = inlined_call_operand.vmem [shape: f32[16,32], index: 0, kind: input, shape index: {}]   ;;  %s130_s1 = inlined_call_operand.vmem [shape: f32[1,32], index: 1, kind: input, shape index: {}]   ;;  %s131_s2 = inlined_call_operand.vmem [shape: f32[1,32], index: 2, kind: input, shape index: {}]   ;;  %s132_s3 = inlined_call_operand.vmem [shape: bf16[16,32], index: 3, kind: output, shape index: {}]  }
   0x1   :  { %v14_v0 = vld [vmem:[%s129_s0] sm:$0xff]  ;;  %v15_v1 = vld [vmem:[%s129_s0 + $0x8] sm:$0xff] }
   0x2   :  { %v17_v2 = vsel %vm16_vm0, %v14_v0, 0.0  ;;  %v20_v3 = vsel %vm16_vm0, %v15_v1, 0.0  ;;  %v77_v21 = vld [vmem:[%s130_s1] ss:$0 sm:$0xff] }
   0x3   :  { %18 = vadd.xlane.f32.xlu0 %v17_v2  ;;  %v78_v23 = vld [vmem:[%s131_s2] ss:$0 sm:$0xff] }
   0x7   :  { %21 = vadd.xlane.f32.xlu0 %v20_v3 }
  0x90   :  { %v19_v4 = vpop.xlane.xlu0 %18 }
  0x91   :  { %v24_v5 = vmul.f32 0.03125, %v19_v4 }
  0x93   :  { %v26_v6 = vsub.f32 %v14_v0, %v24_v5 }
  0x94   :  { %v22_v7 = vpop.xlane.xlu0 %21 }
  0x95   :  { %v25_v8 = vmul.f32 0.03125, %v22_v7  ;;  %v28_v9 = vmul.f32 %v26_v6, %v26_v6 }
  0x97   :  { %v27_v10 = vsub.f32 %v15_v1, %v25_v8  ;;  %v30_v11 = vsel %vm16_vm0, %v28_v9, 0.0 }
  0x98   :  { %31 = vadd.xlane.f32.xlu1 %v30_v11 }
  0x99   :  { %v29_v12 = vmul.f32 %v27_v10, %v27_v10 }
  0x9b   :  { %v33_v13 = vsel %vm16_vm0, %v29_v12, 0.0 }
  0x9c   :  { %34 = vadd.xlane.f32.xlu1 %v33_v13 }
 0x125   :  { %v32_v14 = vpop.xlane.xlu1 %31 }
 0x126   :  { %v36_v15 = vmul.f32 0.03125, %v32_v14 }
 0x128   :  { %v38_v16 = vadd.f32 1e-05, %v36_v15 }
 0x129   :  { %v35_v17 = vpop.xlane.xlu1 %34 }
 0x12a   :  { %83 = vrsqrt.f32 %v38_v16  ;;  %v37_v18 = vmul.f32 0.03125, %v35_v17 }
 0x12c   :  { %v39_v19 = vadd.f32 1e-05, %v37_v18 }
 0x12e   :  { %85 = vrsqrt.f32 %v39_v19 }
 0x134   :  { %v84_v20 = vpop.eup %83 }
 0x135   :  { %v42_v22 = vmul.f32 %v84_v20, %v26_v6 }
 0x137   :  { %v51_v24 = vmul.f32 %v77_v21, %v42_v22 }
 0x138   :  { %v86_v25 = vpop.eup %85 }
 0x139   :  { %v60_v26 = vadd.f32 %v78_v23, %v51_v24  ;;  %v43_v27 = vmul.f32 %v86_v25, %v27_v10 }
 0x13b   :  { %v81_v28 = vpack.c.bf16 %v60_v26, %v60_v26  ;;  %v52_v29 = vmul.f32 %v77_v21, %v43_v27 }
 0x13d   :  { %71 = vst.msk [vmem:[%s132_s3] sm:$0xf] %vm70_vm1, %v81_v28  ;;  %v61_v30 = vadd.f32 %v78_v23, %v52_v29 }
 0x13f   :  { %v82_v31 = vpack.c.bf16 %v61_v30, %v61_v30 }
 0x141   :  { %72 = vst.msk [vmem:[%s132_s3 + $0x4] sm:$0xf] %vm70_vm1, %v82_v31 }

// kernel: _lambda_.61
= control target key start
LH: loop header
LB: loop body
LE: loop exit
PB: predicated region body
PF: predicated region fallthrough
CT: control target
= control target key end

     0   :  { %vm19_vm0 = vcmask 261120   ;;  %v150_v0 = vmov 0.0   ;;  %vm151_vm1 = vmmov 0   ;;  %vm118_vm2 = vcmask 257024   ;;  %s195_s1 = inlined_call_operand.vmem [shape: bf16[32,32], index: 1, kind: input, shape index: {}]   ;;  %s196_s0 = inlined_call_operand.vmem [shape: bf16[16,32], index: 0, kind: input, shape index: {}]   ;;  %s197_s2 = inlined_call_operand.vmem [shape: f32[1,32], index: 2, kind: input, shape index: {}]   ;;  %s198_s3 = inlined_call_operand.vmem [shape: bf16[16,32], index: 3, kind: output, shape index: {}]  }
   0x1   :  { %137 = vmatprep.subr.bf16.mxu0 %v150_v0  ;;  %v147_v1 = vld [vmem:[%s195_s1] sm:$0xff]   ;;  %141 = vmatprep.mubr.msk.bf16.mxu0 %vm151_vm1, %v150_v0  ;;  %20 = vst.msk [vmem:[#allocation2] sm:$0xff] %vm19_vm0, %v150_v0  ;;  %21 = vst.msk [vmem:[#allocation2 + $0x8] sm:$0xff] %vm19_vm0, %v150_v0  ;;  %v148_v2 = vld [vmem:[%s195_s1 + $0x8] sm:$0xff]  }
   0x2   :  { %138 = vmatpush3.bf16.msra.mxu0 %v147_v1  ;;  %v149_v3 = vld [vmem:[%s196_s0] sm:$0xff]  }
   0x3   :  { %139 = vmatprep.subr.bf16.mxu0 %v150_v0  ;;  %v129_v12 = vld [vmem:[%s197_s2] ss:$0 sm:$0xff] }
   0x6   :  { %140 = vmatpush3.bf16.msra.mxu0 %v148_v2 }
   0x8   :  { %v22_v4 = vld [vmem:[#allocation2] sm:$0xff]  ;;  %v23_v6 = vld [vmem:[#allocation2 + $0x8] sm:$0xff] }
   0x9   :  { %142 = vmatmul.mubr.msk.bf16.vlgmr.msra.gmra.mrb[0].mxu0 %vm19_vm0, %v149_v3 }
  0xdc   :  { %v85_v5 = vpop.f32.mrb[0].mxu0 }
  0xdd   :  { %v92_v7 = vadd.f32 %v85_v5, %v22_v4  ;;  %v143_v8 = vpop.f32.mrb[1].mxu0 }
  0xde   :  { %v88_v9 = vpop.f32.mrb[2].mxu0 }
  0xdf   :  { %94 = vst.msk [vmem:[#allocation2] sm:$0xff] %vm19_vm0, %v92_v7  ;;  %v93_v10 = vadd.f32 %v88_v9, %v23_v6  ;;  %v144_v11 = vpop.f32.mrb[3].mxu0 }
  0xe1   :  { %95 = vst.msk [vmem:[#allocation2 + $0x8] sm:$0xff] %vm19_vm0, %v93_v10 }
  0xe6   :  { %v99_v13 = vld [vmem:[#allocation2] sm:$0xff] }
  0xe7   :  { %v108_v14 = vadd.f32 %v129_v12, %v99_v13 }
  0xe8   :  { %v100_v15 = vld [vmem:[#allocation2 + $0x8] sm:$0xff] }
  0xe9   :  { %v132_v16 = vpack.c.bf16 %v108_v14, %v108_v14  ;;  %v109_v17 = vadd.f32 %v129_v12, %v100_v15 }
  0xeb   :  { %119 = vst.msk [vmem:[%s198_s3] sm:$0xf] %vm118_vm2, %v132_v16  ;;  %v133_v18 = vpack.c.bf16 %v109_v17, %v109_v17 }
  0xed   :  { %120 = vst.msk [vmem:[%s198_s3 + $0x4] sm:$0xf] %vm118_vm2, %v133_v18 }

// kernel: _lambda_.46
= control target key start
LH: loop header
LB: loop body
LE: loop exit
PB: predicated region body
PF: predicated region fallthrough
CT: control target
= control target key end

     0   :  { %vm19_vm0 = vcmask 523264   ;;  %v153_v0 = vmov 0.0   ;;  %vm154_vm1 = vmmov 0   ;;  %vm47_vm2 = vcmask 261120   ;;  %s197_s1 = inlined_call_operand.vmem [shape: bf16[32,64], index: 1, kind: input, shape index: {}]   ;;  %s198_s0 = inlined_call_operand.vmem [shape: bf16[16,32], index: 0, kind: input, shape index: {}]   ;;  %s199_s2 = inlined_call_operand.vmem [shape: f32[1,64], index: 2, kind: input, shape index: {}]   ;;  %s200_s3 = inlined_call_operand.vmem [shape: bf16[16,64], index: 3, kind: output, shape index: {}]  }
   0x1   :  { %140 = vmatprep.subr.bf16.mxu0 %v153_v0  ;;  %v150_v1 = vld [vmem:[%s197_s1] sm:$0xff]   ;;  %144 = vmatprep.mubr.msk.bf16.mxu0 %vm154_vm1, %v153_v0  ;;  %20 = vst.msk [vmem:[#allocation2] sm:$0xff] %vm19_vm0, %v153_v0  ;;  %21 = vst.msk [vmem:[#allocation2 + $0x8] sm:$0xff] %vm19_vm0, %v153_v0  ;;  %v151_v2 = vld [vmem:[%s197_s1 + $0x8] sm:$0xff]   ;;  %vm121_vm3 = vcmask 519168  }
   0x2   :  { %141 = vmatpush3.bf16.msra.mxu0 %v150_v1  ;;  %v152_v3 = vld [vmem:[%s198_s0] sm:$0xff]  }
   0x3   :  { %142 = vmatprep.subr.bf16.mxu0 %v153_v0  ;;  %v132_v12 = vld [vmem:[%s199_s2] ss:$0 sm:$0xff] }
   0x6   :  { %143 = vmatpush3.bf16.msra.mxu0 %v151_v2 }
   0x8   :  { %v22_v4 = vld [vmem:[#allocation2] sm:$0xff]  ;;  %v23_v6 = vld [vmem:[#allocation2 + $0x8] sm:$0xff] }
   0x9   :  { %145 = vmatmul.mubr.msk.bf16.vlgmr.msra.gmra.mrb[0].mxu0 %vm47_vm2, %v152_v3 }
  0xdc   :  { %v85_v5 = vpop.f32.mrb[0].mxu0 }
  0xdd   :  { %v92_v7 = vadd.f32 %v85_v5, %v22_v4  ;;  %v146_v8 = vpop.f32.mrb[1].mxu0 }
  0xde   :  { %v88_v9 = vpop.f32.mrb[2].mxu0 }
  0xdf   :  { %95 = vst.msk [vmem:[#allocation2] sm:$0xff] %vm19_vm0, %v92_v7  ;;  %v93_v10 = vadd.f32 %v88_v9, %v23_v6  ;;  %v147_v11 = vpop.f32.mrb[3].mxu0 }
  0xe1   :  { %96 = vst.msk [vmem:[#allocation2 + $0x8] sm:$0xff] %vm19_vm0, %v93_v10 }
  0xe6   :  { %v100_v13 = vld [vmem:[#allocation2] sm:$0xff] }
  0xe7   :  { %v109_v14 = vadd.f32 %v132_v12, %v100_v13 }
  0xe8   :  { %v101_v15 = vld [vmem:[#allocation2 + $0x8] sm:$0xff] }
  0xe9   :  { %v111_v16 = vmax.f32 %v109_v14, 0.0  ;;  %v110_v17 = vadd.f32 %v132_v12, %v101_v15 }
  0xeb   :  { %v135_v18 = vpack.c.bf16 %v111_v16, %v111_v16  ;;  %v112_v19 = vmax.f32 %v110_v17, 0.0 }
  0xed   :  { %122 = vst.msk [vmem:[%s200_s3] sm:$0xf] %vm121_vm3, %v135_v18  ;;  %v136_v20 = vpack.c.bf16 %v112_v19, %v112_v19 }
  0xef   :  { %123 = vst.msk [vmem:[%s200_s3 + $0x4] sm:$0xf] %vm121_vm3, %v136_v20 }

// kernel: _lambda_.58
= control target key start
LH: loop header
LB: loop body
LE: loop exit
PB: predicated region body
PF: predicated region fallthrough
CT: control target
= control target key end

     0   :  { %s3072_s15 = smov 0   ;;  %s3074_s16 = smov 0   ;;  %s3826_s0 = inlined_call_operand.vmem [shape: bf16[2,8,4,8], index: 0, kind: input, shape index: {}]   ;;  %s3827_s1 = inlined_call_operand.vmem [shape: bf16[2,8,4,8], index: 1, kind: input, shape index: {}]   ;;  %s3828_s2 = inlined_call_operand.vmem [shape: bf16[2,8,4,8], index: 2, kind: input, shape index: {}]   ;;  %s3829_s3 = inlined_call_operand.vmem [shape: s32[2,1,8], index: 3, kind: input, shape index: {}]   ;;  %s3830_s4 = inlined_call_operand.vmem [shape: bf16[2,8,4,8], index: 4, kind: output, shape index: {}]  }
   0x1   :  { %s3076_s17 = smov 0  }
   0x2 LB: > { %s33_s18 = sadd.s32 1, %s3035_s16  ;;  %p2762_p0 = scmp.ge.s32.totalorder %s3039_s17, 1  ;;  %s3039_s17 = sphi %s3076_s17, %s14_s17   ;;  %s3035_s16 = sphi %s3074_s16, %s3845_s16   ;;  %s3031_s15 = sphi %s3072_s15, %s3844_s15  }
   0x3   : > { %p35_p1 = scmp.ge.s32.totalorder %s33_s18, 2  ;;  %p237_p2 = scmp.lt.s32.totalorder %s3039_s17, 3 }
   0x5   : > { %s3847_s18 = smov (%p35_p1, %s33_s18), 0  ;;  %p238_p3 = pnand %p2762_p0, %p237_p2 }
   0x6   : > { %p296_p4 = scmp.lt.s32.totalorder (!%p238_p3), %s3031_s15, 1  ;;  %vm355_vm0 = vcmask (!%p238_p3), 64512   ;;  %v3041_v0 = vmov (!%p238_p3), 0.0   ;;  %vm3042_vm1 = vmmov (!%p238_p3), 0   ;;  %vm477_vm2 = vcmask (!%p238_p3), 1041409  }
   0x7   : > { %241 = sbr.rel (%p238_p3) target bundleno = 1389 (0x56d), region = 36  ;;  %2913 = vmatprep.subr.bf16.mxu0 (!%p238_p3), %v3041_v0  ;;  %356 = vst.msk [vmem:[#allocation4] sm:$0xff] (!%p238_p3), %vm355_vm0, %v3041_v0  ;;  %357 = vst.msk [vmem:[#allocation4 + $0x8] sm:$0xff] (!%p238_p3), %vm355_vm0, %v3041_v0  ;;  %2919 = vmatprep.subr.bf16.mxu1 (!%p238_p3), %v3041_v0  ;;  %vm480_vm3 = vcmask (!%p238_p3), 1042434   ;;  %vm483_vm4 = vcmask (!%p238_p3), 1043459   ;;  %vm486_vm5 = vcmask (!%p238_p3), 1044484  }
   0x8   : > { %358 = vst.msk [vmem:[#allocation4 + $0x10] sm:$0xff] (!%p238_p3), %vm355_vm0, %v3041_v0  ;;  %359 = vst.msk [vmem:[#allocation4 + $0x18] sm:$0xff] (!%p238_p3), %vm355_vm0, %v3041_v0  ;;  %2915 = vmatprep.mubr.msk.bf16.mxu0 (!%p238_p3), %vm3042_vm1, %v3041_v0  ;;  %2921 = vmatprep.mubr.msk.bf16.mxu1 (!%p238_p3), %vm3042_vm1, %v3041_v0  ;;  %vm489_vm6 = vcmask (!%p238_p3), 1045509   ;;  %vm492_vm7 = vcmask (!%p238_p3), 1046534   ;;  %vm495_vm8 = vcmask (!%p238_p3), 1047559   ;;  %vm346_vm9 = vcmask (!%p238_p3), 7168  }
   0x9   : > { %351 = vst.msk [vmem:[#allocation3] sm:$0xff] (!%p238_p3), %vm346_vm9, %v3041_v0  ;;  %352 = vst.msk [vmem:[#allocation3 + $0x8] sm:$0xff] (!%p238_p3), %vm346_vm9, %v3041_v0  ;;  %vm756_vm14 = vcmask (!%p238_p3), 1043456   ;;  %vm2169_vm15 = vcmask (!%p238_p3), 57344  }
   0xa   : > { %353 = vst.msk [vmem:[#allocation3 + $0x10] sm:$0xff] (!%p238_p3), %vm346_vm9, %v3041_v0  ;;  %354 = vst.msk [vmem:[#allocation3 + $0x18] sm:$0xff] (!%p238_p3), %vm346_vm9, %v3041_v0 }
   0xe   : > { %s3849_s15 = smov (!%p296_p4, %s3031_s15), 1 }
   0xf   : > { %s3107_s19 = sshll.u32 %s3849_s15, 4  ;;  %s330_s28 = scalar_lea.vmem %s3829_s3, %s3849_s15 }
  0x10   : > { %s3113_s22 = scalar_lea.vmem %s3827_s1, %s3107_s19  ;;  %s3155_s25 = scalar_lea.vmem %s3826_s0, %s3107_s19 }
  0x11   : > { %v3116_v1 = vld.sshfl [vmem:[%s3113_s22] sm:$0x1 pattern:$0x76325410]  ;;  %s3270_s5 = scalar_lea.vmem %s3828_s2, %s3107_s19  ;;  %s3618_s8 = scalar_lea.vmem %s3830_s4, %s3107_s19 }
  0x12   : > { %v3119_v2 = vld.sshfl [vmem:[%s3113_s22 + $0x2] sm:$0x1 pattern:$0x76325410]  ;;  %v562_v4 = vunpack.c.l.b16 %v3116_v1 }
  0x13   : > { %v3122_v3 = vld.sshfl [vmem:[%s3113_s22 + $0x4] sm:$0x1 pattern:$0x76325410]  ;;  %v563_v5 = vunpack.c.l.b16 %v3119_v2 }
  0x14   : > { %v3127_v6 = vld.sshfl [vmem:[%s3113_s22 + $0x6] sm:$0x1 pattern:$0x76325410]  ;;  %v564_v7 = vunpack.c.l.b16 %v3122_v3 }
  0x15   : > { %v3131_v8 = vld.sshfl [vmem:[%s3113_s22 + $0x8] sm:$0x1 pattern:$0x76325410]  ;;  %v565_v9 = vunpack.c.l.b16 %v3127_v6  ;;  %v570_v10 = vrot.slane %v563_v5, 7 }
  0x16   : > { %v3137_v11 = vld.sshfl [vmem:[%s3113_s22 + $0xa] sm:$0x1 pattern:$0x76325410]  ;;  %v566_v12 = vunpack.c.l.b16 %v3131_v8  ;;  %v572_v13 = vrot.slane %v564_v7, 6 }
  0x17   : > { %v3143_v14 = vld.sshfl [vmem:[%s3113_s22 + $0xc] sm:$0x1 pattern:$0x76325410]  ;;  %v567_v15 = vunpack.c.l.b16 %v3137_v11  ;;  %v571_v16 = vsel %vm477_vm2, %v570_v10, %v562_v4  ;;  %v574_v17 = vrot.slane %v565_v9, 5  ;;  %v3043_v10 = vmov 0  }
  0x18   : > { %v3158_v18 = vld.sshfl [vmem:[%s3113_s22 + $0xe] sm:$0x1 pattern:$0x76325410]  ;;  %v568_v19 = vunpack.c.l.b16 %v3143_v14  ;;  %v573_v20 = vsel %vm480_vm3, %v572_v13, %v571_v16  ;;  %v576_v21 = vrot.slane %v566_v12, 4  ;;  %2991 = vset.pattern.permute.xlu0 %v3043_v10  ;;  %2992 = vset.pattern.permute.xlu1 %v3043_v10  ;;  %v363_v16 = vlaneseq }
  0x19   : > { %v569_v22 = vunpack.c.l.b16 %v3158_v18  ;;  %v575_v23 = vsel %vm483_vm4, %v574_v17, %v573_v20  ;;  %v578_v24 = vrot.slane %v567_v15, 3  ;;  %v3169_v25 = vld.sshfl [vmem:[%s3155_s25] sm:$0x1 pattern:$0x76325410]  ;;  %v992_v3 = vrot.slane %v566_v12, 5 }
  0x1a   : > { %v577_v26 = vsel %vm486_vm5, %v576_v21, %v575_v23  ;;  %v580_v27 = vrot.slane %v568_v19, 2  ;;  %v3175_v28 = vld.sshfl [vmem:[%s3155_s25 + $0x2] sm:$0x1 pattern:$0x76325410]  ;;  %v468_v32 = vunpack.c.l.b16 %v3169_v25  ;;  %v3252_v20 = vshrl.u32 %v363_v16, 7 }
  0x1b   : > { %v579_v29 = vsel %vm489_vm6, %v578_v24, %v577_v26  ;;  %v582_v30 = vrot.slane %v569_v22, 1  ;;  %v3181_v31 = vld.sshfl [vmem:[%s3155_s25 + $0x4] sm:$0x1 pattern:$0x76325410]  ;;  %v469_v33 = vunpack.c.l.b16 %v3175_v28  ;;  %v375_v26 = vand.u32 127, %v363_v16 }
  0x1c   : > { %v581_v34 = vsel %vm492_vm7, %v580_v27, %v579_v29  ;;  %v3187_v35 = vld.sshfl [vmem:[%s3155_s25 + $0x6] sm:$0x1 pattern:$0x76325410]  ;;  %v470_v36 = vunpack.c.l.b16 %v3181_v31  ;;  %v3044_v13 = vmov -1e+30  }
  0x1d   : > { %v583_v37 = vsel %vm495_vm8, %v582_v30, %v581_v34  ;;  %v3192_v38 = vld.sshfl [vmem:[%s3155_s25 + $0x8] sm:$0x1 pattern:$0x76325410]  ;;  %v471_v39 = vunpack.c.l.b16 %v3187_v35  ;;  %v476_v40 = vrot.slane %v469_v33, 7  ;;  %347 = vst.msk [vmem:[#allocation2] sm:$0xff] %vm346_vm9, %v3044_v13  ;;  %vm378_vm12 = vcmp.le.s32.totalorder %v375_v26, %v3252_v20 }
  0x1e   : > { %v584_v41 = vpack.c.b16 %v583_v37, %v583_v37  ;;  %v3198_v42 = vld.sshfl [vmem:[%s3155_s25 + $0xa] sm:$0x1 pattern:$0x76325410]  ;;  %v472_v43 = vunpack.c.l.b16 %v3192_v38  ;;  %v479_v44 = vrot.slane %v470_v36, 6  ;;  %348 = vst.msk [vmem:[#allocation2 + $0x8] sm:$0xff] %vm346_vm9, %v3044_v13 }
  0x1f   : > { %v3204_v45 = vld.sshfl [vmem:[%s3155_s25 + $0xc] sm:$0x1 pattern:$0x76325410]  ;;  %v473_v46 = vunpack.c.l.b16 %v3198_v42  ;;  %v478_v47 = vsel %vm477_vm2, %v476_v40, %v468_v32  ;;  %v482_v48 = vrot.slane %v471_v39, 5  ;;  %349 = vst.msk [vmem:[#allocation2 + $0x10] sm:$0xff] %vm346_vm9, %v3044_v13 }
  0x20   : > { %v590_v49 = vsel %vm355_vm0, %v584_v41, 0  ;;  %v3214_v50 = vld.sshfl [vmem:[%s3155_s25 + $0xe] sm:$0x1 pattern:$0x76325410]  ;;  %v474_v51 = vunpack.c.l.b16 %v3204_v45  ;;  %v481_v52 = vsel %vm480_vm3, %v479_v44, %v478_v47  ;;  %v485_v53 = vrot.slane %v472_v43, 4 }
  0x21   : > { %2914 = vmatpush3.bf16.xpose.msra.mxu0 %v590_v49  ;;  %v475_v54 = vunpack.c.l.b16 %v3214_v50  ;;  %v484_v55 = vsel %vm483_vm4, %v482_v48, %v481_v52  ;;  %v488_v56 = vrot.slane %v473_v46, 3  ;;  %350 = vst.msk [vmem:[#allocation2 + $0x18] sm:$0xff] %vm346_vm9, %v3044_v13  ;;  %v360_v17 = vld [vmem:[%s330_s28] sm:$0x1]  ;;  %v365_v21 = vsub.s32 0, %v3252_v20 }
  0x22   : > { %v487_v57 = vsel %vm486_vm5, %v485_v53, %v484_v55  ;;  %v491_v58 = vrot.slane %v474_v51, 2  ;;  %2931 = vmatprep.subr.bf16.mxu0 %v3041_v0  ;;  %vm361_vm10 = vcmp.gt.s32.totalorder %v360_v17, 0  ;;  %v3273_v47 = vld.sshfl [vmem:[%s3270_s5 + $0x2] sm:$0x1 pattern:$0x76325410] }
  0x23   : > { %v490_v59 = vsel %vm489_vm6, %v488_v56, %v487_v57  ;;  %v494_v60 = vrot.slane %v475_v54, 1  ;;  %v362_v23 = vsel %vm361_vm10, 1, %v3043_v10  ;;  %v3278_v49 = vld.sshfl [vmem:[%s3270_s5 + $0x4] sm:$0x1 pattern:$0x76325410]  ;;  %v731_v52 = vunpack.c.l.b16 %v3273_v47 }
  0x24   : > { %v493_v61 = vsel %vm492_vm7, %v491_v58, %v490_v59  ;;  %v366_v24 = vrot.slane %v362_v23, %v365_v21  ;;  %v3275_v48 = vld [vmem:[#allocation2] sm:$0xff]  ;;  %v732_v55 = vunpack.c.l.b16 %v3278_v49  ;;  %v3301_v10 = vld.sshfl [vmem:[%s3270_s5 + $0xa] sm:$0x1 pattern:$0x76325410]  ;;  %v899_v2 = vrot.slane %v468_v32, 1 }
  0x25   : > { %v496_v62 = vsel %vm495_vm8, %v494_v60, %v493_v61  ;;  %v3282_v53 = vld.sshfl [vmem:[%s3270_s5] sm:$0x1 pattern:$0x76325410]  ;;  %v738_v59 = vrot.slane %v731_v52, 7  ;;  %v735_v23 = vunpack.c.l.b16 %v3301_v10  ;;  %v901_v25 = vrot.slane %v470_v36, 7 }
  0x26   : > { %v497_v63 = vpack.c.b16 %v496_v62, %v496_v62  ;;  %vm367_vm11 = vcmp.eq.s32.totalorder %v366_v24, 1  ;;  %v3286_v57 = vld.sshfl [vmem:[%s3270_s5 + $0x6] sm:$0x1 pattern:$0x76325410]  ;;  %v730_v58 = vunpack.c.l.b16 %v3282_v53  ;;  %v909_v42 = vrot.slane %v474_v51, 3 }
  0x27   : > { %vm3256_vm13 = vmand %vm367_vm11, %vm378_vm12  ;;  %v3295_v61 = vld.sshfl [vmem:[%s3270_s5 + $0x8] sm:$0x1 pattern:$0x76325410]  ;;  %v733_v62 = vunpack.c.l.b16 %v3286_v57  ;;  %v1163_v49 = vrot.slane %v735_v23, 4 }
  0x28   : > { %2916 = vmatmul.mubr.msk.bf16.vlgmr.msra.gmra.mrb[0].mxu0 %vm355_vm0, %v497_v63  ;;  %v740_v63 = vrot.slane %v732_v55, 6  ;;  %v3831_v13 = vunpack.c.l.b16 %v3295_v61  ;;  %v739_v16 = vsel %vm477_vm2, %v738_v59, %v730_v58  ;;  %v3313_v21 = vld.sshfl [vmem:[%s3270_s5 + $0xc] sm:$0x1 pattern:$0x76325410]  ;;  %v1155_v29 = vrot.slane %v730_v58, 1 }
  0x29   : > { %2933 = vmatprep.mubr.msk.bf16.mxu0 %vm3042_vm1, %v3041_v0  ;;  %v742_v26 = vrot.slane %v733_v62, 5  ;;  %v3368_v12 = vld.sshfl [vmem:[%s3155_s25] sm:$0x2 pattern:$0x76325410] }
  0x2a   : > { %v741_v24 = vsel %vm480_vm3, %v740_v63, %v739_v16  ;;  %v3405_v35 = vld.sshfl [vmem:[%s3155_s25 + $0x6] sm:$0x2 pattern:$0x76325410] }
  0x2b   : > { %v2827_v38 = vld.sshfl [vmem:[%s3155_s25 + $0x8] sm:$0x2 pattern:$0x76325410] }
  0xfb   : > { %v626_v27 = vpop.f32.mrb[0].mxu0 }
  0xfc   : > { %v632_v30 = vmul.f32 0.35355338, %v626_v27  ;;  %v2917_v34 = vpop.f32.mrb[1].mxu0 }
  0xfd   : > { %v629_v37 = vpop.f32.mrb[2].mxu0  ;;  %v3320_v27 = vld.sshfl [vmem:[%s3270_s5 + $0xe] sm:$0x1 pattern:$0x76325410]  ;;  %v744_v34 = vrot.slane %v3831_v13, 4 }
  0xfe   : > { %v2918_v40 = vpop.f32.mrb[3].mxu0  ;;  %v3262_v41 = vsel %vm3256_vm13, %v632_v30, -1e+09  ;;  %v736_v30 = vunpack.c.l.b16 %v3313_v21  ;;  %v737_v37 = vunpack.c.l.b16 %v3320_v27  ;;  %v3537_v21 = vld [vmem:[#allocation2 + $0x18] sm:$0xff] }
  0xff   : > { %v635_v44 = vsel %vm355_vm0, %v3262_v41, -inf  ;;  %v743_v40 = vsel %vm483_vm4, %v742_v26, %v741_v24 }
 0x100   : > { %636 = vmax.xlane.f32.xlu0 %v635_v44  ;;  %v746_v44 = vrot.slane %v735_v23, 3  ;;  %v748_v59 = vrot.slane %v736_v30, 2  ;;  %v750_v16 = vrot.slane %v737_v37, 1 }
 0x18d   : > { %v637_v56 = vpop.xlane.xlu0 %636 }
 0x18e   : > { %v3292_v60 = vmax.f32 %v3275_v48, %v637_v56  ;;  %v745_v56 = vsel %vm486_vm5, %v744_v34, %v743_v40  ;;  %v986_v34 = vrot.slane %v562_v4, 1  ;;  %v988_v40 = vrot.slane %v564_v7, 7  ;;  %v3357_v7 = vld.sshfl [vmem:[%s3113_s22 + $0x6] sm:$0x2 pattern:$0x76325410] }
 0x18f   : > { %v747_v63 = vsel %vm489_vm6, %v746_v44, %v745_v56  ;;  %v2831_v44 = vld.sshfl [vmem:[%s3113_s22] sm:$0x2 pattern:$0x76325410]  ;;  %v990_v56 = vrot.slane %v565_v9, 6  ;;  %v994_v9 = vrot.slane %v567_v15, 4  ;;  %v1397_v8 = vunpack.c.l.b16 %v3357_v7 }
 0x190   : > { %802 = vst.msk [vmem:[#allocation2] sm:$0xff] %vm346_vm9, %v3292_v60  ;;  %644 = vperm.xlu0 %2991, %v3292_v60   ;;  %v749_v17 = vsel %vm492_vm7, %v748_v59, %v747_v63  ;;  %v1394_v63 = vunpack.c.l.b16 %v2831_v44 }
 0x191   : > { %v751_v13 = vsel %vm495_vm8, %v750_v16, %v749_v17  ;;  %v987_v17 = vsel %vm477_vm2, %v563_v5, %v986_v34  ;;  %v2833_v5 = vld.sshfl [vmem:[%s3113_s22 + $0x4] sm:$0x2 pattern:$0x76325410]  ;;  %v1406_v28 = vrot.slane %v1397_v8, 7 }
 0x192   : > { %v752_v24 = vpack.c.b16 %v751_v13, %v751_v13  ;;  %v2832_v13 = vld.sshfl [vmem:[%s3113_s22 + $0x2] sm:$0x2 pattern:$0x76325410]  ;;  %v989_v59 = vsel %vm480_vm3, %v988_v40, %v987_v17  ;;  %v1402_v6 = vrot.slane %v1394_v63, 2  ;;  %v1396_v32 = vunpack.c.l.b16 %v2833_v5 }
 0x193   : > { %v1395_v1 = vunpack.c.l.b16 %v2832_v13  ;;  %v991_v4 = vsel %vm483_vm4, %v990_v56, %v989_v59  ;;  %v2824_v34 = vld.sshfl [vmem:[%s3155_s25 + $0x2] sm:$0x2 pattern:$0x76325410]  ;;  %v900_v40 = vsel %vm477_vm2, %v469_v33, %v899_v2  ;;  %v996_v17 = vrot.slane %v568_v19, 3 }
 0x194   : > { %v758_v26 = vsel %vm756_vm14, %v752_v24, 0  ;;  %v3363_v24 = vld.sshfl [vmem:[%s3113_s22 + $0x8] sm:$0x2 pattern:$0x76325410]  ;;  %v1307_v33 = vunpack.c.l.b16 %v3368_v12  ;;  %v1308_v56 = vunpack.c.l.b16 %v2824_v34  ;;  %v998_v59 = vrot.slane %v569_v22, 2 }
 0x195   : > { %2920 = vmatpush3.bf16.msra.mxu1 %v758_v26  ;;  %v1403_v16 = vrot.slane %v1395_v1, 1  ;;  %v993_v26 = vsel %vm486_vm5, %v992_v3, %v991_v4  ;;  %v3381_v13 = vld.sshfl [vmem:[%s3113_s22 + $0xa] sm:$0x2 pattern:$0x76325410]  ;;  %v1398_v31 = vunpack.c.l.b16 %v3363_v24  ;;  %v902_v14 = vsel %vm480_vm3, %v901_v25, %v900_v40 }
 0x196   : > { %2925 = vmatprep.subr.bf16.mxu1 %v3041_v0  ;;  %v995_v44 = vsel %vm489_vm6, %v994_v9, %v993_v26  ;;  %v903_v19 = vrot.slane %v471_v39, 6  ;;  %v3394_v3 = vld.sshfl [vmem:[%s3113_s22 + $0xc] sm:$0x2 pattern:$0x76325410]  ;;  %v1399_v5 = vunpack.c.l.b16 %v3381_v13  ;;  %v905_v22 = vrot.slane %v472_v43, 5 }
 0x197   : > { %v1404_v11 = vsel %vm477_vm2, %v1403_v16, %v1402_v6  ;;  %v3398_v2 = vld.sshfl [vmem:[%s3113_s22 + $0xe] sm:$0x2 pattern:$0x76325410]  ;;  %v1818_v6 = vrot.slane %v1394_v63, 3  ;;  %v1819_v16 = vrot.slane %v1395_v1, 2  ;;  %v997_v18 = vsel %vm492_vm7, %v996_v17, %v995_v44 }
 0x198   : > { %v1408_v9 = vrot.slane %v1398_v31, 6  ;;  %v2825_v24 = vld.sshfl [vmem:[%s3155_s25 + $0x4] sm:$0x2 pattern:$0x76325410]  ;;  %v1315_v26 = vrot.slane %v1307_v33, 2  ;;  %v904_v25 = vsel %vm483_vm4, %v903_v19, %v902_v14  ;;  %v1400_v63 = vunpack.c.l.b16 %v3394_v3 }
 0x199   : > { %v1316_v12 = vrot.slane %v1308_v56, 1  ;;  %v1821_v1 = vrot.slane %v1396_v32, 1  ;;  %v999_v34 = vsel %vm495_vm8, %v998_v59, %v997_v18  ;;  %v1410_v40 = vrot.slane %v1399_v5, 5 }
 0x19a   : > { %v1310_v43 = vunpack.c.l.b16 %v3405_v35  ;;  %v1401_v44 = vunpack.c.l.b16 %v3398_v2  ;;  %v1309_v13 = vunpack.c.l.b16 %v2825_v24  ;;  %v1412_v59 = vrot.slane %v1400_v63, 4  ;;  %v2828_v14 = vld.sshfl [vmem:[%s3155_s25 + $0xa] sm:$0x2 pattern:$0x76325410] }
 0x19b   : > { %v1311_v19 = vunpack.c.l.b16 %v2827_v38  ;;  %v2829_v18 = vld.sshfl [vmem:[%s3155_s25 + $0xc] sm:$0x2 pattern:$0x76325410]  ;;  %v1731_v35 = vrot.slane %v1307_v33, 3 }
 0x19c   : > { %v1414_v2 = vrot.slane %v1401_v44, 3  ;;  %v1313_v33 = vunpack.c.l.b16 %v2829_v18 }
 0x19d   : > { %v1321_v24 = vrot.slane %v1311_v19, 6 }
 0x20f   : > { %v645_v15 = vpop.permute.xlu0 %644 }
 0x210   : > { %v647_v36 = vsub.f32 %v3262_v41, %v645_v15  ;;  %v1405_v41 = vsel %vm480_vm3, %v1396_v32, %v1404_v11  ;;  %v1820_v11 = vsel %vm477_vm2, %v1819_v16, %v1818_v6  ;;  %v907_v15 = vrot.slane %v473_v46, 4 }
 0x211   : > { %v1407_v39 = vsel %vm483_vm4, %v1406_v28, %v1405_v41  ;;  %v1317_v32 = vsel %vm477_vm2, %v1316_v12, %v1315_v26  ;;  %v1000_v28 = vpack.c.b16 %v999_v34, %v999_v34  ;;  %v1822_v3 = vsel %vm480_vm3, %v1821_v1, %v1820_v11 }
 0x212   : > { %v648_v4 = vmul.f32 1.442695, %v647_v36  ;;  %v1409_v17 = vsel %vm486_vm5, %v1408_v9, %v1407_v39  ;;  %v906_v36 = vsel %vm486_vm5, %v905_v22, %v904_v25  ;;  %v1319_v41 = vrot.slane %v1310_v43, 7 }
 0x213   : > { %v1411_v46 = vsel %vm489_vm6, %v1410_v40, %v1409_v17  ;;  %v1318_v6 = vsel %vm480_vm3, %v1309_v13, %v1317_v32  ;;  %v1824_v16 = vrot.slane %v1398_v31, 7  ;;  %v1312_v22 = vunpack.c.l.b16 %v2828_v14 }
 0x214   : > { %2993 = vpow2.f32 %v648_v4  ;;  %v908_v4 = vsel %vm489_vm6, %v907_v15, %v906_v36  ;;  %v1823_v9 = vsel %vm483_vm4, %v1397_v8, %v1822_v3  ;;  %v1732_v39 = vrot.slane %v1308_v56, 2  ;;  %v2830_v8 = vld.sshfl [vmem:[%s3155_s25 + $0xe] sm:$0x2 pattern:$0x76325410] }
 0x215   : > { %v1005_v45 = vsel %vm355_vm0, %v1000_v28, 0  ;;  %v1413_v51 = vsel %vm492_vm7, %v1412_v59, %v1411_v46  ;;  %v910_v12 = vsel %vm492_vm7, %v909_v42, %v908_v4  ;;  %v911_v31 = vrot.slane %v475_v54, 2 }
 0x216   : > { %v1320_v25 = vsel %vm483_vm4, %v1319_v41, %v1318_v6  ;;  %v1826_v1 = vrot.slane %v1399_v5, 6  ;;  %v1825_v56 = vsel %vm486_vm5, %v1824_v16, %v1823_v9  ;;  %v1734_v34 = vrot.slane %v1309_v13, 1 }
 0x217   : > { %v1415_v40 = vsel %vm495_vm8, %v1414_v2, %v1413_v51  ;;  %v1323_v38 = vrot.slane %v1312_v22, 5  ;;  %v1733_v11 = vsel %vm477_vm2, %v1732_v39, %v1731_v35  ;;  %v1322_v50 = vsel %vm486_vm5, %v1321_v24, %v1320_v25 }
 0x218   : > { %v1828_v54 = vrot.slane %v1400_v63, 5  ;;  %v912_v5 = vsel %vm495_vm8, %v911_v31, %v910_v12  ;;  %v1314_v15 = vunpack.c.l.b16 %v2830_v8  ;;  %v1827_v17 = vsel %vm489_vm6, %v1826_v1, %v1825_v56 }
 0x219   : > { %v1416_v13 = vpack.c.b16 %v1415_v40, %v1415_v40  ;;  %v1325_v36 = vrot.slane %v1313_v33, 4  ;;  %v1735_v32 = vsel %vm480_vm3, %v1734_v34, %v1733_v11  ;;  %v1324_v28 = vsel %vm489_vm6, %v1323_v38, %v1322_v50 }
 0x21a   : > { %v1830_v59 = vrot.slane %v1401_v44, 4  ;;  %v913_v14 = vpack.c.b16 %v912_v5, %v912_v5  ;;  %v1829_v63 = vsel %vm492_vm7, %v1828_v54, %v1827_v17  ;;  %v1737_v3 = vrot.slane %v1311_v19, 7 }
 0x21b   : > { %v1327_v42 = vrot.slane %v1314_v15, 3  ;;  %v1736_v46 = vsel %vm483_vm4, %v1310_v43, %v1735_v32  ;;  %v1421_v41 = vsel %vm355_vm0, %v1416_v13, 0  ;;  %v1326_v4 = vsel %vm492_vm7, %v1325_v36, %v1324_v28 }
 0x21c   : > { %v1831_v2 = vsel %vm495_vm8, %v1830_v59, %v1829_v63  ;;  %v1739_v6 = vrot.slane %v1312_v22, 6  ;;  %v1738_v16 = vsel %vm486_vm5, %v1737_v3, %v1736_v46  ;;  %v1741_v19 = vrot.slane %v1313_v33, 5  ;;  %v3494_v3 = vld [vmem:[#allocation2 + $0x8] sm:$0xff] }
 0x21d   : > { %v1328_v44 = vsel %vm495_vm8, %v1327_v42, %v1326_v4  ;;  %v1832_v43 = vpack.c.b16 %v1831_v2, %v1831_v2  ;;  %v1743_v35 = vrot.slane %v1314_v15, 4  ;;  %v3506_v4 = vld [vmem:[#allocation2 + $0x10] sm:$0xff]  ;;  %v1157_v2 = vrot.slane %v732_v55, 7 }
 0x21e   : > { %v3434_v26 = vpop.eup %2993  ;;  %v1740_v18 = vsel %vm489_vm6, %v1739_v6, %v1738_v16  ;;  %v1329_v9 = vpack.c.b16 %v1328_v44, %v1328_v44  ;;  %v1156_v6 = vsel %vm477_vm2, %v731_v52, %v1155_v29  ;;  %v1159_v16 = vrot.slane %v733_v62, 6 }
 0x21f   : > { %v665_v7 = vpack.c.bf16 %v3434_v26, %v3434_v26  ;;  %v1837_v22 = vsel %vm355_vm0, %v1832_v43, 0  ;;  %v1742_v39 = vsel %vm492_vm7, %v1741_v19, %v1740_v18  ;;  %v1158_v43 = vsel %vm480_vm3, %v1157_v2, %v1156_v6 }
 0x220   : > { %v3834_v19 = vunpack.c.l.b16 %v3295_v61  ;;  %v1160_v58 = vsel %vm483_vm4, %v1159_v16, %v1158_v43  ;;  %v1165_v52 = vrot.slane %v736_v30, 3  ;;  %v1167_v61 = vrot.slane %v737_v37, 2 }
 0x221   : > { %2922 = vmatmul.mubr.msk.bf16.vlgmr.msra.gmra.mrb[0].mxu1 %vm355_vm0, %v665_v7  ;;  %v652_v37 = vsel %vm355_vm0, %v3434_v26, 0.0 }
 0x222   : > { %2926 = vmatpush3.bf16.xpose.msra.mxu1 %v1005_v45  ;;  %2927 = vmatprep.mubr.msk.bf16.mxu1 %vm3042_vm1, %v3041_v0  ;;  %v1744_v45 = vsel %vm495_vm8, %v1743_v35, %v1742_v39  ;;  %v1161_v18 = vrot.slane %v3834_v19, 5  ;;  %v2841_v39 = vld.sshfl [vmem:[%s3270_s5 + $0x2] sm:$0x2 pattern:$0x76325410] }
 0x223   : > { %2937 = vmatprep.subr.bf16.mxu1 %v3041_v0  ;;  %v1745_v51 = vpack.c.b16 %v1744_v45, %v1744_v45 }
 0x224   : > { %v1162_v47 = vsel %vm486_vm5, %v1161_v18, %v1160_v58 }
 0x225   : > { %v1164_v57 = vsel %vm489_vm6, %v1163_v49, %v1162_v47 }
 0x226   : > { %v1166_v62 = vsel %vm492_vm7, %v1165_v52, %v1164_v57 }
 0x227   : > { %v1168_v10 = vsel %vm495_vm8, %v1167_v61, %v1166_v62 }
 0x228   : > { %v1169_v23 = vpack.c.b16 %v1168_v10, %v1168_v10 }
 0x229   : > { %2928 = vmatmul.mubr.msk.bf16.vlgmr.msra.gmra.mrb[4].mxu1 %vm355_vm0, %v913_v14 }
 0x22a   : > { %2938 = vmatpush3.bf16.xpose.msra.mxu1 %v1421_v41  ;;  %2939 = vmatprep.mubr.msk.bf16.mxu1 %vm3042_vm1, %v3041_v0 }
 0x22b   : > { %2949 = vmatprep.subr.bf16.mxu1 %v3041_v0 }
 0x231   : > { %2940 = vmatmul.mubr.msk.bf16.vlgmr.msra.gmra.mrb[8].mxu1 %vm355_vm0, %v1329_v9  ;;  %v1174_v9 = vsel %vm756_vm14, %v1169_v23, 0 }
 0x232   : > { %2950 = vmatpush3.bf16.xpose.msra.mxu1 %v1837_v22  ;;  %2951 = vmatprep.mubr.msk.bf16.mxu1 %vm3042_vm1, %v3041_v0  ;;  %v2840_v22 = vld.sshfl [vmem:[%s3270_s5] sm:$0x2 pattern:$0x76325410] }
 0x233   : > { %2932 = vmatpush3.bf16.msra.mxu0 %v1174_v9  ;;  %v1563_v45 = vunpack.c.l.b16 %v2840_v22 }
 0x234   : > { %2943 = vmatprep.subr.bf16.mxu0 %v3041_v0 }
 0x239   : > { %2952 = vmatmul.mubr.msk.bf16.vlgmr.msra.gmra.mrb[12].mxu1 %vm355_vm0, %v1745_v51  ;;  %v1564_v51 = vunpack.c.l.b16 %v2841_v39 }
 0x2f4   : > { %v3474_v24 = vpop.f32.mrb[0].mxu1 }
 0x2f5   : > { %v2923_v12 = vpop.f32.mrb[1].mxu1 }
 0x2f6   : > { %v797_v31 = vpop.f32.mrb[2].mxu1  ;;  %v2843_v12 = vld.sshfl [vmem:[%s3270_s5 + $0x6] sm:$0x2 pattern:$0x76325410] }
 0x2f7   : > { %v2924_v25 = vpop.f32.mrb[3].mxu1  ;;  %v2842_v31 = vld.sshfl [vmem:[%s3270_s5 + $0x4] sm:$0x2 pattern:$0x76325410] }
 0x2f8   : > { %v1571_v25 = vrot.slane %v1563_v45, 2 }
 0x2fc   : > { %v1041_v1 = vpop.f32.mrb[4].mxu1 }
 0x2fd   : > { %v1047_v7 = vmul.f32 0.35355338, %v1041_v1  ;;  %v2929_v8 = vpop.f32.mrb[5].mxu1  ;;  %v1572_v1 = vrot.slane %v1564_v51, 1 }
 0x2fe   : > { %v1044_v33 = vpop.f32.mrb[6].mxu1  ;;  %v1566_v8 = vunpack.c.l.b16 %v2843_v12 }
 0x2ff   : > { %v2930_v56 = vpop.f32.mrb[7].mxu1  ;;  %v3478_v34 = vsel %vm3256_vm13, %v1047_v7, -1e+09  ;;  %v1565_v33 = vunpack.c.l.b16 %v2842_v31 }
 0x300   : > { %v1051_v40 = vsel %vm355_vm0, %v3478_v34, -inf  ;;  %v2844_v7 = vld.sshfl [vmem:[%s3270_s5 + $0x8] sm:$0x2 pattern:$0x76325410]  ;;  %v1573_v56 = vsel %vm477_vm2, %v1572_v1, %v1571_v25 }
 0x301   : > { %1052 = vmax.xlane.f32.xlu1 %v1051_v40  ;;  %v2845_v40 = vld.sshfl [vmem:[%s3270_s5 + $0xa] sm:$0x2 pattern:$0x76325410]  ;;  %v1574_v26 = vsel %vm480_vm3, %v1565_v33, %v1573_v56  ;;  %v3835_v56 = vsub.f32 %v3275_v48, %v3292_v60 }
 0x304   : > { %v1457_v38 = vpop.f32.mrb[8].mxu1 }
 0x305   : > { %v1463_v11 = vmul.f32 0.35355338, %v1457_v38  ;;  %v2941_v50 = vpop.f32.mrb[9].mxu1  ;;  %v1567_v38 = vunpack.c.l.b16 %v2844_v7 }
 0x306   : > { %v1460_v54 = vpop.f32.mrb[10].mxu1  ;;  %v2846_v50 = vld.sshfl [vmem:[%s3270_s5 + $0xc] sm:$0x2 pattern:$0x76325410] }
 0x307   : > { %v2942_v5 = vpop.f32.mrb[11].mxu1  ;;  %v3484_v15 = vsel %vm3256_vm13, %v1463_v11, -1e+09  ;;  %v1575_v11 = vrot.slane %v1566_v8, 7  ;;  %v1568_v54 = vunpack.c.l.b16 %v2845_v40  ;;  %v1993_v58 = vrot.slane %v1567_v38, 7 }
 0x308   : > { %v1467_v17 = vsel %vm355_vm0, %v3484_v15, -inf  ;;  %v1987_v5 = vrot.slane %v1563_v45, 3  ;;  %v640_v40 = vmul.f32 1.442695, %v3835_v56 }
 0x309   : > { %1468 = vmax.xlane.f32.xlu1 %v1467_v17  ;;  %v1988_v17 = vrot.slane %v1564_v51, 2  ;;  %v1995_v57 = vrot.slane %v1568_v54, 6 }
 0x30c   : > { %v1873_v13 = vpop.f32.mrb[12].mxu1 }
 0x30d   : > { %v1879_v36 = vmul.f32 0.35355338, %v1873_v13  ;;  %v2953_v32 = vpop.f32.mrb[13].mxu1  ;;  %v1577_v13 = vrot.slane %v1567_v38, 6 }
 0x30e   : > { %v1876_v28 = vpop.f32.mrb[14].mxu1  ;;  %v2847_v32 = vld.sshfl [vmem:[%s3270_s5 + $0xe] sm:$0x2 pattern:$0x76325410] }
 0x30f   : > { %v2954_v59 = vpop.f32.mrb[15].mxu1  ;;  %v3490_v14 = vsel %vm3256_vm13, %v1879_v36, -1e+09  ;;  %v1576_v36 = vsel %vm483_vm4, %v1575_v11, %v1574_v26  ;;  %v1569_v28 = vunpack.c.l.b16 %v2846_v50  ;;  %v1570_v16 = vunpack.c.l.b16 %v2847_v32 }
 0x310   : > { %v1883_v63 = vsel %vm355_vm0, %v3490_v14, -inf  ;;  %v1990_v59 = vrot.slane %v1565_v33, 1  ;;  %v1578_v2 = vsel %vm486_vm5, %v1577_v13, %v1576_v36 }
 0x311   : > { %1884 = vmax.xlane.f32.xlu1 %v1883_v63  ;;  %v1579_v63 = vrot.slane %v1568_v54, 5  ;;  %v1583_v49 = vrot.slane %v1570_v16, 3  ;;  %v1997_v23 = vrot.slane %v1569_v28, 5  ;;  %v1999_v22 = vrot.slane %v1570_v16, 4 }
 0x313   : > { %v1580_v18 = vsel %vm489_vm6, %v1579_v63, %v1578_v2 }
 0x38e   : > { %v1053_v42 = vpop.xlane.xlu1 %1052 }
 0x38f   : > { %v3497_v46 = vmax.f32 %v3494_v3, %v1053_v42  ;;  %v1989_v42 = vsel %vm477_vm2, %v1988_v17, %v1987_v5  ;;  %v650_v17 = vld [vmem:[#allocation3] sm:$0xff] }
 0x390   : > { %v1991_v43 = vsel %vm480_vm3, %v1990_v59, %v1989_v42  ;;  %v658_v59 = vld [vmem:[#allocation4] sm:$0xff]  ;;  %vm2311_vm3 = vsmask.f32 7938 }
 0x391   : > { %v1055_v41 = vsub.f32 %v3494_v3, %v3497_v46  ;;  %1218 = vst.msk [vmem:[#allocation2 + $0x8] sm:$0xff] %vm346_vm9, %v3497_v46  ;;  %1060 = vperm.xlu1 %2992, %v3497_v46   ;;  %v1992_v47 = vsel %vm483_vm4, %v1566_v8, %v1991_v43  ;;  %v1899_v43 = vld [vmem:[#allocation3 + $0x18] sm:$0xff]  ;;  %vm2452_vm4 = vcmask 58369  }
 0x392   : > { %v1994_v62 = vsel %vm486_vm5, %v1993_v58, %v1992_v47  ;;  %vm2453_vm5 = vsmask.f32 1280 }
 0x393   : > { %v1996_v9 = vsel %vm489_vm6, %v1995_v57, %v1994_v62  ;;  %v1056_v54 = vmul.f32 1.442695, %v1055_v41  ;;  %v1067_v41 = vld [vmem:[#allocation3 + $0x8] sm:$0xff]  ;;  %v3045_v62 = vmov 1966171168   ;;  %vm3725_vm6 = vmand %vm2452_vm4, %vm2453_vm5 }
 0x394   : > { %v1998_v39 = vsel %vm492_vm7, %v1997_v23, %v1996_v9 }
 0x395   : > { %v2000_v1 = vsel %vm495_vm8, %v1999_v22, %v1998_v39 }
 0x396   : > { %v1469_v44 = vpop.xlane.xlu1 %1468  ;;  %v2001_v8 = vpack.c.b16 %v2000_v1, %v2000_v1 }
 0x397   : > { %v3519_v53 = vmax.f32 %v3506_v4, %v1469_v44  ;;  %v1581_v44 = vrot.slane %v1569_v28, 4  ;;  %v1483_v28 = vld [vmem:[#allocation3 + $0x10] sm:$0xff] }
 0x398   : > { %v2006_v11 = vsel %vm756_vm14, %v2001_v8, 0 }
 0x399   : > { %v1471_v55 = vsub.f32 %v3506_v4, %v3519_v53  ;;  %1634 = vst.msk [vmem:[#allocation2 + $0x10] sm:$0xff] %vm346_vm9, %v3519_v53  ;;  %1476 = vperm.xlu1 %2992, %v3519_v53   ;;  %v1582_v52 = vsel %vm492_vm7, %v1581_v44, %v1580_v18  ;;  %vm2594_vm7 = vsmask.f32 7942 }
 0x39a   : > { %v1584_v10 = vsel %vm495_vm8, %v1583_v49, %v1582_v52  ;;  %vm3773_vm8 = vmand %vm2452_vm4, %vm2594_vm7 }
 0x39b   : > { %v1472_v26 = vmul.f32 1.442695, %v1471_v55 }
 0x39e   : > { %v1885_v30 = vpop.xlane.xlu1 %1884 }
 0x39f   : > { %v3541_v35 = vmax.f32 %v3537_v21, %v1885_v30 }
 0x3a1   : > { %v1887_v27 = vsub.f32 %v3537_v21, %v3541_v35  ;;  %2050 = vst.msk [vmem:[#allocation2 + $0x18] sm:$0xff] %vm346_vm9, %v3541_v35  ;;  %1892 = vperm.xlu1 %2992, %v3541_v35  }
 0x3c5   : > { %653 = vadd.xlane.f32.xlu1 %v652_v37  ;;  %v1585_v37 = vpack.c.b16 %v1584_v10, %v1584_v10 }
 0x3c7   : > { %v1590_v25 = vsel %vm756_vm14, %v1585_v37, 0 }
 0x410   : > { %v1061_v29 = vpop.permute.xlu1 %1060 }
 0x411   : > { %v1063_v6 = vsub.f32 %v3478_v34, %v1061_v29 }
 0x413   : > { %v1064_v19 = vmul.f32 1.442695, %v1063_v6 }
 0x415   : > { %2995 = vpow2.f32 %v1064_v19 }
 0x418   : > { %v1477_v61 = vpop.permute.xlu1 %1476 }
 0x419   : > { %v1479_v34 = vsub.f32 %v3484_v15, %v1477_v61 }
 0x41b   : > { %v1480_v30 = vmul.f32 1.442695, %v1479_v34  ;;  %v2066_v34 = vunpack.c.l.s4 %v3045_v62 }
 0x41d   : > { %2997 = vpow2.f32 %v1480_v30  ;;  %v2067_v23 = vunpack.c.0.s8 %v2066_v34  ;;  %v3046_v30 = vmov 857870592  }
 0x41e   : > { %v2106_v9 = vunpack.c.l.s4 %v3046_v30 }
 0x41f   : > { %v2996_v45 = vpop.eup %2995  ;;  %v3610_v39 = vsub.s32 %v2067_v23, %v3252_v20 }
 0x420   : > { %v1893_v51 = vpop.permute.xlu1 %1892  ;;  %v1069_v12 = vsel %vm355_vm0, %v2996_v45, 0.0  ;;  %v1082_v31 = vpack.c.bf16 %v2996_v45, %v2996_v45 }
 0x421   : > { %v1895_v15 = vsub.f32 %v3490_v14, %v1893_v51  ;;  %1070 = vadd.xlane.f32.xlu0 %v1069_v12  ;;  %v2107_v12 = vunpack.c.0.s8 %v2106_v9 }
 0x422   : > { %2934 = vmatmul.mubr.msk.bf16.vlgmr.msra.gmra.mrb[4].mxu0 %vm355_vm0, %v1082_v31 }
 0x423   : > { %v1896_v7 = vmul.f32 1.442695, %v1895_v15  ;;  %2944 = vmatpush3.bf16.msra.mxu0 %v1590_v25  ;;  %2945 = vmatprep.mubr.msk.bf16.mxu0 %vm3042_vm1, %v3041_v0  ;;  %v3621_v1 = vsub.s32 %v2107_v12, %v3252_v20 }
 0x424   : > { %2955 = vmatprep.subr.bf16.mxu0 %v3041_v0 }
 0x425   : > { %2999 = vpow2.f32 %v1896_v7  ;;  %v1075_v7 = vld [vmem:[#allocation4 + $0x8] sm:$0xff] }
 0x426   : > { %3001 = vpow2.f32 %v640_v40 }
 0x427   : > { %v2998_v33 = vpop.eup %2997  ;;  %3003 = vpow2.f32 %v1472_v26 }
 0x428   : > { %v1485_v14 = vsel %vm355_vm0, %v2998_v33, 0.0  ;;  %v1498_v38 = vpack.c.bf16 %v2998_v33, %v2998_v33  ;;  %3005 = vpow2.f32 %v1056_v54 }
 0x429   : > { %1486 = vadd.xlane.f32.xlu1 %v1485_v14 }
 0x42a   : > { %2946 = vmatmul.mubr.msk.bf16.vlgmr.msra.gmra.mrb[8].mxu0 %vm355_vm0, %v1498_v38  ;;  %v2172_v38 = vld [vmem:[%s3618_s8] sm:$0x1] }
 0x42b   : > { %2956 = vmatpush3.bf16.msra.mxu0 %v2006_v11  ;;  %2957 = vmatprep.mubr.msk.bf16.mxu0 %vm3042_vm1, %v3041_v0  ;;  %v1888_v0 = vmul.f32 1.442695, %v1887_v27  ;;  %vm2170_vm1 = vsmask.f32 256 }
 0x42c   : > { %vm3625_vm2 = vmand %vm2169_vm15, %vm2170_vm1 }
 0x42d   : > { %3007 = vpow2.f32 %v1888_v0 }
 0x42f   : > { %v3000_v50 = vpop.eup %2999 }
 0x430   : > { %v1901_v48 = vsel %vm355_vm0, %v3000_v50, 0.0  ;;  %v1914_v60 = vpack.c.bf16 %v3000_v50, %v3000_v50  ;;  %v3002_v5 = vpop.eup %3001 }
 0x431   : > { %1902 = vadd.xlane.f32.xlu1 %v1901_v48  ;;  %v3004_v4 = vpop.eup %3003  ;;  %v651_v13 = vmul.f32 %v3002_v5, %v650_v17 }
 0x432   : > { %2958 = vmatmul.mubr.msk.bf16.vlgmr.msra.gmra.mrb[12].mxu0 %vm355_vm0, %v1914_v60  ;;  %v3006_v53 = vpop.eup %3005  ;;  %v1484_v63 = vmul.f32 %v3004_v4, %v1483_v28  ;;  %v2175_v60 = vld [vmem:[%s3618_s8 + $0x2] sm:$0x1] }
 0x433   : > { %v1068_v21 = vmul.f32 %v3006_v53, %v1067_v41 }
 0x437   : > { %661 = vperm.xlu0 %2991, %v3002_v5   ;;  %v3008_v55 = vpop.eup %3007 }
 0x438   : > { %v1900_v19 = vmul.f32 %v3008_v55, %v1899_v43 }
 0x43b   : > { %1494 = vperm.xlu0 %2991, %v3004_v4   ;;  %v2178_v4 = vld [vmem:[%s3618_s8 + $0x4] sm:$0x1] }
 0x442   : > { %1078 = vperm.xlu1 %2992, %v3006_v53   ;;  %v2181_v53 = vld [vmem:[%s3618_s8 + $0x6] sm:$0x1] }
 0x446   : > { %1910 = vperm.xlu1 %2992, %v3008_v55   ;;  %v2184_v55 = vld [vmem:[%s3618_s8 + $0x8] sm:$0x1] }
 0x452   : > { %v654_v36 = vpop.xlane.xlu1 %653 }
 0x453   : > { %v655_v32 = vadd.f32 %v654_v36, %v651_v13 }
 0x455   : > { %657 = vst.msk [vmem:[#allocation3] sm:$0xff] %vm346_vm9, %v655_v32 }
 0x45c   : > { %v2054_v3 = vld [vmem:[#allocation3] sm:$0xff] }
 0x45d   : > { %3009 = vrcp.f32 %v2054_v3  ;;  %v2187_v3 = vld [vmem:[%s3618_s8 + $0xa] sm:$0x1] }
 0x467   : > { %v3010_v46 = vpop.eup %3009 }
 0x468   : > { %2059 = vperm.xlu1 %2992, %v3010_v46   ;;  %v2190_v46 = vld [vmem:[%s3618_s8 + $0xc] sm:$0x1] }
 0x4ae   : > { %v1071_v35 = vpop.xlane.xlu0 %1070 }
 0x4af   : > { %v1072_v27 = vadd.f32 %v1071_v35, %v1068_v21 }
 0x4b1   : > { %1073 = vst.msk [vmem:[#allocation3 + $0x8] sm:$0xff] %vm346_vm9, %v1072_v27 }
 0x4b6   : > { %v1487_v42 = vpop.xlane.xlu1 %1486  ;;  %v662_v29 = vpop.permute.xlu0 %661 }
 0x4b7   : > { %v1488_v2 = vadd.f32 %v1487_v42, %v1484_v63  ;;  %v664_v6 = vmul.f32 %v662_v29, %v658_v59 }
 0x4b8   : > { %v2196_v16 = vld [vmem:[#allocation3 + $0x8] sm:$0xff] }
 0x4b9   : > { %1489 = vst.msk [vmem:[#allocation3 + $0x10] sm:$0xff] %vm346_vm9, %v1488_v2  ;;  %v800_v44 = vadd.f32 %v3474_v24, %v664_v6  ;;  %3011 = vrcp.f32 %v2196_v16  ;;  %v2193_v6 = vld [vmem:[%s3618_s8 + $0xe] sm:$0x1] }
 0x4bb   : > { %801 = vst.msk [vmem:[#allocation4] sm:$0xff] %vm355_vm0, %v800_v44 }
 0x4be   : > { %v1903_v18 = vpop.xlane.xlu1 %1902 }
 0x4bf   : > { %v1904_v58 = vadd.f32 %v1903_v18, %v1900_v19 }
 0x4c0   : > { %v2337_v49 = vld [vmem:[#allocation3 + $0x10] sm:$0xff] }
 0x4c1   : > { %1905 = vst.msk [vmem:[#allocation3 + $0x18] sm:$0xff] %vm346_vm9, %v1904_v58  ;;  %3013 = vrcp.f32 %v2337_v49 }
 0x4c2   : > { %v1079_v24 = vpop.permute.xlu1 %1078  ;;  %v2056_v37 = vld [vmem:[#allocation4] sm:$0xff] }
 0x4c3   : > { %v3012_v47 = vpop.eup %3011  ;;  %v1081_v48 = vmul.f32 %v1079_v24, %v1075_v7  ;;  %v1495_v24 = vpop.permute.xlu0 %1494 }
 0x4c4   : > { %2201 = vperm.xlu0 %2991, %v3012_v47  }
 0x4c6   : > { %v3607_v10 = vpop.permute.xlu1 %1910 }
 0x4c8   : > { %v2479_v52 = vld [vmem:[#allocation3 + $0x18] sm:$0xff] }
 0x4c9   : > { %3015 = vrcp.f32 %v2479_v52 }
 0x4cb   : > { %v3014_v57 = vpop.eup %3013 }
 0x4cc   : > { %2342 = vperm.xlu1 %2992, %v3014_v57  }
 0x4d3   : > { %v3016_v61 = vpop.eup %3015 }
 0x4d4   : > { %2484 = vperm.xlu0 %2991, %v3016_v61   ;;  %v1491_v61 = vld [vmem:[#allocation4 + $0x10] sm:$0xff] }
 0x4d5   : > { %v1497_v34 = vmul.f32 %v1495_v24, %v1491_v61 }
 0x4e7   : > { %v2060_v22 = vpop.permute.xlu1 %2059 }
 0x4e8   : > { %v2062_v45 = vmul.f32 %v2060_v22, %v2056_v37 }
 0x4ea   : > { %v2063_v51 = vpack.c.bf16 %v2062_v45, %v2062_v45  ;;  %v1907_v45 = vld [vmem:[#allocation4 + $0x18] sm:$0xff] }
 0x4ec   : > { %v2071_v31 = vrot.slane %v2063_v51, %v3610_v39  ;;  %v1913_v51 = vmul.f32 %v3607_v10, %v1907_v45 }
 0x4ee   : > { %v2072_v25 = vcombine.high %v2071_v31, %v2071_v31  ;;  %v2079_v15 = vrot.slane %v2071_v31, %v3610_v39 }
 0x4f0   : > { %v2086_v8 = vrot.slane %v2072_v25, %v3610_v39  ;;  %v2087_v33 = vcombine.high %v2079_v15, %v2079_v15  ;;  %v2090_v56 = vunpack.i.h.s16 %v2079_v15  ;;  %v2875_v40 = vpack.i.b16 %v2079_v15, %v2079_v15 }
 0x4f2   : > { %v2088_v11 = vcombine.high %v2086_v8, %v2086_v8  ;;  %v2092_v20 = vunpack.i.h.s16 %v2086_v8  ;;  %v2094_v26 = vunpack.i.h.s16 %v2087_v33  ;;  %v2098_v50 = vpack.i.b16 %v2090_v56, %v2090_v56 }
 0x4f3   : > { %v2876_v54 = vpack.i.b16 %v2086_v8, %v2086_v8  ;;  %v2877_v5 = vpack.i.b16 %v2087_v33, %v2087_v33  ;;  %v2111_v0 = vrot.slane %v2875_v40, %v3621_v1 }
 0x4f4   : > { %v2096_v17 = vunpack.i.h.s16 %v2088_v11  ;;  %v2100_v13 = vpack.i.b16 %v2092_v20, %v2092_v20  ;;  %v2102_v36 = vpack.i.b16 %v2094_v26, %v2094_v26  ;;  %v2878_v32 = vpack.i.b16 %v2088_v11, %v2088_v11 }
 0x4f5   : > { %v2118_v41 = vrot.slane %v2098_v50, %v3621_v1  ;;  %v2125_v21 = vrot.slane %v2876_v54, %v3621_v1  ;;  %v2139_v35 = vrot.slane %v2877_v5, %v3621_v1  ;;  %v2173_v27 = vsel %vm3625_vm2, %v2111_v0, %v2172_v38  ;;  %v1210_v28 = vpop.f32.mrb[4].mxu0 }
 0x4f6   : > { %v2104_v59 = vpack.i.b16 %v2096_v17, %v2096_v17  ;;  %v2132_v63 = vrot.slane %v2100_v13, %v3621_v1  ;;  %v2146_v42 = vrot.slane %v2102_v36, %v3621_v1  ;;  %v2153_v29 = vrot.slane %v2878_v32, %v3621_v1  ;;  %2174 = vst [vmem:[%s3618_s8] sm:$0x1] %v2173_v27  ;;  %v2935_v2 = vpop.f32.mrb[5].mxu0 }
 0x4f7   : > { %v2176_v16 = vsel %vm3625_vm2, %v2118_v41, %v2175_v60  ;;  %v2179_v44 = vsel %vm3625_vm2, %v2125_v21, %v2178_v4  ;;  %v2185_v43 = vsel %vm3625_vm2, %v2139_v35, %v2184_v55  ;;  %v1216_v19 = vadd.f32 %v1210_v28, %v1081_v48  ;;  %v1213_v18 = vpop.f32.mrb[6].mxu0 }
 0x4f8   : > { %v2160_v58 = vrot.slane %v2104_v59, %v3621_v1  ;;  %2177 = vst [vmem:[%s3618_s8 + $0x2] sm:$0x1] %v2176_v16  ;;  %2180 = vst [vmem:[%s3618_s8 + $0x4] sm:$0x1] %v2179_v44  ;;  %v2182_v49 = vsel %vm3625_vm2, %v2132_v63, %v2181_v53  ;;  %v2188_v47 = vsel %vm3625_vm2, %v2146_v42, %v2187_v3  ;;  %v2936_v57 = vpop.f32.mrb[7].mxu0 }
 0x4f9   : > { %2186 = vst [vmem:[%s3618_s8 + $0x8] sm:$0x1] %v2185_v43  ;;  %v2191_v52 = vsel %vm3625_vm2, %v2153_v29, %v2190_v46  ;;  %2183 = vst [vmem:[%s3618_s8 + $0x6] sm:$0x1] %v2182_v49 }
 0x4fa   : > { %2189 = vst [vmem:[%s3618_s8 + $0xa] sm:$0x1] %v2188_v47  ;;  %2192 = vst [vmem:[%s3618_s8 + $0xc] sm:$0x1] %v2191_v52  ;;  %v2194_v62 = vsel %vm3625_vm2, %v2160_v58, %v2193_v6 }
 0x4fb   : > { %1217 = vst.msk [vmem:[#allocation4 + $0x8] sm:$0xff] %vm355_vm0, %v1216_v19  ;;  %2195 = vst [vmem:[%s3618_s8 + $0xe] sm:$0x1] %v2194_v62 }
 0x4fd   : > { %v1626_v23 = vpop.f32.mrb[8].mxu0  ;;  %v2313_v35 = vld [vmem:[%s3618_s8] sm:$0x1] }
 0x4fe   : > { %v1632_v30 = vadd.f32 %v1626_v23, %v1497_v34  ;;  %v2947_v9 = vpop.f32.mrb[9].mxu0 }
 0x4ff   : > { %v1629_v37 = vpop.f32.mrb[10].mxu0  ;;  %v2316_v16 = vld [vmem:[%s3618_s8 + $0x2] sm:$0x1]  ;;  %v2319_v44 = vld [vmem:[%s3618_s8 + $0x4] sm:$0x1] }
 0x500   : > { %1633 = vst.msk [vmem:[#allocation4 + $0x10] sm:$0xff] %vm355_vm0, %v1632_v30  ;;  %v2948_v22 = vpop.f32.mrb[11].mxu0  ;;  %v2325_v43 = vld [vmem:[%s3618_s8 + $0x8] sm:$0x1]  ;;  %v2322_v58 = vld [vmem:[%s3618_s8 + $0x6] sm:$0x1] }
 0x501   : > { %v2328_v47 = vld [vmem:[%s3618_s8 + $0xa] sm:$0x1]  ;;  %v2331_v52 = vld [vmem:[%s3618_s8 + $0xc] sm:$0x1] }
 0x502   : > { %v2198_v33 = vld [vmem:[#allocation4 + $0x8] sm:$0xff] }
 0x503   : > { %v2334_v9 = vld [vmem:[%s3618_s8 + $0xe] sm:$0x1] }
 0x505   : > { %v2042_v12 = vpop.f32.mrb[12].mxu0 }
 0x506   : > { %v2048_v31 = vadd.f32 %v2042_v12, %v1913_v51  ;;  %v2959_v25 = vpop.f32.mrb[13].mxu0 }
 0x507   : > { %v2045_v15 = vpop.f32.mrb[14].mxu0  ;;  %v2339_v60 = vld [vmem:[#allocation4 + $0x10] sm:$0xff] }
 0x508   : > { %2049 = vst.msk [vmem:[#allocation4 + $0x18] sm:$0xff] %vm355_vm0, %v2048_v31  ;;  %v2960_v7 = vpop.f32.mrb[15].mxu0  ;;  %vm3677_vm0 = vmand %vm2169_vm15, %vm2311_vm3 }
 0x50f   : > { %v2481_v30 = vld [vmem:[#allocation4 + $0x18] sm:$0xff] }
 0x543   : > { %v2202_v8 = vpop.permute.xlu0 %2201 }
 0x544   : > { %v2204_v56 = vmul.f32 %v2202_v8, %v2198_v33  ;;  %v2455_v33 = vld [vmem:[%s3618_s8] sm:$0x2] }
 0x546   : > { %v2205_v40 = vpack.c.bf16 %v2204_v56, %v2204_v56 }
 0x548   : > { %v2213_v14 = vrot.slane %v2205_v40, %v3610_v39 }
 0x54a   : > { %v2214_v38 = vcombine.high %v2213_v14, %v2213_v14  ;;  %v2221_v11 = vrot.slane %v2213_v14, %v3610_v39 }
 0x54b   : > { %v2343_v20 = vpop.permute.xlu1 %2342 }
 0x54c   : > { %v2228_v10 = vrot.slane %v2214_v38, %v3610_v39  ;;  %v2229_v26 = vcombine.high %v2221_v11, %v2221_v11  ;;  %v2232_v50 = vunpack.i.h.s16 %v2221_v11  ;;  %v2879_v48 = vpack.i.b16 %v2221_v11, %v2221_v11 }
 0x54d   : > { %v2345_v54 = vmul.f32 %v2343_v20, %v2339_v60  ;;  %v2467_v60 = vld [vmem:[%s3618_s8 + $0x8] sm:$0x2] }
 0x54e   : > { %v2230_v0 = vcombine.high %v2228_v10, %v2228_v10  ;;  %v2234_v4 = vunpack.i.h.s16 %v2228_v10  ;;  %v2236_v53 = vunpack.i.h.s16 %v2229_v26  ;;  %v2240_v55 = vpack.i.b16 %v2232_v50, %v2232_v50  ;;  %v2458_v50 = vld [vmem:[%s3618_s8 + $0x2] sm:$0x2] }
 0x54f   : > { %v2880_v17 = vpack.i.b16 %v2228_v10, %v2228_v10  ;;  %v2881_v13 = vpack.i.b16 %v2229_v26, %v2229_v26  ;;  %v2253_v36 = vrot.slane %v2879_v48, %v3621_v1  ;;  %v2346_v32 = vpack.c.bf16 %v2345_v54, %v2345_v54  ;;  %v2461_v48 = vld [vmem:[%s3618_s8 + $0x4] sm:$0x2] }
 0x550   : > { %v2238_v3 = vunpack.i.h.s16 %v2230_v0  ;;  %v2242_v46 = vpack.i.b16 %v2234_v4, %v2234_v4  ;;  %v2244_v41 = vpack.i.b16 %v2236_v53, %v2236_v53  ;;  %v2882_v21 = vpack.i.b16 %v2230_v0, %v2230_v0  ;;  %v2464_v53 = vld [vmem:[%s3618_s8 + $0x6] sm:$0x2] }
 0x551   : > { %v2260_v27 = vrot.slane %v2240_v55, %v3621_v1  ;;  %v2267_v28 = vrot.slane %v2880_v17, %v3621_v1  ;;  %v2281_v59 = vrot.slane %v2881_v13, %v3621_v1  ;;  %v2314_v63 = vsel %vm3677_vm0, %v2253_v36, %v2313_v35  ;;  %v2470_v55 = vld [vmem:[%s3618_s8 + $0xa] sm:$0x2]  ;;  %v2473_v17 = vld [vmem:[%s3618_s8 + $0xc] sm:$0x2] }
 0x552   : > { %v2246_v42 = vpack.i.b16 %v2238_v3, %v2238_v3  ;;  %v2274_v29 = vrot.slane %v2242_v46, %v3621_v1  ;;  %v2288_v2 = vrot.slane %v2244_v41, %v3621_v1  ;;  %v2295_v6 = vrot.slane %v2882_v21, %v3621_v1  ;;  %2315 = vst [vmem:[%s3618_s8] sm:$0x1] %v2314_v63 }
 0x553   : > { %v2317_v19 = vsel %vm3677_vm0, %v2260_v27, %v2316_v16  ;;  %v2320_v18 = vsel %vm3677_vm0, %v2267_v28, %v2319_v44  ;;  %v2326_v49 = vsel %vm3677_vm0, %v2281_v59, %v2325_v43  ;;  %v2354_v57 = vrot.slane %v2346_v32, %v3610_v39  ;;  %v2485_v61 = vpop.permute.xlu0 %2484  ;;  %v2476_v27 = vld [vmem:[%s3618_s8 + $0xe] sm:$0x2] }
 0x554   : > { %v2302_v24 = vrot.slane %v2246_v42, %v3621_v1  ;;  %2318 = vst [vmem:[%s3618_s8 + $0x2] sm:$0x1] %v2317_v19  ;;  %2321 = vst [vmem:[%s3618_s8 + $0x4] sm:$0x1] %v2320_v18  ;;  %v2323_v62 = vsel %vm3677_vm0, %v2274_v29, %v2322_v58  ;;  %v2329_v34 = vsel %vm3677_vm0, %v2288_v2, %v2328_v47 }
 0x555   : > { %2327 = vst [vmem:[%s3618_s8 + $0x8] sm:$0x1] %v2326_v49  ;;  %v2332_v23 = vsel %vm3677_vm0, %v2295_v6, %v2331_v52  ;;  %2324 = vst [vmem:[%s3618_s8 + $0x6] sm:$0x1] %v2323_v62  ;;  %v2355_v37 = vcombine.high %v2354_v57, %v2354_v57  ;;  %v2362_v22 = vrot.slane %v2354_v57, %v3610_v39 }
 0x556   : > { %2330 = vst [vmem:[%s3618_s8 + $0xa] sm:$0x1] %v2329_v34  ;;  %2333 = vst [vmem:[%s3618_s8 + $0xc] sm:$0x1] %v2332_v23  ;;  %v2487_v45 = vmul.f32 %v2485_v61, %v2481_v30  ;;  %v2335_v51 = vsel %vm3677_vm0, %v2302_v24, %v2334_v9 }
 0x557   : > { %2336 = vst [vmem:[%s3618_s8 + $0xe] sm:$0x1] %v2335_v51  ;;  %v2369_v12 = vrot.slane %v2355_v37, %v3610_v39  ;;  %v2370_v31 = vcombine.high %v2362_v22, %v2362_v22  ;;  %v2373_v25 = vunpack.i.h.s16 %v2362_v22  ;;  %v2883_v15 = vpack.i.b16 %v2362_v22, %v2362_v22 }
 0x558   : > { %v2488_v7 = vpack.c.bf16 %v2487_v45, %v2487_v45 }
 0x559   : > { %v2371_v56 = vcombine.high %v2369_v12, %v2369_v12  ;;  %v2375_v40 = vunpack.i.h.s16 %v2369_v12  ;;  %v2377_v14 = vunpack.i.h.s16 %v2370_v31  ;;  %v2381_v38 = vpack.i.b16 %v2373_v25, %v2373_v25 }
 0x55a   : > { %v2884_v11 = vpack.i.b16 %v2369_v12, %v2369_v12  ;;  %v2885_v20 = vpack.i.b16 %v2370_v31, %v2370_v31  ;;  %v2394_v10 = vrot.slane %v2883_v15, %v3621_v1  ;;  %v2496_v26 = vrot.slane %v2488_v7, %v3610_v39 }
 0x55b   : > { %v2379_v54 = vunpack.i.h.s16 %v2371_v56  ;;  %v2383_v5 = vpack.i.b16 %v2375_v40, %v2375_v40  ;;  %v2385_v0 = vpack.i.b16 %v2377_v14, %v2377_v14  ;;  %v2886_v4 = vpack.i.b16 %v2371_v56, %v2371_v56 }
 0x55c   : > { %v2401_v13 = vrot.slane %v2381_v38, %v3621_v1  ;;  %v2408_v36 = vrot.slane %v2884_v11, %v3621_v1  ;;  %v2422_v32 = vrot.slane %v2885_v20, %v3621_v1  ;;  %v2456_v3 = vsel %vm3725_vm6, %v2394_v10, %v2455_v33 }
 0x55d   : > { %v2387_v46 = vpack.i.b16 %v2379_v54, %v2379_v54  ;;  %v2415_v41 = vrot.slane %v2383_v5, %v3621_v1  ;;  %v2429_v21 = vrot.slane %v2385_v0, %v3621_v1  ;;  %v2436_v35 = vrot.slane %v2886_v4, %v3621_v1  ;;  %2457 = vst [vmem:[%s3618_s8] sm:$0x2] %v2456_v3 }
 0x55e   : > { %v2459_v28 = vsel %vm3725_vm6, %v2401_v13, %v2458_v50  ;;  %v2462_v59 = vsel %vm3725_vm6, %v2408_v36, %v2461_v48  ;;  %v2468_v63 = vsel %vm3725_vm6, %v2422_v32, %v2467_v60  ;;  %v2497_v42 = vcombine.high %v2496_v26, %v2496_v26 }
 0x55f   : > { %v2443_v29 = vrot.slane %v2387_v46, %v3621_v1  ;;  %2460 = vst [vmem:[%s3618_s8 + $0x2] sm:$0x2] %v2459_v28  ;;  %2463 = vst [vmem:[%s3618_s8 + $0x4] sm:$0x2] %v2462_v59  ;;  %v2465_v2 = vsel %vm3725_vm6, %v2415_v41, %v2464_v53  ;;  %v2471_v6 = vsel %vm3725_vm6, %v2429_v21, %v2470_v55 }
 0x560   : > { %2469 = vst [vmem:[%s3618_s8 + $0x8] sm:$0x2] %v2468_v63  ;;  %v2474_v16 = vsel %vm3725_vm6, %v2436_v35, %v2473_v17  ;;  %2466 = vst [vmem:[%s3618_s8 + $0x6] sm:$0x2] %v2465_v2  ;;  %v2504_v44 = vrot.slane %v2496_v26, %v3610_v39  ;;  %v2511_v43 = vrot.slane %v2497_v42, %v3610_v39 }
 0x561   : > { %2472 = vst [vmem:[%s3618_s8 + $0xa] sm:$0x2] %v2471_v6  ;;  %2475 = vst [vmem:[%s3618_s8 + $0xc] sm:$0x2] %v2474_v16  ;;  %v2477_v19 = vsel %vm3725_vm6, %v2443_v29, %v2476_v27 }
 0x562   : > { %2478 = vst [vmem:[%s3618_s8 + $0xe] sm:$0x2] %v2477_v19  ;;  %v2512_v18 = vcombine.high %v2504_v44, %v2504_v44  ;;  %v2513_v58 = vcombine.high %v2511_v43, %v2511_v43  ;;  %v2515_v49 = vunpack.i.h.s16 %v2504_v44  ;;  %v2517_v47 = vunpack.i.h.s16 %v2511_v43 }
 0x563   : > { %v2887_v52 = vpack.i.b16 %v2504_v44, %v2504_v44  ;;  %v2888_v57 = vpack.i.b16 %v2511_v43, %v2511_v43 }
 0x564   : > { %v2519_v39 = vunpack.i.h.s16 %v2512_v18  ;;  %v2521_v24 = vunpack.i.h.s16 %v2513_v58  ;;  %v2523_v62 = vpack.i.b16 %v2515_v49, %v2515_v49  ;;  %v2525_v34 = vpack.i.b16 %v2517_v47, %v2517_v47  ;;  %v2596_v23 = vld [vmem:[%s3618_s8] sm:$0x2] }
 0x565   : > { %v2889_v30 = vpack.i.b16 %v2512_v18, %v2512_v18  ;;  %v2890_v9 = vpack.i.b16 %v2513_v58, %v2513_v58  ;;  %v2536_v37 = vrot.slane %v2887_v52, %v3621_v1  ;;  %v2550_v22 = vrot.slane %v2888_v57, %v3621_v1 }
 0x566   : > { %v2527_v45 = vpack.i.b16 %v2519_v39, %v2519_v39  ;;  %v2529_v51 = vpack.i.b16 %v2521_v24, %v2521_v24  ;;  %v2543_v12 = vrot.slane %v2523_v62, %v3621_v1  ;;  %v2557_v31 = vrot.slane %v2525_v34, %v3621_v1  ;;  %v2599_v25 = vld [vmem:[%s3618_s8 + $0x2] sm:$0x2]  ;;  %v2602_v15 = vld [vmem:[%s3618_s8 + $0x4] sm:$0x2] }
 0x567   : > { %v2608_v7 = vld [vmem:[%s3618_s8 + $0x8] sm:$0x2]  ;;  %v2564_v8 = vrot.slane %v2889_v30, %v3621_v1  ;;  %v2578_v33 = vrot.slane %v2890_v9, %v3621_v1  ;;  %v2597_v56 = vsel %vm3773_vm8, %v2536_v37, %v2596_v23  ;;  %v2603_v40 = vsel %vm3773_vm8, %v2550_v22, %v2602_v15  ;;  %v2605_v14 = vld [vmem:[%s3618_s8 + $0x6] sm:$0x2] }
 0x568   : > { %v2611_v38 = vld [vmem:[%s3618_s8 + $0xa] sm:$0x2]  ;;  %v2614_v11 = vld [vmem:[%s3618_s8 + $0xc] sm:$0x2]  ;;  %v2571_v20 = vrot.slane %v2527_v45, %v3621_v1  ;;  %v2585_v10 = vrot.slane %v2529_v51, %v3621_v1  ;;  %2598 = vst [vmem:[%s3618_s8] sm:$0x2] %v2597_v56  ;;  %v2600_v26 = vsel %vm3773_vm8, %v2543_v12, %v2599_v25  ;;  %v2606_v50 = vsel %vm3773_vm8, %v2557_v31, %v2605_v14 }
 0x569   : > { %2604 = vst [vmem:[%s3618_s8 + $0x4] sm:$0x2] %v2603_v40  ;;  %2601 = vst [vmem:[%s3618_s8 + $0x2] sm:$0x2] %v2600_v26  ;;  %v2609_v48 = vsel %vm3773_vm8, %v2564_v8, %v2608_v7  ;;  %v2615_v60 = vsel %vm3773_vm8, %v2578_v33, %v2614_v11  ;;  %v2617_v54 = vld [vmem:[%s3618_s8 + $0xe] sm:$0x2] }
 0x56a   : > { %2607 = vst [vmem:[%s3618_s8 + $0x6] sm:$0x2] %v2606_v50  ;;  %2610 = vst [vmem:[%s3618_s8 + $0x8] sm:$0x2] %v2609_v48  ;;  %v2612_v1 = vsel %vm3773_vm8, %v2571_v20, %v2611_v38  ;;  %v2618_v5 = vsel %vm3773_vm8, %v2585_v10, %v2617_v54 }
 0x56b   : > { %2616 = vst [vmem:[%s3618_s8 + $0xc] sm:$0x2] %v2615_v60  ;;  %2613 = vst [vmem:[%s3618_s8 + $0xa] sm:$0x2] %v2612_v1 }
 0x56c   : > { %2619 = vst [vmem:[%s3618_s8 + $0xe] sm:$0x2] %v2618_v5 }
 0x56d PF: > { %s14_s17 = sadd.s32 1, %s3039_s17   ;;  %s3844_s15 = smov %s3035_s16 }
 0x56e   : > { %p11_p5 = scmp.ge.s32.totalorder %s14_s17, 4   ;;  %s3845_s16 = smov %s3847_s18 }
 0x570   :  { %13 = sbr.rel (!%p11_p5) target bundleno = 2 (0x2), region = 92 }

// kernel: _lambda_.62
= control target key start
LH: loop header
LB: loop body
LE: loop exit
PB: predicated region body
PF: predicated region fallthrough
CT: control target
= control target key end

     0   :  { %vm19_vm0 = vcmask 523264   ;;  %v151_v0 = vmov 0.0   ;;  %vm152_vm1 = vmmov 0   ;;  %vm47_vm2 = vcmask 261120   ;;  %s195_s1 = inlined_call_operand.vmem [shape: bf16[32,64], index: 1, kind: input, shape index: {}]   ;;  %s196_s0 = inlined_call_operand.vmem [shape: bf16[16,32], index: 0, kind: input, shape index: {}]   ;;  %s197_s2 = inlined_call_operand.vmem [shape: f32[1,64], index: 2, kind: input, shape index: {}]   ;;  %s198_s3 = inlined_call_operand.vmem [shape: bf16[16,64], index: 3, kind: output, shape index: {}]  }
   0x1   :  { %138 = vmatprep.subr.bf16.mxu0 %v151_v0  ;;  %v148_v1 = vld [vmem:[%s195_s1] sm:$0xff]   ;;  %142 = vmatprep.mubr.msk.bf16.mxu0 %vm152_vm1, %v151_v0  ;;  %20 = vst.msk [vmem:[#allocation2] sm:$0xff] %vm19_vm0, %v151_v0  ;;  %21 = vst.msk [vmem:[#allocation2 + $0x8] sm:$0xff] %vm19_vm0, %v151_v0  ;;  %v149_v2 = vld [vmem:[%s195_s1 + $0x8] sm:$0xff]   ;;  %vm119_vm3 = vcmask 519168  }
   0x2   :  { %139 = vmatpush3.bf16.msra.mxu0 %v148_v1  ;;  %v150_v3 = vld [vmem:[%s196_s0] sm:$0xff]  }
   0x3   :  { %140 = vmatprep.subr.bf16.mxu0 %v151_v0  ;;  %v130_v12 = vld [vmem:[%s197_s2] ss:$0 sm:$0xff] }
   0x6   :  { %141 = vmatpush3.bf16.msra.mxu0 %v149_v2 }
   0x8   :  { %v22_v4 = vld [vmem:[#allocation2] sm:$0xff]  ;;  %v23_v6 = vld [vmem:[#allocation2 + $0x8] sm:$0xff] }
   0x9   :  { %143 = vmatmul.mubr.msk.bf16.vlgmr.msra.gmra.mrb[0].mxu0 %vm47_vm2, %v150_v3 }
  0xdc   :  { %v85_v5 = vpop.f32.mrb[0].mxu0 }
  0xdd   :  { %v92_v7 = vadd.f32 %v85_v5, %v22_v4  ;;  %v144_v8 = vpop.f32.mrb[1].mxu0 }
  0xde   :  { %v88_v9 = vpop.f32.mrb[2].mxu0 }
  0xdf   :  { %95 = vst.msk [vmem:[#allocation2] sm:$0xff] %vm19_vm0, %v92_v7  ;;  %v93_v10 = vadd.f32 %v88_v9, %v23_v6  ;;  %v145_v11 = vpop.f32.mrb[3].mxu0 }
  0xe1   :  { %96 = vst.msk [vmem:[#allocation2 + $0x8] sm:$0xff] %vm19_vm0, %v93_v10 }
  0xe6   :  { %v100_v13 = vld [vmem:[#allocation2] sm:$0xff] }
  0xe7   :  { %v109_v14 = vadd.f32 %v130_v12, %v100_v13 }
  0xe8   :  { %v101_v15 = vld [vmem:[#allocation2 + $0x8] sm:$0xff] }
  0xe9   :  { %v133_v16 = vpack.c.bf16 %v109_v14, %v109_v14  ;;  %v110_v17 = vadd.f32 %v130_v12, %v101_v15 }
  0xeb   :  { %120 = vst.msk [vmem:[%s198_s3] sm:$0xf] %vm119_vm3, %v133_v16  ;;  %v134_v18 = vpack.c.bf16 %v110_v17, %v110_v17 }
  0xed   :  { %121 = vst.msk [vmem:[%s198_s3 + $0x4] sm:$0xf] %vm119_vm3, %v134_v18 }

// kernel: _lambda_.47
= control target key start
LH: loop header
LB: loop body
LE: loop exit
PB: predicated region body
PF: predicated region fallthrough
CT: control target
= control target key end

     0   :  { %vm22_vm0 = vcmask 261120   ;;  %v171_v0 = vmov 0.0   ;;  %vm172_vm1 = vmmov 0   ;;  %vm66_vm2 = vcmask 523264   ;;  %s234_s1 = inlined_call_operand.vmem [shape: bf16[64,32], index: 1, kind: input, shape index: {}]   ;;  %s235_s0 = inlined_call_operand.vmem [shape: bf16[16,64], index: 0, kind: input, shape index: {}]   ;;  %s236_s2 = inlined_call_operand.vmem [shape: f32[1,32], index: 2, kind: input, shape index: {}]   ;;  %s237_s3 = inlined_call_operand.vmem [shape: f32[16,32], index: 3, kind: input, shape index: {}]   ;;  %s238_s4 = inlined_call_operand.vmem [shape: f32[16,32], index: 4, kind: output, shape index: {}]  }
   0x1   :  { %152 = vmatprep.subr.bf16.mxu0 %v171_v0  ;;  %v166_v1 = vld [vmem:[%s234_s1] sm:$0xff]   ;;  %160 = vmatprep.mubr.msk.bf16.mxu0 %vm172_vm1, %v171_v0  ;;  %23 = vst.msk [vmem:[#allocation2] sm:$0xff] %vm22_vm0, %v171_v0  ;;  %24 = vst.msk [vmem:[#allocation2 + $0x8] sm:$0xff] %vm22_vm0, %v171_v0  ;;  %v167_v2 = vld [vmem:[%s234_s1 + $0x8] sm:$0xff]  }
   0x2   :  { %153 = vmatpush3.bf16.msra.mxu0 %v166_v1  ;;  %v168_v3 = vld [vmem:[%s234_s1 + $0x10] sm:$0xff]   ;;  %v169_v4 = vld [vmem:[%s234_s1 + $0x18] sm:$0xff]   ;;  %v170_v5 = vld [vmem:[%s235_s0] sm:$0xff]  }
   0x3   :  { %154 = vmatprep.subr.bf16.mxu0 %v171_v0  ;;  %v146_v14 = vld [vmem:[%s236_s2] ss:$0 sm:$0xff]  ;;  %v131_v18 = vld [vmem:[%s237_s3 + $0x8] sm:$0xff] }
   0x4   :  { %v130_v16 = vld [vmem:[%s237_s3] sm:$0xff] }
   0x6   :  { %155 = vmatpush3.bf16.msra.mxu0 %v167_v2 }
   0x7   :  { %156 = vmatprep.subr.bf16.mxu0 %v171_v0 }
   0x8   :  { %v25_v6 = vld [vmem:[#allocation2] sm:$0xff]  ;;  %v26_v8 = vld [vmem:[#allocation2 + $0x8] sm:$0xff] }
   0xa   :  { %157 = vmatpush3.bf16.msra.mxu0 %v168_v3 }
   0xb   :  { %158 = vmatprep.subr.bf16.mxu0 %v171_v0 }
   0xe   :  { %159 = vmatpush3.bf16.msra.mxu0 %v169_v4 }
  0x11   :  { %161 = vmatmul.mubr.msk.bf16.vlgmr.msra.gmra.mrb[0].mxu0 %vm66_vm2, %v170_v5 }
  0xe4   :  { %v104_v7 = vpop.f32.mrb[0].mxu0 }
  0xe5   :  { %v111_v9 = vadd.f32 %v104_v7, %v25_v6  ;;  %v162_v10 = vpop.f32.mrb[1].mxu0 }
  0xe6   :  { %v107_v11 = vpop.f32.mrb[2].mxu0 }
  0xe7   :  { %114 = vst.msk [vmem:[#allocation2] sm:$0xff] %vm22_vm0, %v111_v9  ;;  %v112_v12 = vadd.f32 %v107_v11, %v26_v8  ;;  %v163_v13 = vpop.f32.mrb[3].mxu0 }
  0xe9   :  { %115 = vst.msk [vmem:[#allocation2 + $0x8] sm:$0xff] %vm22_vm0, %v112_v12 }
  0xee   :  { %v119_v15 = vld [vmem:[#allocation2] sm:$0xff] }
  0xef   :  { %v128_v17 = vadd.f32 %v146_v14, %v119_v15 }
  0xf0   :  { %v120_v19 = vld [vmem:[#allocation2 + $0x8] sm:$0xff] }
  0xf1   :  { %v132_v20 = vadd.f32 %v130_v16, %v128_v17  ;;  %v129_v21 = vadd.f32 %v146_v14, %v120_v19 }
  0xf3   :  { %134 = vst.msk [vmem:[%s238_s4] sm:$0xff] %vm22_vm0, %v132_v20  ;;  %v133_v22 = vadd.f32 %v131_v18, %v129_v21 }
  0xf5   :  { %135 = vst.msk [vmem:[%s238_s4 + $0x8] sm:$0xff] %vm22_vm0, %v133_v22 }

// kernel: _lambda_.43
= control target key start
LH: loop header
LB: loop body
LE: loop exit
PB: predicated region body
PF: predicated region fallthrough
CT: control target
= control target key end

     0   :  { %s3060_s15 = smov 0   ;;  %s3062_s16 = smov 0   ;;  %s3812_s0 = inlined_call_operand.vmem [shape: bf16[2,8,4,8], index: 0, kind: input, shape index: {}]   ;;  %s3813_s1 = inlined_call_operand.vmem [shape: bf16[2,8,4,8], index: 1, kind: input, shape index: {}]   ;;  %s3814_s2 = inlined_call_operand.vmem [shape: bf16[2,8,4,8], index: 2, kind: input, shape index: {}]   ;;  %s3815_s3 = inlined_call_operand.vmem [shape: s32[2,1,8], index: 3, kind: input, shape index: {}]   ;;  %s3816_s4 = inlined_call_operand.vmem [shape: bf16[2,8,4,8], index: 4, kind: output, shape index: {}]  }
   0x1   :  { %s3064_s17 = smov 0  }
   0x2 LB: > { %s33_s18 = sadd.s32 1, %s3023_s16  ;;  %p2750_p0 = scmp.ge.s32.totalorder %s3027_s17, 1  ;;  %s3027_s17 = sphi %s3064_s17, %s14_s17   ;;  %s3023_s16 = sphi %s3062_s16, %s3829_s16   ;;  %s3019_s15 = sphi %s3060_s15, %s3828_s15  }
   0x3   : > { %p35_p1 = scmp.ge.s32.totalorder %s33_s18, 2  ;;  %p237_p2 = scmp.lt.s32.totalorder %s3027_s17, 3 }
   0x5   : > { %s3831_s18 = smov (%p35_p1, %s33_s18), 0  ;;  %p238_p3 = pnand %p2750_p0, %p237_p2 }
   0x6   : > { %p296_p4 = scmp.lt.s32.totalorder (!%p238_p3), %s3019_s15, 1  ;;  %vm355_vm0 = vcmask (!%p238_p3), 64512   ;;  %v3029_v0 = vmov (!%p238_p3), 0.0   ;;  %vm3030_vm1 = vmmov (!%p238_p3), 0   ;;  %vm465_vm2 = vcmask (!%p238_p3), 1041409  }
   0x7   : > { %241 = sbr.rel (%p238_p3) target bundleno = 1389 (0x56d), region = 36  ;;  %2901 = vmatprep.subr.bf16.mxu0 (!%p238_p3), %v3029_v0  ;;  %356 = vst.msk [vmem:[#allocation4] sm:$0xff] (!%p238_p3), %vm355_vm0, %v3029_v0  ;;  %357 = vst.msk [vmem:[#allocation4 + $0x8] sm:$0xff] (!%p238_p3), %vm355_vm0, %v3029_v0  ;;  %2907 = vmatprep.subr.bf16.mxu1 (!%p238_p3), %v3029_v0  ;;  %vm468_vm3 = vcmask (!%p238_p3), 1042434   ;;  %vm471_vm4 = vcmask (!%p238_p3), 1043459   ;;  %vm474_vm5 = vcmask (!%p238_p3), 1044484  }
   0x8   : > { %358 = vst.msk [vmem:[#allocation4 + $0x10] sm:$0xff] (!%p238_p3), %vm355_vm0, %v3029_v0  ;;  %359 = vst.msk [vmem:[#allocation4 + $0x18] sm:$0xff] (!%p238_p3), %vm355_vm0, %v3029_v0  ;;  %2903 = vmatprep.mubr.msk.bf16.mxu0 (!%p238_p3), %vm3030_vm1, %v3029_v0  ;;  %2909 = vmatprep.mubr.msk.bf16.mxu1 (!%p238_p3), %vm3030_vm1, %v3029_v0  ;;  %vm477_vm6 = vcmask (!%p238_p3), 1045509   ;;  %vm480_vm7 = vcmask (!%p238_p3), 1046534   ;;  %vm483_vm8 = vcmask (!%p238_p3), 1047559   ;;  %vm346_vm9 = vcmask (!%p238_p3), 7168  }
   0x9   : > { %351 = vst.msk [vmem:[#allocation3] sm:$0xff] (!%p238_p3), %vm346_vm9, %v3029_v0  ;;  %352 = vst.msk [vmem:[#allocation3 + $0x8] sm:$0xff] (!%p238_p3), %vm346_vm9, %v3029_v0  ;;  %vm744_vm12 = vcmask (!%p238_p3), 1043456   ;;  %vm2157_vm13 = vcmask (!%p238_p3), 57344   ;;  %vm2158_vm14 = vsmask.f32 (!%p238_p3), 256 }
   0xa   : > { %353 = vst.msk [vmem:[#allocation3 + $0x10] sm:$0xff] (!%p238_p3), %vm346_vm9, %v3029_v0  ;;  %354 = vst.msk [vmem:[#allocation3 + $0x18] sm:$0xff] (!%p238_p3), %vm346_vm9, %v3029_v0 }
   0xb   : > { %vm3611_vm15 = vmand (!%p238_p3), %vm2157_vm13, %vm2158_vm14 }
   0xe   : > { %s3833_s15 = smov (!%p296_p4, %s3019_s15), 1 }
   0xf   : > { %s3095_s19 = sshll.u32 %s3833_s15, 4  ;;  %s330_s28 = scalar_lea.vmem %s3815_s3, %s3833_s15 }
  0x10   : > { %s3101_s22 = scalar_lea.vmem %s3813_s1, %s3095_s19  ;;  %s3143_s25 = scalar_lea.vmem %s3812_s0, %s3095_s19 }
  0x11   : > { %v3104_v1 = vld.sshfl [vmem:[%s3101_s22] sm:$0x1 pattern:$0x76325410]  ;;  %s3256_s5 = scalar_lea.vmem %s3814_s2, %s3095_s19  ;;  %s3604_s8 = scalar_lea.vmem %s3816_s4, %s3095_s19 }
  0x12   : > { %v3107_v2 = vld.sshfl [vmem:[%s3101_s22 + $0x2] sm:$0x1 pattern:$0x76325410]  ;;  %v550_v4 = vunpack.c.l.b16 %v3104_v1 }
  0x13   : > { %v3110_v3 = vld.sshfl [vmem:[%s3101_s22 + $0x4] sm:$0x1 pattern:$0x76325410]  ;;  %v551_v5 = vunpack.c.l.b16 %v3107_v2 }
  0x14   : > { %v3115_v6 = vld.sshfl [vmem:[%s3101_s22 + $0x6] sm:$0x1 pattern:$0x76325410]  ;;  %v552_v7 = vunpack.c.l.b16 %v3110_v3 }
  0x15   : > { %v3119_v8 = vld.sshfl [vmem:[%s3101_s22 + $0x8] sm:$0x1 pattern:$0x76325410]  ;;  %v553_v9 = vunpack.c.l.b16 %v3115_v6  ;;  %v558_v10 = vrot.slane %v551_v5, 7 }
  0x16   : > { %v3125_v11 = vld.sshfl [vmem:[%s3101_s22 + $0xa] sm:$0x1 pattern:$0x76325410]  ;;  %v554_v12 = vunpack.c.l.b16 %v3119_v8  ;;  %v560_v13 = vrot.slane %v552_v7, 6 }
  0x17   : > { %v3131_v14 = vld.sshfl [vmem:[%s3101_s22 + $0xc] sm:$0x1 pattern:$0x76325410]  ;;  %v555_v15 = vunpack.c.l.b16 %v3125_v11  ;;  %v559_v16 = vsel %vm465_vm2, %v558_v10, %v550_v4  ;;  %v562_v17 = vrot.slane %v553_v9, 5  ;;  %v3031_v10 = vmov 0  }
  0x18   : > { %v3146_v18 = vld.sshfl [vmem:[%s3101_s22 + $0xe] sm:$0x1 pattern:$0x76325410]  ;;  %v556_v19 = vunpack.c.l.b16 %v3131_v14  ;;  %v561_v20 = vsel %vm468_vm3, %v560_v13, %v559_v16  ;;  %v564_v21 = vrot.slane %v554_v12, 4  ;;  %2979 = vset.pattern.permute.xlu0 %v3031_v10  ;;  %2980 = vset.pattern.permute.xlu1 %v3031_v10  ;;  %v363_v16 = vlaneseq }
  0x19   : > { %v557_v22 = vunpack.c.l.b16 %v3146_v18  ;;  %v563_v23 = vsel %vm471_vm4, %v562_v17, %v561_v20  ;;  %v566_v24 = vrot.slane %v555_v15, 3  ;;  %v3157_v25 = vld.sshfl [vmem:[%s3143_s25] sm:$0x1 pattern:$0x76325410]  ;;  %v980_v3 = vrot.slane %v554_v12, 5 }
  0x1a   : > { %v565_v26 = vsel %vm474_vm5, %v564_v21, %v563_v23  ;;  %v568_v27 = vrot.slane %v556_v19, 2  ;;  %v3163_v28 = vld.sshfl [vmem:[%s3143_s25 + $0x2] sm:$0x1 pattern:$0x76325410]  ;;  %v456_v32 = vunpack.c.l.b16 %v3157_v25  ;;  %v3240_v20 = vshrl.u32 %v363_v16, 7 }
  0x1b   : > { %v567_v29 = vsel %vm477_vm6, %v566_v24, %v565_v26  ;;  %v570_v30 = vrot.slane %v557_v22, 1  ;;  %v3169_v31 = vld.sshfl [vmem:[%s3143_s25 + $0x4] sm:$0x1 pattern:$0x76325410]  ;;  %v457_v33 = vunpack.c.l.b16 %v3163_v28 }
  0x1c   : > { %v569_v34 = vsel %vm480_vm7, %v568_v27, %v567_v29  ;;  %v3175_v35 = vld.sshfl [vmem:[%s3143_s25 + $0x6] sm:$0x1 pattern:$0x76325410]  ;;  %v458_v36 = vunpack.c.l.b16 %v3169_v31  ;;  %v3032_v13 = vmov -1e+30  }
  0x1d   : > { %v571_v37 = vsel %vm483_vm8, %v570_v30, %v569_v34  ;;  %v3180_v38 = vld.sshfl [vmem:[%s3143_s25 + $0x8] sm:$0x1 pattern:$0x76325410]  ;;  %v459_v39 = vunpack.c.l.b16 %v3175_v35  ;;  %v464_v40 = vrot.slane %v457_v33, 7  ;;  %347 = vst.msk [vmem:[#allocation2] sm:$0xff] %vm346_vm9, %v3032_v13 }
  0x1e   : > { %v572_v41 = vpack.c.b16 %v571_v37, %v571_v37  ;;  %v3186_v42 = vld.sshfl [vmem:[%s3143_s25 + $0xa] sm:$0x1 pattern:$0x76325410]  ;;  %v460_v43 = vunpack.c.l.b16 %v3180_v38  ;;  %v467_v44 = vrot.slane %v458_v36, 6  ;;  %348 = vst.msk [vmem:[#allocation2 + $0x8] sm:$0xff] %vm346_vm9, %v3032_v13 }
  0x1f   : > { %v3192_v45 = vld.sshfl [vmem:[%s3143_s25 + $0xc] sm:$0x1 pattern:$0x76325410]  ;;  %v461_v46 = vunpack.c.l.b16 %v3186_v42  ;;  %v466_v47 = vsel %vm465_vm2, %v464_v40, %v456_v32  ;;  %v470_v48 = vrot.slane %v459_v39, 5  ;;  %349 = vst.msk [vmem:[#allocation2 + $0x10] sm:$0xff] %vm346_vm9, %v3032_v13 }
  0x20   : > { %v578_v49 = vsel %vm355_vm0, %v572_v41, 0  ;;  %v3202_v50 = vld.sshfl [vmem:[%s3143_s25 + $0xe] sm:$0x1 pattern:$0x76325410]  ;;  %v462_v51 = vunpack.c.l.b16 %v3192_v45  ;;  %v469_v52 = vsel %vm468_vm3, %v467_v44, %v466_v47  ;;  %v473_v53 = vrot.slane %v460_v43, 4 }
  0x21   : > { %2902 = vmatpush3.bf16.xpose.msra.mxu0 %v578_v49  ;;  %v463_v54 = vunpack.c.l.b16 %v3202_v50  ;;  %v472_v55 = vsel %vm471_vm4, %v470_v48, %v469_v52  ;;  %v476_v56 = vrot.slane %v461_v46, 3  ;;  %350 = vst.msk [vmem:[#allocation2 + $0x18] sm:$0xff] %vm346_vm9, %v3032_v13  ;;  %v360_v17 = vld [vmem:[%s330_s28] sm:$0x1]  ;;  %v365_v21 = vsub.s32 0, %v3240_v20 }
  0x22   : > { %v475_v57 = vsel %vm474_vm5, %v473_v53, %v472_v55  ;;  %v479_v58 = vrot.slane %v462_v51, 2  ;;  %2919 = vmatprep.subr.bf16.mxu0 %v3029_v0  ;;  %vm361_vm10 = vcmp.gt.s32.totalorder %v360_v17, 0  ;;  %v3259_v41 = vld.sshfl [vmem:[%s3256_s5 + $0x2] sm:$0x1 pattern:$0x76325410] }
  0x23   : > { %v478_v59 = vsel %vm477_vm6, %v476_v56, %v475_v57  ;;  %v482_v60 = vrot.slane %v463_v54, 1  ;;  %v362_v23 = vsel %vm361_vm10, 1, %v3031_v10  ;;  %v3264_v47 = vld.sshfl [vmem:[%s3256_s5 + $0x4] sm:$0x1 pattern:$0x76325410]  ;;  %v719_v48 = vunpack.c.l.b16 %v3259_v41 }
  0x24   : > { %v481_v61 = vsel %vm480_vm7, %v479_v58, %v478_v59  ;;  %v3243_v24 = vrot.slane %v362_v23, %v365_v21  ;;  %v3261_v44 = vld [vmem:[#allocation2] sm:$0xff]  ;;  %v720_v52 = vunpack.c.l.b16 %v3264_v47  ;;  %v3281_v59 = vld.sshfl [vmem:[%s3256_s5 + $0x8] sm:$0x1 pattern:$0x76325410]  ;;  %v887_v2 = vrot.slane %v456_v32, 1 }
  0x25   : > { %v484_v62 = vsel %vm483_vm8, %v482_v60, %v481_v61  ;;  %v3268_v49 = vld.sshfl [vmem:[%s3256_s5] sm:$0x1 pattern:$0x76325410]  ;;  %v726_v57 = vrot.slane %v719_v48, 7  ;;  %v889_v25 = vrot.slane %v458_v36, 7 }
  0x26   : > { %v485_v63 = vpack.c.b16 %v484_v62, %v484_v62  ;;  %vm367_vm11 = vcmp.eq.s32.totalorder %v3243_v24, 1  ;;  %v3272_v55 = vld.sshfl [vmem:[%s3256_s5 + $0x6] sm:$0x1 pattern:$0x76325410]  ;;  %v718_v56 = vunpack.c.l.b16 %v3268_v49  ;;  %v728_v61 = vrot.slane %v720_v52, 6 }
  0x27   : > { %v721_v60 = vunpack.c.l.b16 %v3272_v55  ;;  %v3287_v62 = vld.sshfl [vmem:[%s3256_s5 + $0xa] sm:$0x1 pattern:$0x76325410]  ;;  %v897_v42 = vrot.slane %v462_v51, 3 }
  0x28   : > { %2904 = vmatmul.mubr.msk.bf16.vlgmr.msra.gmra.mrb[0].mxu0 %vm355_vm0, %v485_v63  ;;  %v3817_v63 = vunpack.c.l.b16 %v3281_v59  ;;  %v727_v10 = vsel %vm465_vm2, %v726_v57, %v718_v56  ;;  %v3299_v16 = vld.sshfl [vmem:[%s3256_s5 + $0xc] sm:$0x1 pattern:$0x76325410]  ;;  %v723_v17 = vunpack.c.l.b16 %v3287_v62  ;;  %v1143_v24 = vrot.slane %v718_v56, 1 }
  0x29   : > { %2921 = vmatprep.mubr.msk.bf16.mxu0 %vm3030_vm1, %v3029_v0  ;;  %v729_v21 = vsel %vm468_vm3, %v728_v61, %v727_v10  ;;  %v730_v23 = vrot.slane %v721_v60, 5  ;;  %v3354_v12 = vld.sshfl [vmem:[%s3143_s25] sm:$0x2 pattern:$0x76325410] }
  0x2a   : > { %v3391_v35 = vld.sshfl [vmem:[%s3143_s25 + $0x6] sm:$0x2 pattern:$0x76325410]  ;;  %v1151_v47 = vrot.slane %v723_v17, 4 }
  0x2b   : > { %v2815_v38 = vld.sshfl [vmem:[%s3143_s25 + $0x8] sm:$0x2 pattern:$0x76325410] }
  0xfb   : > { %v614_v26 = vpop.f32.mrb[0].mxu0 }
  0xfc   : > { %v620_v27 = vmul.f32 0.35355338, %v614_v26  ;;  %v2905_v29 = vpop.f32.mrb[1].mxu0 }
  0xfd   : > { %v617_v30 = vpop.f32.mrb[2].mxu0  ;;  %v3306_v26 = vld.sshfl [vmem:[%s3256_s5 + $0xe] sm:$0x1 pattern:$0x76325410]  ;;  %v732_v29 = vrot.slane %v3817_v63, 4 }
  0xfe   : > { %v2906_v34 = vpop.f32.mrb[3].mxu0  ;;  %v3248_v37 = vsel %vm367_vm11, %v620_v27, -1e+09  ;;  %v724_v27 = vunpack.c.l.b16 %v3299_v16  ;;  %v725_v30 = vunpack.c.l.b16 %v3306_v26  ;;  %v3523_v16 = vld [vmem:[#allocation2 + $0x18] sm:$0xff] }
  0xff   : > { %v623_v40 = vsel %vm355_vm0, %v3248_v37, -inf  ;;  %v731_v34 = vsel %vm471_vm4, %v730_v23, %v729_v21 }
 0x100   : > { %624 = vmax.xlane.f32.xlu0 %v623_v40  ;;  %v734_v40 = vrot.slane %v723_v17, 3  ;;  %v736_v57 = vrot.slane %v724_v27, 2  ;;  %v738_v10 = vrot.slane %v725_v30, 1 }
 0x18d   : > { %v625_v53 = vpop.xlane.xlu0 %624 }
 0x18e   : > { %v3278_v58 = vmax.f32 %v3261_v44, %v625_v53  ;;  %v733_v53 = vsel %vm474_vm5, %v732_v29, %v731_v34  ;;  %v974_v29 = vrot.slane %v550_v4, 1  ;;  %v976_v34 = vrot.slane %v552_v7, 7  ;;  %v3343_v7 = vld.sshfl [vmem:[%s3101_s22 + $0x6] sm:$0x2 pattern:$0x76325410] }
 0x18f   : > { %v735_v61 = vsel %vm477_vm6, %v734_v40, %v733_v53  ;;  %v2819_v40 = vld.sshfl [vmem:[%s3101_s22] sm:$0x2 pattern:$0x76325410]  ;;  %v978_v53 = vrot.slane %v553_v9, 6  ;;  %v982_v9 = vrot.slane %v555_v15, 4  ;;  %v1385_v8 = vunpack.c.l.b16 %v3343_v7 }
 0x190   : > { %790 = vst.msk [vmem:[#allocation2] sm:$0xff] %vm346_vm9, %v3278_v58  ;;  %632 = vperm.xlu0 %2979, %v3278_v58   ;;  %v737_v13 = vsel %vm480_vm7, %v736_v57, %v735_v61  ;;  %v1382_v61 = vunpack.c.l.b16 %v2819_v40 }
 0x191   : > { %v739_v63 = vsel %vm483_vm8, %v738_v10, %v737_v13  ;;  %v975_v13 = vsel %vm465_vm2, %v551_v5, %v974_v29  ;;  %v2821_v5 = vld.sshfl [vmem:[%s3101_s22 + $0x4] sm:$0x2 pattern:$0x76325410]  ;;  %v1394_v28 = vrot.slane %v1385_v8, 7 }
 0x192   : > { %v740_v21 = vpack.c.b16 %v739_v63, %v739_v63  ;;  %v2820_v63 = vld.sshfl [vmem:[%s3101_s22 + $0x2] sm:$0x2 pattern:$0x76325410]  ;;  %v977_v57 = vsel %vm468_vm3, %v976_v34, %v975_v13  ;;  %v1390_v6 = vrot.slane %v1382_v61, 2  ;;  %v1384_v32 = vunpack.c.l.b16 %v2821_v5 }
 0x193   : > { %v1383_v1 = vunpack.c.l.b16 %v2820_v63  ;;  %v979_v4 = vsel %vm471_vm4, %v978_v53, %v977_v57  ;;  %v2812_v29 = vld.sshfl [vmem:[%s3143_s25 + $0x2] sm:$0x2 pattern:$0x76325410]  ;;  %v888_v34 = vsel %vm465_vm2, %v457_v33, %v887_v2  ;;  %v984_v13 = vrot.slane %v556_v19, 3 }
 0x194   : > { %v746_v23 = vsel %vm744_vm12, %v740_v21, 0  ;;  %v3349_v21 = vld.sshfl [vmem:[%s3101_s22 + $0x8] sm:$0x2 pattern:$0x76325410]  ;;  %v1295_v33 = vunpack.c.l.b16 %v3354_v12  ;;  %v1296_v53 = vunpack.c.l.b16 %v2812_v29  ;;  %v986_v57 = vrot.slane %v557_v22, 2 }
 0x195   : > { %2908 = vmatpush3.bf16.msra.mxu1 %v746_v23  ;;  %v1391_v10 = vrot.slane %v1383_v1, 1  ;;  %v981_v23 = vsel %vm474_vm5, %v980_v3, %v979_v4  ;;  %v3367_v63 = vld.sshfl [vmem:[%s3101_s22 + $0xa] sm:$0x2 pattern:$0x76325410]  ;;  %v1386_v31 = vunpack.c.l.b16 %v3349_v21  ;;  %v890_v14 = vsel %vm468_vm3, %v889_v25, %v888_v34 }
 0x196   : > { %2913 = vmatprep.subr.bf16.mxu1 %v3029_v0  ;;  %v983_v40 = vsel %vm477_vm6, %v982_v9, %v981_v23  ;;  %v891_v19 = vrot.slane %v459_v39, 6  ;;  %v3380_v3 = vld.sshfl [vmem:[%s3101_s22 + $0xc] sm:$0x2 pattern:$0x76325410]  ;;  %v1387_v5 = vunpack.c.l.b16 %v3367_v63  ;;  %v893_v22 = vrot.slane %v460_v43, 5 }
 0x197   : > { %v1392_v11 = vsel %vm465_vm2, %v1391_v10, %v1390_v6  ;;  %v3384_v2 = vld.sshfl [vmem:[%s3101_s22 + $0xe] sm:$0x2 pattern:$0x76325410]  ;;  %v1806_v6 = vrot.slane %v1382_v61, 3  ;;  %v1807_v10 = vrot.slane %v1383_v1, 2  ;;  %v985_v18 = vsel %vm480_vm7, %v984_v13, %v983_v40 }
 0x198   : > { %v1396_v9 = vrot.slane %v1386_v31, 6  ;;  %v2813_v21 = vld.sshfl [vmem:[%s3143_s25 + $0x4] sm:$0x2 pattern:$0x76325410]  ;;  %v1303_v23 = vrot.slane %v1295_v33, 2  ;;  %v892_v25 = vsel %vm471_vm4, %v891_v19, %v890_v14  ;;  %v1388_v61 = vunpack.c.l.b16 %v3380_v3 }
 0x199   : > { %v1304_v12 = vrot.slane %v1296_v53, 1  ;;  %v1809_v1 = vrot.slane %v1384_v32, 1  ;;  %v987_v29 = vsel %vm483_vm8, %v986_v57, %v985_v18  ;;  %v1398_v34 = vrot.slane %v1387_v5, 5 }
 0x19a   : > { %v1298_v43 = vunpack.c.l.b16 %v3391_v35  ;;  %v1389_v40 = vunpack.c.l.b16 %v3384_v2  ;;  %v1297_v63 = vunpack.c.l.b16 %v2813_v21  ;;  %v1400_v57 = vrot.slane %v1388_v61, 4  ;;  %v2816_v14 = vld.sshfl [vmem:[%s3143_s25 + $0xa] sm:$0x2 pattern:$0x76325410] }
 0x19b   : > { %v1299_v19 = vunpack.c.l.b16 %v2815_v38  ;;  %v2817_v18 = vld.sshfl [vmem:[%s3143_s25 + $0xc] sm:$0x2 pattern:$0x76325410]  ;;  %v1719_v35 = vrot.slane %v1295_v33, 3 }
 0x19c   : > { %v1402_v2 = vrot.slane %v1389_v40, 3  ;;  %v1301_v33 = vunpack.c.l.b16 %v2817_v18 }
 0x19d   : > { %v1309_v21 = vrot.slane %v1299_v19, 6 }
 0x20f   : > { %v633_v15 = vpop.permute.xlu0 %632 }
 0x210   : > { %v635_v36 = vsub.f32 %v3248_v37, %v633_v15  ;;  %v1393_v37 = vsel %vm468_vm3, %v1384_v32, %v1392_v11  ;;  %v1808_v11 = vsel %vm465_vm2, %v1807_v10, %v1806_v6  ;;  %v895_v15 = vrot.slane %v461_v46, 4 }
 0x211   : > { %v1395_v39 = vsel %vm471_vm4, %v1394_v28, %v1393_v37  ;;  %v1305_v32 = vsel %vm465_vm2, %v1304_v12, %v1303_v23  ;;  %v988_v28 = vpack.c.b16 %v987_v29, %v987_v29  ;;  %v1810_v3 = vsel %vm468_vm3, %v1809_v1, %v1808_v11 }
 0x212   : > { %v636_v4 = vmul.f32 1.442695, %v635_v36  ;;  %v1397_v13 = vsel %vm474_vm5, %v1396_v9, %v1395_v39  ;;  %v894_v36 = vsel %vm474_vm5, %v893_v22, %v892_v25  ;;  %v1307_v37 = vrot.slane %v1298_v43, 7 }
 0x213   : > { %v1399_v46 = vsel %vm477_vm6, %v1398_v34, %v1397_v13  ;;  %v1306_v6 = vsel %vm468_vm3, %v1297_v63, %v1305_v32  ;;  %v1812_v10 = vrot.slane %v1386_v31, 7  ;;  %v1300_v22 = vunpack.c.l.b16 %v2816_v14 }
 0x214   : > { %2981 = vpow2.f32 %v636_v4  ;;  %v896_v4 = vsel %vm477_vm6, %v895_v15, %v894_v36  ;;  %v1811_v9 = vsel %vm471_vm4, %v1385_v8, %v1810_v3  ;;  %v1720_v39 = vrot.slane %v1296_v53, 2  ;;  %v2818_v8 = vld.sshfl [vmem:[%s3143_s25 + $0xe] sm:$0x2 pattern:$0x76325410] }
 0x215   : > { %v993_v45 = vsel %vm355_vm0, %v988_v28, 0  ;;  %v1401_v51 = vsel %vm480_vm7, %v1400_v57, %v1399_v46  ;;  %v898_v12 = vsel %vm480_vm7, %v897_v42, %v896_v4  ;;  %v899_v31 = vrot.slane %v463_v54, 2 }
 0x216   : > { %v1308_v25 = vsel %vm471_vm4, %v1307_v37, %v1306_v6  ;;  %v1814_v1 = vrot.slane %v1387_v5, 6  ;;  %v1813_v53 = vsel %vm474_vm5, %v1812_v10, %v1811_v9  ;;  %v1722_v29 = vrot.slane %v1297_v63, 1 }
 0x217   : > { %v1403_v34 = vsel %vm483_vm8, %v1402_v2, %v1401_v51  ;;  %v1311_v38 = vrot.slane %v1300_v22, 5  ;;  %v1721_v11 = vsel %vm465_vm2, %v1720_v39, %v1719_v35  ;;  %v1310_v50 = vsel %vm474_vm5, %v1309_v21, %v1308_v25 }
 0x218   : > { %v1816_v54 = vrot.slane %v1388_v61, 5  ;;  %v900_v5 = vsel %vm483_vm8, %v899_v31, %v898_v12  ;;  %v1302_v15 = vunpack.c.l.b16 %v2818_v8  ;;  %v1815_v13 = vsel %vm477_vm6, %v1814_v1, %v1813_v53 }
 0x219   : > { %v1404_v63 = vpack.c.b16 %v1403_v34, %v1403_v34  ;;  %v1313_v36 = vrot.slane %v1301_v33, 4  ;;  %v1723_v32 = vsel %vm468_vm3, %v1722_v29, %v1721_v11  ;;  %v1312_v28 = vsel %vm477_vm6, %v1311_v38, %v1310_v50 }
 0x21a   : > { %v1818_v57 = vrot.slane %v1389_v40, 4  ;;  %v901_v14 = vpack.c.b16 %v900_v5, %v900_v5  ;;  %v1817_v61 = vsel %vm480_vm7, %v1816_v54, %v1815_v13  ;;  %v1725_v3 = vrot.slane %v1299_v19, 7 }
 0x21b   : > { %v1315_v42 = vrot.slane %v1302_v15, 3  ;;  %v1724_v46 = vsel %vm471_vm4, %v1298_v43, %v1723_v32  ;;  %v1409_v37 = vsel %vm355_vm0, %v1404_v63, 0  ;;  %v1314_v4 = vsel %vm480_vm7, %v1313_v36, %v1312_v28 }
 0x21c   : > { %v1819_v2 = vsel %vm483_vm8, %v1818_v57, %v1817_v61  ;;  %v1727_v6 = vrot.slane %v1300_v22, 6  ;;  %v1726_v10 = vsel %vm474_vm5, %v1725_v3, %v1724_v46  ;;  %v1729_v19 = vrot.slane %v1301_v33, 5  ;;  %v3480_v3 = vld [vmem:[#allocation2 + $0x8] sm:$0xff] }
 0x21d   : > { %v1316_v40 = vsel %vm483_vm8, %v1315_v42, %v1314_v4  ;;  %v1820_v43 = vpack.c.b16 %v1819_v2, %v1819_v2  ;;  %v1731_v35 = vrot.slane %v1302_v15, 4  ;;  %v3492_v4 = vld [vmem:[#allocation2 + $0x10] sm:$0xff]  ;;  %v1145_v2 = vrot.slane %v720_v52, 7 }
 0x21e   : > { %v3420_v23 = vpop.eup %2981  ;;  %v1728_v18 = vsel %vm477_vm6, %v1727_v6, %v1726_v10  ;;  %v1317_v9 = vpack.c.b16 %v1316_v40, %v1316_v40  ;;  %v1144_v6 = vsel %vm465_vm2, %v719_v48, %v1143_v24  ;;  %v1147_v10 = vrot.slane %v721_v60, 6 }
 0x21f   : > { %v653_v7 = vpack.c.bf16 %v3420_v23, %v3420_v23  ;;  %v1825_v22 = vsel %vm355_vm0, %v1820_v43, 0  ;;  %v1730_v39 = vsel %vm480_vm7, %v1729_v19, %v1728_v18  ;;  %v1146_v43 = vsel %vm468_vm3, %v1145_v2, %v1144_v6 }
 0x220   : > { %v3818_v19 = vunpack.c.l.b16 %v3281_v59  ;;  %v1148_v56 = vsel %vm471_vm4, %v1147_v10, %v1146_v43  ;;  %v1153_v48 = vrot.slane %v724_v27, 3  ;;  %v1155_v59 = vrot.slane %v725_v30, 2 }
 0x221   : > { %2910 = vmatmul.mubr.msk.bf16.vlgmr.msra.gmra.mrb[0].mxu1 %vm355_vm0, %v653_v7  ;;  %v640_v30 = vsel %vm355_vm0, %v3420_v23, 0.0 }
 0x222   : > { %2914 = vmatpush3.bf16.xpose.msra.mxu1 %v993_v45  ;;  %2915 = vmatprep.mubr.msk.bf16.mxu1 %vm3030_vm1, %v3029_v0  ;;  %v1732_v45 = vsel %vm483_vm8, %v1731_v35, %v1730_v39  ;;  %v1149_v18 = vrot.slane %v3818_v19, 5  ;;  %v2829_v39 = vld.sshfl [vmem:[%s3256_s5 + $0x2] sm:$0x2 pattern:$0x76325410] }
 0x223   : > { %2925 = vmatprep.subr.bf16.mxu1 %v3029_v0  ;;  %v1733_v51 = vpack.c.b16 %v1732_v45, %v1732_v45 }
 0x224   : > { %v1150_v41 = vsel %vm474_vm5, %v1149_v18, %v1148_v56 }
 0x225   : > { %v1152_v55 = vsel %vm477_vm6, %v1151_v47, %v1150_v41 }
 0x226   : > { %v1154_v60 = vsel %vm480_vm7, %v1153_v48, %v1152_v55 }
 0x227   : > { %v1156_v62 = vsel %vm483_vm8, %v1155_v59, %v1154_v60 }
 0x228   : > { %v1157_v17 = vpack.c.b16 %v1156_v62, %v1156_v62 }
 0x229   : > { %2916 = vmatmul.mubr.msk.bf16.vlgmr.msra.gmra.mrb[4].mxu1 %vm355_vm0, %v901_v14 }
 0x22a   : > { %2926 = vmatpush3.bf16.xpose.msra.mxu1 %v1409_v37  ;;  %2927 = vmatprep.mubr.msk.bf16.mxu1 %vm3030_vm1, %v3029_v0 }
 0x22b   : > { %2937 = vmatprep.subr.bf16.mxu1 %v3029_v0 }
 0x231   : > { %2928 = vmatmul.mubr.msk.bf16.vlgmr.msra.gmra.mrb[8].mxu1 %vm355_vm0, %v1317_v9  ;;  %v1162_v9 = vsel %vm744_vm12, %v1157_v17, 0 }
 0x232   : > { %2938 = vmatpush3.bf16.xpose.msra.mxu1 %v1825_v22  ;;  %2939 = vmatprep.mubr.msk.bf16.mxu1 %vm3030_vm1, %v3029_v0  ;;  %v2828_v22 = vld.sshfl [vmem:[%s3256_s5] sm:$0x2 pattern:$0x76325410] }
 0x233   : > { %2920 = vmatpush3.bf16.msra.mxu0 %v1162_v9  ;;  %v1551_v45 = vunpack.c.l.b16 %v2828_v22 }
 0x234   : > { %2931 = vmatprep.subr.bf16.mxu0 %v3029_v0 }
 0x239   : > { %2940 = vmatmul.mubr.msk.bf16.vlgmr.msra.gmra.mrb[12].mxu1 %vm355_vm0, %v1733_v51  ;;  %v1552_v51 = vunpack.c.l.b16 %v2829_v39 }
 0x2f4   : > { %v3460_v21 = vpop.f32.mrb[0].mxu1 }
 0x2f5   : > { %v2911_v12 = vpop.f32.mrb[1].mxu1 }
 0x2f6   : > { %v785_v31 = vpop.f32.mrb[2].mxu1  ;;  %v2831_v12 = vld.sshfl [vmem:[%s3256_s5 + $0x6] sm:$0x2 pattern:$0x76325410] }
 0x2f7   : > { %v2912_v25 = vpop.f32.mrb[3].mxu1  ;;  %v2830_v31 = vld.sshfl [vmem:[%s3256_s5 + $0x4] sm:$0x2 pattern:$0x76325410] }
 0x2f8   : > { %v1559_v25 = vrot.slane %v1551_v45, 2 }
 0x2fc   : > { %v1029_v1 = vpop.f32.mrb[4].mxu1 }
 0x2fd   : > { %v1035_v7 = vmul.f32 0.35355338, %v1029_v1  ;;  %v2917_v8 = vpop.f32.mrb[5].mxu1  ;;  %v1560_v1 = vrot.slane %v1552_v51, 1 }
 0x2fe   : > { %v1032_v33 = vpop.f32.mrb[6].mxu1  ;;  %v1554_v8 = vunpack.c.l.b16 %v2831_v12 }
 0x2ff   : > { %v2918_v53 = vpop.f32.mrb[7].mxu1  ;;  %v3464_v29 = vsel %vm367_vm11, %v1035_v7, -1e+09  ;;  %v1553_v33 = vunpack.c.l.b16 %v2830_v31 }
 0x300   : > { %v1039_v34 = vsel %vm355_vm0, %v3464_v29, -inf  ;;  %v2832_v7 = vld.sshfl [vmem:[%s3256_s5 + $0x8] sm:$0x2 pattern:$0x76325410]  ;;  %v1561_v53 = vsel %vm465_vm2, %v1560_v1, %v1559_v25 }
 0x301   : > { %1040 = vmax.xlane.f32.xlu1 %v1039_v34  ;;  %v2833_v34 = vld.sshfl [vmem:[%s3256_s5 + $0xa] sm:$0x2 pattern:$0x76325410]  ;;  %v1562_v23 = vsel %vm468_vm3, %v1553_v33, %v1561_v53  ;;  %v3819_v53 = vsub.f32 %v3261_v44, %v3278_v58 }
 0x304   : > { %v1445_v38 = vpop.f32.mrb[8].mxu1 }
 0x305   : > { %v1451_v11 = vmul.f32 0.35355338, %v1445_v38  ;;  %v2929_v50 = vpop.f32.mrb[9].mxu1  ;;  %v1555_v38 = vunpack.c.l.b16 %v2832_v7 }
 0x306   : > { %v1448_v54 = vpop.f32.mrb[10].mxu1  ;;  %v2834_v50 = vld.sshfl [vmem:[%s3256_s5 + $0xc] sm:$0x2 pattern:$0x76325410] }
 0x307   : > { %v2930_v5 = vpop.f32.mrb[11].mxu1  ;;  %v3470_v15 = vsel %vm367_vm11, %v1451_v11, -1e+09  ;;  %v1563_v11 = vrot.slane %v1554_v8, 7  ;;  %v1556_v54 = vunpack.c.l.b16 %v2833_v34  ;;  %v1981_v56 = vrot.slane %v1555_v38, 7 }
 0x308   : > { %v1455_v13 = vsel %vm355_vm0, %v3470_v15, -inf  ;;  %v1975_v5 = vrot.slane %v1551_v45, 3  ;;  %v628_v34 = vmul.f32 1.442695, %v3819_v53 }
 0x309   : > { %1456 = vmax.xlane.f32.xlu1 %v1455_v13  ;;  %v1976_v13 = vrot.slane %v1552_v51, 2  ;;  %v1983_v55 = vrot.slane %v1556_v54, 6 }
 0x30c   : > { %v1861_v63 = vpop.f32.mrb[12].mxu1 }
 0x30d   : > { %v1867_v36 = vmul.f32 0.35355338, %v1861_v63  ;;  %v2941_v32 = vpop.f32.mrb[13].mxu1  ;;  %v1565_v63 = vrot.slane %v1555_v38, 6 }
 0x30e   : > { %v1864_v28 = vpop.f32.mrb[14].mxu1  ;;  %v2835_v32 = vld.sshfl [vmem:[%s3256_s5 + $0xe] sm:$0x2 pattern:$0x76325410] }
 0x30f   : > { %v2942_v57 = vpop.f32.mrb[15].mxu1  ;;  %v3476_v14 = vsel %vm367_vm11, %v1867_v36, -1e+09  ;;  %v1564_v36 = vsel %vm471_vm4, %v1563_v11, %v1562_v23  ;;  %v1557_v28 = vunpack.c.l.b16 %v2834_v50  ;;  %v1558_v10 = vunpack.c.l.b16 %v2835_v32 }
 0x310   : > { %v1871_v61 = vsel %vm355_vm0, %v3476_v14, -inf  ;;  %v1978_v57 = vrot.slane %v1553_v33, 1  ;;  %v1566_v2 = vsel %vm474_vm5, %v1565_v63, %v1564_v36 }
 0x311   : > { %1872 = vmax.xlane.f32.xlu1 %v1871_v61  ;;  %v1567_v61 = vrot.slane %v1556_v54, 5  ;;  %v1571_v47 = vrot.slane %v1558_v10, 3  ;;  %v1985_v17 = vrot.slane %v1557_v28, 5  ;;  %v1987_v22 = vrot.slane %v1558_v10, 4 }
 0x313   : > { %v1568_v18 = vsel %vm477_vm6, %v1567_v61, %v1566_v2 }
 0x38e   : > { %v1041_v42 = vpop.xlane.xlu1 %1040 }
 0x38f   : > { %v3483_v46 = vmax.f32 %v3480_v3, %v1041_v42  ;;  %v1977_v42 = vsel %vm465_vm2, %v1976_v13, %v1975_v5  ;;  %v638_v13 = vld [vmem:[#allocation3] sm:$0xff]  ;;  %vm2440_vm2 = vcmask 58369  }
 0x390   : > { %v1979_v43 = vsel %vm468_vm3, %v1978_v57, %v1977_v42  ;;  %v646_v57 = vld [vmem:[#allocation4] sm:$0xff]  ;;  %vm2441_vm3 = vsmask.f32 1280 }
 0x391   : > { %v1043_v37 = vsub.f32 %v3480_v3, %v3483_v46  ;;  %1206 = vst.msk [vmem:[#allocation2 + $0x8] sm:$0xff] %vm346_vm9, %v3483_v46  ;;  %1048 = vperm.xlu1 %2980, %v3483_v46   ;;  %v1980_v41 = vsel %vm471_vm4, %v1554_v8, %v1979_v43  ;;  %v1887_v43 = vld [vmem:[#allocation3 + $0x18] sm:$0xff]  ;;  %vm3711_vm4 = vmand %vm2440_vm2, %vm2441_vm3 }
 0x392   : > { %v1982_v60 = vsel %vm474_vm5, %v1981_v56, %v1980_v41  ;;  %vm2582_vm5 = vsmask.f32 7942 }
 0x393   : > { %v1984_v9 = vsel %vm477_vm6, %v1983_v55, %v1982_v60  ;;  %v1044_v54 = vmul.f32 1.442695, %v1043_v37  ;;  %v1055_v37 = vld [vmem:[#allocation3 + $0x8] sm:$0xff]  ;;  %v3033_v60 = vmov 1966171168   ;;  %vm3759_vm6 = vmand %vm2440_vm2, %vm2582_vm5 }
 0x394   : > { %v1986_v39 = vsel %vm480_vm7, %v1985_v17, %v1984_v9 }
 0x395   : > { %v1988_v1 = vsel %vm483_vm8, %v1987_v22, %v1986_v39 }
 0x396   : > { %v1457_v40 = vpop.xlane.xlu1 %1456  ;;  %v1989_v8 = vpack.c.b16 %v1988_v1, %v1988_v1 }
 0x397   : > { %v3505_v49 = vmax.f32 %v3492_v4, %v1457_v40  ;;  %v1569_v40 = vrot.slane %v1557_v28, 4  ;;  %v1471_v28 = vld [vmem:[#allocation3 + $0x10] sm:$0xff] }
 0x398   : > { %v1994_v11 = vsel %vm744_vm12, %v1989_v8, 0 }
 0x399   : > { %v1459_v52 = vsub.f32 %v3492_v4, %v3505_v49  ;;  %1622 = vst.msk [vmem:[#allocation2 + $0x10] sm:$0xff] %vm346_vm9, %v3505_v49  ;;  %1464 = vperm.xlu1 %2980, %v3505_v49   ;;  %v1570_v48 = vsel %vm480_vm7, %v1569_v40, %v1568_v18 }
 0x39a   : > { %v1572_v62 = vsel %vm483_vm8, %v1571_v47, %v1570_v48 }
 0x39b   : > { %v1460_v23 = vmul.f32 1.442695, %v1459_v52 }
 0x39e   : > { %v1873_v27 = vpop.xlane.xlu1 %1872 }
 0x39f   : > { %v3527_v35 = vmax.f32 %v3523_v16, %v1873_v27 }
 0x3a1   : > { %v1875_v26 = vsub.f32 %v3523_v16, %v3527_v35  ;;  %2038 = vst.msk [vmem:[#allocation2 + $0x18] sm:$0xff] %vm346_vm9, %v3527_v35  ;;  %1880 = vperm.xlu1 %2980, %v3527_v35  }
 0x3c5   : > { %641 = vadd.xlane.f32.xlu1 %v640_v30  ;;  %v1573_v30 = vpack.c.b16 %v1572_v62, %v1572_v62 }
 0x3c7   : > { %v1578_v25 = vsel %vm744_vm12, %v1573_v30, 0 }
 0x410   : > { %v1049_v24 = vpop.permute.xlu1 %1048 }
 0x411   : > { %v1051_v6 = vsub.f32 %v3464_v29, %v1049_v24 }
 0x413   : > { %v1052_v19 = vmul.f32 1.442695, %v1051_v6 }
 0x415   : > { %2983 = vpow2.f32 %v1052_v19 }
 0x418   : > { %v1465_v59 = vpop.permute.xlu1 %1464 }
 0x419   : > { %v1467_v29 = vsub.f32 %v3470_v15, %v1465_v59 }
 0x41b   : > { %v1468_v27 = vmul.f32 1.442695, %v1467_v29  ;;  %v2054_v29 = vunpack.c.l.s4 %v3033_v60 }
 0x41d   : > { %2985 = vpow2.f32 %v1468_v27  ;;  %v2055_v17 = vunpack.c.0.s8 %v2054_v29  ;;  %v3034_v27 = vmov 857870592  }
 0x41e   : > { %v2094_v9 = vunpack.c.l.s4 %v3034_v27 }
 0x41f   : > { %v2984_v45 = vpop.eup %2983  ;;  %v3596_v39 = vsub.s32 %v2055_v17, %v3240_v20 }
 0x420   : > { %v1881_v51 = vpop.permute.xlu1 %1880  ;;  %v1057_v12 = vsel %vm355_vm0, %v2984_v45, 0.0  ;;  %v1070_v31 = vpack.c.bf16 %v2984_v45, %v2984_v45 }
 0x421   : > { %v1883_v15 = vsub.f32 %v3476_v14, %v1881_v51  ;;  %1058 = vadd.xlane.f32.xlu0 %v1057_v12  ;;  %v2095_v12 = vunpack.c.0.s8 %v2094_v9 }
 0x422   : > { %2922 = vmatmul.mubr.msk.bf16.vlgmr.msra.gmra.mrb[4].mxu0 %vm355_vm0, %v1070_v31 }
 0x423   : > { %v1884_v7 = vmul.f32 1.442695, %v1883_v15  ;;  %2932 = vmatpush3.bf16.msra.mxu0 %v1578_v25  ;;  %2933 = vmatprep.mubr.msk.bf16.mxu0 %vm3030_vm1, %v3029_v0  ;;  %v3607_v1 = vsub.s32 %v2095_v12, %v3240_v20 }
 0x424   : > { %2943 = vmatprep.subr.bf16.mxu0 %v3029_v0 }
 0x425   : > { %2987 = vpow2.f32 %v1884_v7  ;;  %v1063_v7 = vld [vmem:[#allocation4 + $0x8] sm:$0xff] }
 0x426   : > { %2989 = vpow2.f32 %v628_v34 }
 0x427   : > { %v2986_v33 = vpop.eup %2985  ;;  %2991 = vpow2.f32 %v1460_v23 }
 0x428   : > { %v1473_v14 = vsel %vm355_vm0, %v2986_v33, 0.0  ;;  %v1486_v38 = vpack.c.bf16 %v2986_v33, %v2986_v33  ;;  %2993 = vpow2.f32 %v1044_v54 }
 0x429   : > { %1474 = vadd.xlane.f32.xlu1 %v1473_v14 }
 0x42a   : > { %2934 = vmatmul.mubr.msk.bf16.vlgmr.msra.gmra.mrb[8].mxu0 %vm355_vm0, %v1486_v38  ;;  %v2160_v38 = vld [vmem:[%s3604_s8] sm:$0x1] }
 0x42b   : > { %2944 = vmatpush3.bf16.msra.mxu0 %v1994_v11  ;;  %2945 = vmatprep.mubr.msk.bf16.mxu0 %vm3030_vm1, %v3029_v0  ;;  %v1876_v0 = vmul.f32 1.442695, %v1875_v26  ;;  %vm2299_vm1 = vsmask.f32 7938 }
 0x42d   : > { %2995 = vpow2.f32 %v1876_v0 }
 0x42f   : > { %v2988_v50 = vpop.eup %2987 }
 0x430   : > { %v1889_v44 = vsel %vm355_vm0, %v2988_v50, 0.0  ;;  %v1902_v58 = vpack.c.bf16 %v2988_v50, %v2988_v50  ;;  %v2990_v5 = vpop.eup %2989 }
 0x431   : > { %1890 = vadd.xlane.f32.xlu1 %v1889_v44  ;;  %v2992_v4 = vpop.eup %2991  ;;  %v639_v63 = vmul.f32 %v2990_v5, %v638_v13 }
 0x432   : > { %2946 = vmatmul.mubr.msk.bf16.vlgmr.msra.gmra.mrb[12].mxu0 %vm355_vm0, %v1902_v58  ;;  %v2994_v49 = vpop.eup %2993  ;;  %v1472_v61 = vmul.f32 %v2992_v4, %v1471_v28  ;;  %v2163_v58 = vld [vmem:[%s3604_s8 + $0x2] sm:$0x1] }
 0x433   : > { %v1056_v16 = vmul.f32 %v2994_v49, %v1055_v37 }
 0x437   : > { %649 = vperm.xlu0 %2979, %v2990_v5   ;;  %v2996_v52 = vpop.eup %2995 }
 0x438   : > { %v1888_v19 = vmul.f32 %v2996_v52, %v1887_v43 }
 0x43b   : > { %1482 = vperm.xlu0 %2979, %v2992_v4   ;;  %v2166_v4 = vld [vmem:[%s3604_s8 + $0x4] sm:$0x1] }
 0x442   : > { %1066 = vperm.xlu1 %2980, %v2994_v49   ;;  %v2169_v49 = vld [vmem:[%s3604_s8 + $0x6] sm:$0x1] }
 0x446   : > { %1898 = vperm.xlu1 %2980, %v2996_v52   ;;  %v2172_v52 = vld [vmem:[%s3604_s8 + $0x8] sm:$0x1] }
 0x452   : > { %v642_v36 = vpop.xlane.xlu1 %641 }
 0x453   : > { %v643_v32 = vadd.f32 %v642_v36, %v639_v63 }
 0x455   : > { %645 = vst.msk [vmem:[#allocation3] sm:$0xff] %vm346_vm9, %v643_v32 }
 0x45c   : > { %v2042_v3 = vld [vmem:[#allocation3] sm:$0xff] }
 0x45d   : > { %2997 = vrcp.f32 %v2042_v3  ;;  %v2175_v3 = vld [vmem:[%s3604_s8 + $0xa] sm:$0x1] }
 0x467   : > { %v2998_v46 = vpop.eup %2997 }
 0x468   : > { %2047 = vperm.xlu1 %2980, %v2998_v46   ;;  %v2178_v46 = vld [vmem:[%s3604_s8 + $0xc] sm:$0x1] }
 0x4ae   : > { %v1059_v35 = vpop.xlane.xlu0 %1058 }
 0x4af   : > { %v1060_v26 = vadd.f32 %v1059_v35, %v1056_v16 }
 0x4b1   : > { %1061 = vst.msk [vmem:[#allocation3 + $0x8] sm:$0xff] %vm346_vm9, %v1060_v26 }
 0x4b6   : > { %v1475_v42 = vpop.xlane.xlu1 %1474  ;;  %v650_v24 = vpop.permute.xlu0 %649 }
 0x4b7   : > { %v1476_v2 = vadd.f32 %v1475_v42, %v1472_v61  ;;  %v652_v6 = vmul.f32 %v650_v24, %v646_v57 }
 0x4b8   : > { %v2184_v10 = vld [vmem:[#allocation3 + $0x8] sm:$0xff] }
 0x4b9   : > { %1477 = vst.msk [vmem:[#allocation3 + $0x10] sm:$0xff] %vm346_vm9, %v1476_v2  ;;  %v788_v40 = vadd.f32 %v3460_v21, %v652_v6  ;;  %2999 = vrcp.f32 %v2184_v10  ;;  %v2181_v6 = vld [vmem:[%s3604_s8 + $0xe] sm:$0x1] }
 0x4bb   : > { %789 = vst.msk [vmem:[#allocation4] sm:$0xff] %vm355_vm0, %v788_v40 }
 0x4be   : > { %v1891_v18 = vpop.xlane.xlu1 %1890 }
 0x4bf   : > { %v1892_v56 = vadd.f32 %v1891_v18, %v1888_v19 }
 0x4c0   : > { %v2325_v47 = vld [vmem:[#allocation3 + $0x10] sm:$0xff] }
 0x4c1   : > { %1893 = vst.msk [vmem:[#allocation3 + $0x18] sm:$0xff] %vm346_vm9, %v1892_v56  ;;  %3001 = vrcp.f32 %v2325_v47 }
 0x4c2   : > { %v1067_v21 = vpop.permute.xlu1 %1066  ;;  %v2044_v30 = vld [vmem:[#allocation4] sm:$0xff] }
 0x4c3   : > { %v3000_v41 = vpop.eup %2999  ;;  %v1069_v44 = vmul.f32 %v1067_v21, %v1063_v7  ;;  %v1483_v21 = vpop.permute.xlu0 %1482 }
 0x4c4   : > { %2189 = vperm.xlu0 %2979, %v3000_v41  }
 0x4c6   : > { %v3593_v62 = vpop.permute.xlu1 %1898 }
 0x4c8   : > { %v2467_v48 = vld [vmem:[#allocation3 + $0x18] sm:$0xff] }
 0x4c9   : > { %3003 = vrcp.f32 %v2467_v48 }
 0x4cb   : > { %v3002_v55 = vpop.eup %3001 }
 0x4cc   : > { %2330 = vperm.xlu1 %2980, %v3002_v55  }
 0x4d3   : > { %v3004_v59 = vpop.eup %3003 }
 0x4d4   : > { %2472 = vperm.xlu0 %2979, %v3004_v59   ;;  %v1479_v59 = vld [vmem:[#allocation4 + $0x10] sm:$0xff] }
 0x4d5   : > { %v1485_v29 = vmul.f32 %v1483_v21, %v1479_v59 }
 0x4e7   : > { %v2048_v22 = vpop.permute.xlu1 %2047 }
 0x4e8   : > { %v2050_v45 = vmul.f32 %v2048_v22, %v2044_v30 }
 0x4ea   : > { %v2051_v51 = vpack.c.bf16 %v2050_v45, %v2050_v45  ;;  %v1895_v45 = vld [vmem:[#allocation4 + $0x18] sm:$0xff] }
 0x4ec   : > { %v2059_v31 = vrot.slane %v2051_v51, %v3596_v39  ;;  %v1901_v51 = vmul.f32 %v3593_v62, %v1895_v45 }
 0x4ee   : > { %v2060_v25 = vcombine.high %v2059_v31, %v2059_v31  ;;  %v2067_v15 = vrot.slane %v2059_v31, %v3596_v39 }
 0x4f0   : > { %v2074_v8 = vrot.slane %v2060_v25, %v3596_v39  ;;  %v2075_v33 = vcombine.high %v2067_v15, %v2067_v15  ;;  %v2078_v53 = vunpack.i.h.s16 %v2067_v15  ;;  %v2863_v34 = vpack.i.b16 %v2067_v15, %v2067_v15 }
 0x4f2   : > { %v2076_v11 = vcombine.high %v2074_v8, %v2074_v8  ;;  %v2080_v20 = vunpack.i.h.s16 %v2074_v8  ;;  %v2082_v23 = vunpack.i.h.s16 %v2075_v33  ;;  %v2086_v50 = vpack.i.b16 %v2078_v53, %v2078_v53 }
 0x4f3   : > { %v2864_v54 = vpack.i.b16 %v2074_v8, %v2074_v8  ;;  %v2865_v5 = vpack.i.b16 %v2075_v33, %v2075_v33  ;;  %v2099_v0 = vrot.slane %v2863_v34, %v3607_v1 }
 0x4f4   : > { %v2084_v13 = vunpack.i.h.s16 %v2076_v11  ;;  %v2088_v63 = vpack.i.b16 %v2080_v20, %v2080_v20  ;;  %v2090_v36 = vpack.i.b16 %v2082_v23, %v2082_v23  ;;  %v2866_v32 = vpack.i.b16 %v2076_v11, %v2076_v11 }
 0x4f5   : > { %v2106_v37 = vrot.slane %v2086_v50, %v3607_v1  ;;  %v2113_v16 = vrot.slane %v2864_v54, %v3607_v1  ;;  %v2127_v35 = vrot.slane %v2865_v5, %v3607_v1  ;;  %v2161_v26 = vsel %vm3611_vm15, %v2099_v0, %v2160_v38  ;;  %v1198_v28 = vpop.f32.mrb[4].mxu0 }
 0x4f6   : > { %v2092_v57 = vpack.i.b16 %v2084_v13, %v2084_v13  ;;  %v2120_v61 = vrot.slane %v2088_v63, %v3607_v1  ;;  %v2134_v42 = vrot.slane %v2090_v36, %v3607_v1  ;;  %v2141_v24 = vrot.slane %v2866_v32, %v3607_v1  ;;  %2162 = vst [vmem:[%s3604_s8] sm:$0x1] %v2161_v26  ;;  %v2923_v2 = vpop.f32.mrb[5].mxu0 }
 0x4f7   : > { %v2164_v10 = vsel %vm3611_vm15, %v2106_v37, %v2163_v58  ;;  %v2167_v40 = vsel %vm3611_vm15, %v2113_v16, %v2166_v4  ;;  %v2173_v43 = vsel %vm3611_vm15, %v2127_v35, %v2172_v52  ;;  %v1204_v19 = vadd.f32 %v1198_v28, %v1069_v44  ;;  %v1201_v18 = vpop.f32.mrb[6].mxu0 }
 0x4f8   : > { %v2148_v56 = vrot.slane %v2092_v57, %v3607_v1  ;;  %2165 = vst [vmem:[%s3604_s8 + $0x2] sm:$0x1] %v2164_v10  ;;  %2168 = vst [vmem:[%s3604_s8 + $0x4] sm:$0x1] %v2167_v40  ;;  %v2170_v47 = vsel %vm3611_vm15, %v2120_v61, %v2169_v49  ;;  %v2176_v41 = vsel %vm3611_vm15, %v2134_v42, %v2175_v3  ;;  %v2924_v55 = vpop.f32.mrb[7].mxu0 }
 0x4f9   : > { %2174 = vst [vmem:[%s3604_s8 + $0x8] sm:$0x1] %v2173_v43  ;;  %v2179_v48 = vsel %vm3611_vm15, %v2141_v24, %v2178_v46  ;;  %2171 = vst [vmem:[%s3604_s8 + $0x6] sm:$0x1] %v2170_v47 }
 0x4fa   : > { %2177 = vst [vmem:[%s3604_s8 + $0xa] sm:$0x1] %v2176_v41  ;;  %2180 = vst [vmem:[%s3604_s8 + $0xc] sm:$0x1] %v2179_v48  ;;  %v2182_v60 = vsel %vm3611_vm15, %v2148_v56, %v2181_v6 }
 0x4fb   : > { %1205 = vst.msk [vmem:[#allocation4 + $0x8] sm:$0xff] %vm355_vm0, %v1204_v19  ;;  %2183 = vst [vmem:[%s3604_s8 + $0xe] sm:$0x1] %v2182_v60 }
 0x4fd   : > { %v1614_v17 = vpop.f32.mrb[8].mxu0  ;;  %v2301_v35 = vld [vmem:[%s3604_s8] sm:$0x1] }
 0x4fe   : > { %v1620_v27 = vadd.f32 %v1614_v17, %v1485_v29  ;;  %v2935_v9 = vpop.f32.mrb[9].mxu0 }
 0x4ff   : > { %v1617_v30 = vpop.f32.mrb[10].mxu0  ;;  %v2304_v10 = vld [vmem:[%s3604_s8 + $0x2] sm:$0x1]  ;;  %v2307_v40 = vld [vmem:[%s3604_s8 + $0x4] sm:$0x1] }
 0x500   : > { %1621 = vst.msk [vmem:[#allocation4 + $0x10] sm:$0xff] %vm355_vm0, %v1620_v27  ;;  %v2936_v22 = vpop.f32.mrb[11].mxu0  ;;  %v2313_v43 = vld [vmem:[%s3604_s8 + $0x8] sm:$0x1]  ;;  %v2310_v56 = vld [vmem:[%s3604_s8 + $0x6] sm:$0x1] }
 0x501   : > { %v2316_v41 = vld [vmem:[%s3604_s8 + $0xa] sm:$0x1]  ;;  %v2319_v48 = vld [vmem:[%s3604_s8 + $0xc] sm:$0x1] }
 0x502   : > { %v2186_v33 = vld [vmem:[#allocation4 + $0x8] sm:$0xff] }
 0x503   : > { %v2322_v9 = vld [vmem:[%s3604_s8 + $0xe] sm:$0x1] }
 0x505   : > { %v2030_v12 = vpop.f32.mrb[12].mxu0 }
 0x506   : > { %v2036_v31 = vadd.f32 %v2030_v12, %v1901_v51  ;;  %v2947_v25 = vpop.f32.mrb[13].mxu0 }
 0x507   : > { %v2033_v15 = vpop.f32.mrb[14].mxu0  ;;  %v2327_v58 = vld [vmem:[#allocation4 + $0x10] sm:$0xff] }
 0x508   : > { %2037 = vst.msk [vmem:[#allocation4 + $0x18] sm:$0xff] %vm355_vm0, %v2036_v31  ;;  %v2948_v7 = vpop.f32.mrb[15].mxu0  ;;  %vm3663_vm0 = vmand %vm2157_vm13, %vm2299_vm1 }
 0x50f   : > { %v2469_v27 = vld [vmem:[#allocation4 + $0x18] sm:$0xff] }
 0x543   : > { %v2190_v8 = vpop.permute.xlu0 %2189 }
 0x544   : > { %v2192_v53 = vmul.f32 %v2190_v8, %v2186_v33  ;;  %v2443_v33 = vld [vmem:[%s3604_s8] sm:$0x2] }
 0x546   : > { %v2193_v34 = vpack.c.bf16 %v2192_v53, %v2192_v53 }
 0x548   : > { %v2201_v14 = vrot.slane %v2193_v34, %v3596_v39 }
 0x54a   : > { %v2202_v38 = vcombine.high %v2201_v14, %v2201_v14  ;;  %v2209_v11 = vrot.slane %v2201_v14, %v3596_v39 }
 0x54b   : > { %v2331_v20 = vpop.permute.xlu1 %2330 }
 0x54c   : > { %v2216_v62 = vrot.slane %v2202_v38, %v3596_v39  ;;  %v2217_v23 = vcombine.high %v2209_v11, %v2209_v11  ;;  %v2220_v50 = vunpack.i.h.s16 %v2209_v11  ;;  %v2867_v44 = vpack.i.b16 %v2209_v11, %v2209_v11 }
 0x54d   : > { %v2333_v54 = vmul.f32 %v2331_v20, %v2327_v58  ;;  %v2455_v58 = vld [vmem:[%s3604_s8 + $0x8] sm:$0x2] }
 0x54e   : > { %v2218_v0 = vcombine.high %v2216_v62, %v2216_v62  ;;  %v2222_v4 = vunpack.i.h.s16 %v2216_v62  ;;  %v2224_v49 = vunpack.i.h.s16 %v2217_v23  ;;  %v2228_v52 = vpack.i.b16 %v2220_v50, %v2220_v50  ;;  %v2446_v50 = vld [vmem:[%s3604_s8 + $0x2] sm:$0x2] }
 0x54f   : > { %v2868_v13 = vpack.i.b16 %v2216_v62, %v2216_v62  ;;  %v2869_v63 = vpack.i.b16 %v2217_v23, %v2217_v23  ;;  %v2241_v36 = vrot.slane %v2867_v44, %v3607_v1  ;;  %v2334_v32 = vpack.c.bf16 %v2333_v54, %v2333_v54  ;;  %v2449_v44 = vld [vmem:[%s3604_s8 + $0x4] sm:$0x2] }
 0x550   : > { %v2226_v3 = vunpack.i.h.s16 %v2218_v0  ;;  %v2230_v46 = vpack.i.b16 %v2222_v4, %v2222_v4  ;;  %v2232_v37 = vpack.i.b16 %v2224_v49, %v2224_v49  ;;  %v2870_v16 = vpack.i.b16 %v2218_v0, %v2218_v0  ;;  %v2452_v49 = vld [vmem:[%s3604_s8 + $0x6] sm:$0x2] }
 0x551   : > { %v2248_v26 = vrot.slane %v2228_v52, %v3607_v1  ;;  %v2255_v28 = vrot.slane %v2868_v13, %v3607_v1  ;;  %v2269_v57 = vrot.slane %v2869_v63, %v3607_v1  ;;  %v2302_v61 = vsel %vm3663_vm0, %v2241_v36, %v2301_v35  ;;  %v2458_v52 = vld [vmem:[%s3604_s8 + $0xa] sm:$0x2]  ;;  %v2461_v13 = vld [vmem:[%s3604_s8 + $0xc] sm:$0x2] }
 0x552   : > { %v2234_v42 = vpack.i.b16 %v2226_v3, %v2226_v3  ;;  %v2262_v24 = vrot.slane %v2230_v46, %v3607_v1  ;;  %v2276_v2 = vrot.slane %v2232_v37, %v3607_v1  ;;  %v2283_v6 = vrot.slane %v2870_v16, %v3607_v1  ;;  %2303 = vst [vmem:[%s3604_s8] sm:$0x1] %v2302_v61 }
 0x553   : > { %v2305_v19 = vsel %vm3663_vm0, %v2248_v26, %v2304_v10  ;;  %v2308_v18 = vsel %vm3663_vm0, %v2255_v28, %v2307_v40  ;;  %v2314_v47 = vsel %vm3663_vm0, %v2269_v57, %v2313_v43  ;;  %v2342_v55 = vrot.slane %v2334_v32, %v3596_v39  ;;  %v2473_v59 = vpop.permute.xlu0 %2472  ;;  %v2464_v26 = vld [vmem:[%s3604_s8 + $0xe] sm:$0x2] }
 0x554   : > { %v2290_v21 = vrot.slane %v2234_v42, %v3607_v1  ;;  %2306 = vst [vmem:[%s3604_s8 + $0x2] sm:$0x1] %v2305_v19  ;;  %2309 = vst [vmem:[%s3604_s8 + $0x4] sm:$0x1] %v2308_v18  ;;  %v2311_v60 = vsel %vm3663_vm0, %v2262_v24, %v2310_v56  ;;  %v2317_v29 = vsel %vm3663_vm0, %v2276_v2, %v2316_v41 }
 0x555   : > { %2315 = vst [vmem:[%s3604_s8 + $0x8] sm:$0x1] %v2314_v47  ;;  %v2320_v17 = vsel %vm3663_vm0, %v2283_v6, %v2319_v48  ;;  %2312 = vst [vmem:[%s3604_s8 + $0x6] sm:$0x1] %v2311_v60  ;;  %v2343_v30 = vcombine.high %v2342_v55, %v2342_v55  ;;  %v2350_v22 = vrot.slane %v2342_v55, %v3596_v39 }
 0x556   : > { %2318 = vst [vmem:[%s3604_s8 + $0xa] sm:$0x1] %v2317_v29  ;;  %2321 = vst [vmem:[%s3604_s8 + $0xc] sm:$0x1] %v2320_v17  ;;  %v2475_v45 = vmul.f32 %v2473_v59, %v2469_v27  ;;  %v2323_v51 = vsel %vm3663_vm0, %v2290_v21, %v2322_v9 }
 0x557   : > { %2324 = vst [vmem:[%s3604_s8 + $0xe] sm:$0x1] %v2323_v51  ;;  %v2357_v12 = vrot.slane %v2343_v30, %v3596_v39  ;;  %v2358_v31 = vcombine.high %v2350_v22, %v2350_v22  ;;  %v2361_v25 = vunpack.i.h.s16 %v2350_v22  ;;  %v2871_v15 = vpack.i.b16 %v2350_v22, %v2350_v22 }
 0x558   : > { %v2476_v7 = vpack.c.bf16 %v2475_v45, %v2475_v45 }
 0x559   : > { %v2359_v53 = vcombine.high %v2357_v12, %v2357_v12  ;;  %v2363_v34 = vunpack.i.h.s16 %v2357_v12  ;;  %v2365_v14 = vunpack.i.h.s16 %v2358_v31  ;;  %v2369_v38 = vpack.i.b16 %v2361_v25, %v2361_v25 }
 0x55a   : > { %v2872_v11 = vpack.i.b16 %v2357_v12, %v2357_v12  ;;  %v2873_v20 = vpack.i.b16 %v2358_v31, %v2358_v31  ;;  %v2382_v62 = vrot.slane %v2871_v15, %v3607_v1  ;;  %v2484_v23 = vrot.slane %v2476_v7, %v3596_v39 }
 0x55b   : > { %v2367_v54 = vunpack.i.h.s16 %v2359_v53  ;;  %v2371_v5 = vpack.i.b16 %v2363_v34, %v2363_v34  ;;  %v2373_v0 = vpack.i.b16 %v2365_v14, %v2365_v14  ;;  %v2874_v4 = vpack.i.b16 %v2359_v53, %v2359_v53 }
 0x55c   : > { %v2389_v63 = vrot.slane %v2369_v38, %v3607_v1  ;;  %v2396_v36 = vrot.slane %v2872_v11, %v3607_v1  ;;  %v2410_v32 = vrot.slane %v2873_v20, %v3607_v1  ;;  %v2444_v3 = vsel %vm3711_vm4, %v2382_v62, %v2443_v33 }
 0x55d   : > { %v2375_v46 = vpack.i.b16 %v2367_v54, %v2367_v54  ;;  %v2403_v37 = vrot.slane %v2371_v5, %v3607_v1  ;;  %v2417_v16 = vrot.slane %v2373_v0, %v3607_v1  ;;  %v2424_v35 = vrot.slane %v2874_v4, %v3607_v1  ;;  %2445 = vst [vmem:[%s3604_s8] sm:$0x2] %v2444_v3 }
 0x55e   : > { %v2447_v28 = vsel %vm3711_vm4, %v2389_v63, %v2446_v50  ;;  %v2450_v57 = vsel %vm3711_vm4, %v2396_v36, %v2449_v44  ;;  %v2456_v61 = vsel %vm3711_vm4, %v2410_v32, %v2455_v58  ;;  %v2485_v42 = vcombine.high %v2484_v23, %v2484_v23 }
 0x55f   : > { %v2431_v24 = vrot.slane %v2375_v46, %v3607_v1  ;;  %2448 = vst [vmem:[%s3604_s8 + $0x2] sm:$0x2] %v2447_v28  ;;  %2451 = vst [vmem:[%s3604_s8 + $0x4] sm:$0x2] %v2450_v57  ;;  %v2453_v2 = vsel %vm3711_vm4, %v2403_v37, %v2452_v49  ;;  %v2459_v6 = vsel %vm3711_vm4, %v2417_v16, %v2458_v52 }
 0x560   : > { %2457 = vst [vmem:[%s3604_s8 + $0x8] sm:$0x2] %v2456_v61  ;;  %v2462_v10 = vsel %vm3711_vm4, %v2424_v35, %v2461_v13  ;;  %2454 = vst [vmem:[%s3604_s8 + $0x6] sm:$0x2] %v2453_v2  ;;  %v2492_v40 = vrot.slane %v2484_v23, %v3596_v39  ;;  %v2499_v43 = vrot.slane %v2485_v42, %v3596_v39 }
 0x561   : > { %2460 = vst [vmem:[%s3604_s8 + $0xa] sm:$0x2] %v2459_v6  ;;  %2463 = vst [vmem:[%s3604_s8 + $0xc] sm:$0x2] %v2462_v10  ;;  %v2465_v19 = vsel %vm3711_vm4, %v2431_v24, %v2464_v26 }
 0x562   : > { %2466 = vst [vmem:[%s3604_s8 + $0xe] sm:$0x2] %v2465_v19  ;;  %v2500_v18 = vcombine.high %v2492_v40, %v2492_v40  ;;  %v2501_v56 = vcombine.high %v2499_v43, %v2499_v43  ;;  %v2503_v47 = vunpack.i.h.s16 %v2492_v40  ;;  %v2505_v41 = vunpack.i.h.s16 %v2499_v43 }
 0x563   : > { %v2875_v48 = vpack.i.b16 %v2492_v40, %v2492_v40  ;;  %v2876_v55 = vpack.i.b16 %v2499_v43, %v2499_v43 }
 0x564   : > { %v2507_v39 = vunpack.i.h.s16 %v2500_v18  ;;  %v2509_v21 = vunpack.i.h.s16 %v2501_v56  ;;  %v2511_v60 = vpack.i.b16 %v2503_v47, %v2503_v47  ;;  %v2513_v29 = vpack.i.b16 %v2505_v41, %v2505_v41  ;;  %v2584_v17 = vld [vmem:[%s3604_s8] sm:$0x2] }
 0x565   : > { %v2877_v27 = vpack.i.b16 %v2500_v18, %v2500_v18  ;;  %v2878_v9 = vpack.i.b16 %v2501_v56, %v2501_v56  ;;  %v2524_v30 = vrot.slane %v2875_v48, %v3607_v1  ;;  %v2538_v22 = vrot.slane %v2876_v55, %v3607_v1 }
 0x566   : > { %v2515_v45 = vpack.i.b16 %v2507_v39, %v2507_v39  ;;  %v2517_v51 = vpack.i.b16 %v2509_v21, %v2509_v21  ;;  %v2531_v12 = vrot.slane %v2511_v60, %v3607_v1  ;;  %v2545_v31 = vrot.slane %v2513_v29, %v3607_v1  ;;  %v2587_v25 = vld [vmem:[%s3604_s8 + $0x2] sm:$0x2]  ;;  %v2590_v15 = vld [vmem:[%s3604_s8 + $0x4] sm:$0x2] }
 0x567   : > { %v2596_v7 = vld [vmem:[%s3604_s8 + $0x8] sm:$0x2]  ;;  %v2552_v8 = vrot.slane %v2877_v27, %v3607_v1  ;;  %v2566_v33 = vrot.slane %v2878_v9, %v3607_v1  ;;  %v2585_v53 = vsel %vm3759_vm6, %v2524_v30, %v2584_v17  ;;  %v2591_v34 = vsel %vm3759_vm6, %v2538_v22, %v2590_v15  ;;  %v2593_v14 = vld [vmem:[%s3604_s8 + $0x6] sm:$0x2] }
 0x568   : > { %v2599_v38 = vld [vmem:[%s3604_s8 + $0xa] sm:$0x2]  ;;  %v2602_v11 = vld [vmem:[%s3604_s8 + $0xc] sm:$0x2]  ;;  %v2559_v20 = vrot.slane %v2515_v45, %v3607_v1  ;;  %v2573_v62 = vrot.slane %v2517_v51, %v3607_v1  ;;  %2586 = vst [vmem:[%s3604_s8] sm:$0x2] %v2585_v53  ;;  %v2588_v23 = vsel %vm3759_vm6, %v2531_v12, %v2587_v25  ;;  %v2594_v50 = vsel %vm3759_vm6, %v2545_v31, %v2593_v14 }
 0x569   : > { %2592 = vst [vmem:[%s3604_s8 + $0x4] sm:$0x2] %v2591_v34  ;;  %2589 = vst [vmem:[%s3604_s8 + $0x2] sm:$0x2] %v2588_v23  ;;  %v2597_v44 = vsel %vm3759_vm6, %v2552_v8, %v2596_v7  ;;  %v2603_v58 = vsel %vm3759_vm6, %v2566_v33, %v2602_v11  ;;  %v2605_v54 = vld [vmem:[%s3604_s8 + $0xe] sm:$0x2] }
 0x56a   : > { %2595 = vst [vmem:[%s3604_s8 + $0x6] sm:$0x2] %v2594_v50  ;;  %2598 = vst [vmem:[%s3604_s8 + $0x8] sm:$0x2] %v2597_v44  ;;  %v2600_v1 = vsel %vm3759_vm6, %v2559_v20, %v2599_v38  ;;  %v2606_v5 = vsel %vm3759_vm6, %v2573_v62, %v2605_v54 }
 0x56b   : > { %2604 = vst [vmem:[%s3604_s8 + $0xc] sm:$0x2] %v2603_v58  ;;  %2601 = vst [vmem:[%s3604_s8 + $0xa] sm:$0x2] %v2600_v1 }
 0x56c   : > { %2607 = vst [vmem:[%s3604_s8 + $0xe] sm:$0x2] %v2606_v5 }
 0x56d PF: > { %s14_s17 = sadd.s32 1, %s3027_s17   ;;  %s3828_s15 = smov %s3023_s16 }
 0x56e   : > { %p11_p5 = scmp.ge.s32.totalorder %s14_s17, 4   ;;  %s3829_s16 = smov %s3831_s18 }
 0x570   :  { %13 = sbr.rel (!%p11_p5) target bundleno = 2 (0x2), region = 92 }

// kernel: _lambda_.81
= control target key start
LH: loop header
LB: loop body
LE: loop exit
PB: predicated region body
PF: predicated region fallthrough
CT: control target
= control target key end

     0   :  { %v178_v1 = vmov 0.0   ;;  %vm179_vm0 = vmmov 0   ;;  %vm20_vm1 = vcmask 523264   ;;  %s233_s0 = inlined_call_operand.vmem [shape: bf16[16,32], index: 0, kind: input, shape index: {}]   ;;  %s234_s1 = inlined_call_operand.vmem [shape: bf16[32,64], index: 1, kind: input, shape index: {}]   ;;  %s235_s2 = inlined_call_operand.vmem [shape: f32[1,64], index: 2, kind: input, shape index: {}]   ;;  %s236_s3 = inlined_call_operand.hbm [shape: f32[16,64], index: 3, kind: output, shape index: {}]  }
   0x1   :  { %v151_v0 = vld [vmem:[%s234_s1] sm:$0xff]   ;;  %138 = vmatprep.subr.bf16.mxu0 %v178_v1  ;;  %v152_v2 = vld [vmem:[%s234_s1 + $0x8] sm:$0xff]   ;;  %142 = vmatprep.mubr.msk.bf16.mxu0 %vm179_vm0, %v178_v1 }
   0x2   :  { %139 = vmatpush3.bf16.msra.mxu0 %v151_v0 }
   0x3   :  { %140 = vmatprep.subr.bf16.mxu0 %v178_v1 }
   0x4   :  { %8 = vsyncpa [#allocation4], 0  ;;  %21 = vst.msk [vmem:[#allocation2] sm:$0xff] %vm20_vm1, %v178_v1  ;;  %v153_v3 = vld [vmem:[%s233_s0] sm:$0xff]   ;;  %vm48_vm2 = vcmask 261120   ;;  %s180_s0 = smov [#allocation3]  }
   0x5   :  { %22 = vst.msk [vmem:[#allocation2 + $0x8] sm:$0xff] %vm20_vm1, %v178_v1  ;;  %v134_v12 = vld [vmem:[%s235_s2] ss:$0 sm:$0xff]  ;;  %s119_s19 = sshll.u32 %s180_s0, 4  ;;  %s120_s19 = int_to_ptr.vmem [resolvable:$true] %s119_s19 }
   0x6   :  { %141 = vmatpush3.bf16.msra.mxu0 %v152_v2  ;;  %s154_s20 = scalar_lea.vmem %s120_s19, 256  ;;  %p159_p1 = scmp.lt.s32.totalorder %s120_s19, %s120_s19 }
   0x7   :  { %p155_p0 = scmp.ne.s32.totalorder %s120_s19, %s154_s20  ;;  %p160_p2 = scmp.lt.s32.totalorder %s154_s20, %s154_s20 }
   0x9   :  { %143 = vmatmul.mubr.msk.bf16.vlgmr.msra.gmra.mrb[0].mxu0 %vm48_vm2, %v153_v3  ;;  %p161_p3 = por %p160_p2, %p159_p1 }
   0xb   :  { %v23_v4 = vld [vmem:[#allocation2] sm:$0xff]  ;;  %p162_p4 = pnand %p161_p3, %p155_p0 }
   0xc   :  { %v24_v6 = vld [vmem:[#allocation2 + $0x8] sm:$0xff] }
  0xdc   :  { %v86_v5 = vpop.f32.mrb[0].mxu0 }
  0xdd   :  { %v93_v7 = vadd.f32 %v86_v5, %v23_v4  ;;  %v144_v8 = vpop.f32.mrb[1].mxu0 }
  0xde   :  { %v89_v9 = vpop.f32.mrb[2].mxu0 }
  0xdf   :  { %96 = vst.msk [vmem:[#allocation2] sm:$0xff] %vm20_vm1, %v93_v7  ;;  %v94_v10 = vadd.f32 %v89_v9, %v24_v6  ;;  %v145_v11 = vpop.f32.mrb[3].mxu0 }
  0xe1   :  { %97 = vst.msk [vmem:[#allocation2 + $0x8] sm:$0xff] %vm20_vm1, %v94_v10 }
  0xe6   :  { %v101_v13 = vld [vmem:[#allocation2] sm:$0xff] }
  0xe7   :  { %v110_v14 = vadd.f32 %v134_v12, %v101_v13 }
  0xe8   :  { %v102_v15 = vld [vmem:[#allocation2 + $0x8] sm:$0xff] }
  0xe9   :  { %v111_v16 = vadd.f32 %v134_v12, %v102_v15  ;;  %112 = vst.msk [vmem:[#allocation3] sm:$0xff] %vm20_vm1, %v110_v14 }
  0xeb   :  { %113 = vst.msk [vmem:[#allocation3 + $0x8] sm:$0xff] %vm20_vm1, %v111_v16 }
  0xec   :  { %165 = shalt.err (!%p162_p4)
}
  0xed   :  { %s166_s22 = scalar_lea.hbm %s236_s3, 256 }
  0xee   :  { %p167_p5 = scmp.ne.s32.totalorder %s236_s3, %s166_s22  ;;  %p170_p6 = scmp.lt.u32.totalorder %s166_s22, %s236_s3 }
  0xf0   :  { %p172_p7 = pnand %p170_p6, %p167_p5 }
  0xf2   :  { %175 = shalt.err (!%p172_p7)
}
  0xf3   :  { %s181_s27 = smov 128   ;;  %s182_s28 = smov 8  }
  0xf4   :  { %125 = dma.vmem_to_hbm [thread:$0]  %s120_s19, 256, %s236_s3, [#allocation4], %s181_s27, %s181_s27, %s182_s28  }
  0xf5   :  { %176 = dma.done.wait [#allocation4], 256  }
  0xf6   :  { %177 = vsyncadd [#allocation4], 4294967040 }
  0xf7   :  { %129 = vsyncpa [#allocation4], 1 }

</bundles_post_ra>
